<compile_context>
chip_gen: v7x
topology: tpu7x:2x2x1
jax: 0.10.0
libtpu: 0.0.40
codegen_flags: <defaults>
</compile_context>

<pallas_src>
import numpy as np
import jax
import jax.numpy as jnp
from jax import lax
from jax.experimental import pallas as pl
from jax.experimental.pallas import tpu as pltpu

D_FEAT = 6      # input_dim
HIDDEN = 64     # hidden_size
FREQ = 10       # freq_dim
OUTPUT = 64     # output_dim

# 128-lane-aligned fused gate layout: i | ste | c | o | fre, one slot each.
LANE = 128
OFF_I, OFF_STE, OFF_C, OFF_O, OFF_FRE = 0, 128, 256, 384, 512
GATE_PAD = 5 * LANE   # 640


def _hardsigmoid(z):
    # torch.nn.Hardsigmoid: clip(x/6 + 1/2, 0, 1)
    return jnp.clip(z / 6.0 + 0.5, 0.0, 1.0)


def _pad_lanes(w):
    """Zero-pad the last axis of a gate weight/bias to a full 128-lane slot.

    Pads of BOTH the weight and the bias must stay zero so the pad lanes of the
    fused pre-activation are mathematically inert.
    """
    return jnp.pad(w, [(0, 0)] * (w.ndim - 1) + [(0, LANE - w.shape[-1])])


def sfm_kernel(xz_ref, u_cat_ref, u_a_ref, b_a_ref, re_ref, im_ref,
               w_eff_ref, b_eff_ref, out_ref, h_sc, sre_sc, sim_sc):
    chunk = pl.program_id(0)

    @pl.when(chunk == 0)
    def _init():
        h_sc[...] = jnp.zeros_like(h_sc)
        sre_sc[...] = jnp.zeros_like(sre_sc)
        sim_sc[...] = jnp.zeros_like(sim_sc)

    t_chunk = xz_ref.shape[0]
    u_cat = u_cat_ref[...]                         # (H, 640)
    u_a = u_a_ref[...][None, :, :]                 # (1, F, H) -- hoisted, once
    b_a = b_a_ref[...]                             # (1, H)

    def step(t, carry):
        h, s_re, s_im = carry
        # fused gate pre-activations: one MXU matmul per step
        z = xz_ref[t] + jnp.dot(h, u_cat, preferred_element_type=jnp.float32)
        # all slices start on a 128-lane vreg boundary
        i_g = _hardsigmoid(z[:, OFF_I:OFF_I + HIDDEN])        # (N, H)
        ste = _hardsigmoid(z[:, OFF_STE:OFF_STE + HIDDEN])    # (N, H)
        o_g = _hardsigmoid(z[:, OFF_O:OFF_O + HIDDEN])        # (N, H)
        fre = _hardsigmoid(z[:, OFF_FRE:OFF_FRE + FREQ])      # (N, F)
        c = i_g * jnp.tanh(z[:, OFF_C:OFF_C + HIDDEN])        # (N, H)

        # frequency-domain state update in (N, F, H) layout (HIDDEN on lanes)
        f = fre[:, :, None] * ste[:, None, :]                 # (N, F, H)
        c_b = c[:, None, :]                                   # (N, 1, H)
        s_re = f * s_re + c_b * re_ref[t][None, :, :]         # tables lane-dense
        s_im = f * s_im + c_b * im_ref[t][None, :, :]

        # amplitude attention:  A_a[n,h] = sum_k amp[n,k,h] * U_a[k]
        amp = s_re * s_re + s_im * s_im                       # (N, F, H)
        a = jnp.tanh(jnp.sum(amp * u_a, axis=1) + b_a)        # (N, H)
        return o_g * a, s_re, s_im

    unroll = min(8, t_chunk)   # cap unroll: code-size bounded for large T
    h, s_re, s_im = lax.fori_loop(
        0, t_chunk, step, (h_sc[...], sre_sc[...], sim_sc[...]), unroll=unroll)
    h_sc[...] = h
    sre_sc[...] = s_re
    sim_sc[...] = s_im

    # folded output projection + fc_out + softmax over batch (last chunk only)
    @pl.when(chunk == pl.num_programs(0) - 1)
    def _finalize():
        logits = jnp.dot(h, w_eff_ref[...],
                         preferred_element_type=jnp.float32) + b_eff_ref[...]
        m = jnp.max(logits, axis=0, keepdims=True)
        e = jnp.exp(logits - m)
        denom = jnp.sum(e, axis=0, keepdims=True)
        out_ref[...] = e / denom    # exact division: one-shot, keeps sum == 1


def _largest_divisor_leq(n, cap):
    best = 1
    for c in range(1, min(n, cap) + 1):
        if n % c == 0:
            best = c
    return best


def sfm_forward(x, params, *, max_t_chunk=32):
    """x: (N, D_FEAT * T) float32 -> softmax weights (N,) float32."""
    n = x.shape[0]
    t_steps = x.shape[1] // D_FEAT
    xr = jnp.transpose(
        x.reshape(n, D_FEAT, t_steps).astype(jnp.float32), (2, 0, 1))   # (T,N,D)

    # fused, 128-lane-aligned weights (gate order: i, ste, c, o, fre)
    w_cat = jnp.concatenate(
        [_pad_lanes(params["W_i"]), _pad_lanes(params["W_ste"]),
         _pad_lanes(params["W_c"]), _pad_lanes(params["W_o"]),
         _pad_lanes(params["W_fre"])], axis=1)                          # (D, 640)
    b_cat = jnp.concatenate(
        [_pad_lanes(params["b_i"]), _pad_lanes(params["b_ste"]),
         _pad_lanes(params["b_c"]), _pad_lanes(params["b_o"]),
         _pad_lanes(params["b_fre"])], axis=1)                          # (1, 640)
    u_cat = jnp.concatenate(
        [_pad_lanes(params["U_i"]), _pad_lanes(params["U_ste"]),
         _pad_lanes(params["U_c"]), _pad_lanes(params["U_o"]),
         _pad_lanes(params["U_fre"])], axis=1)                          # (H, 640)

    # hoisted input projections for all timesteps: one (T*N, D) @ (D, 640) matmul
    xz = (xr.reshape(t_steps * n, D_FEAT) @ w_cat + b_cat).reshape(
        t_steps, n, GATE_PAD)                                           # f32

    # cos/sin tables pre-broadcast to (T, F, HIDDEN) (lane-dense on HIDDEN)
    tvec = jnp.arange(1, t_steps + 1, dtype=jnp.float32)[:, None]       # (T, 1)
    omega = (2.0 * np.pi) * tvec * params["freq"]                       # (T, F)
    re_tab = jnp.broadcast_to(jnp.cos(omega)[:, :, None],
                              (t_steps, FREQ, HIDDEN))
    im_tab = jnp.broadcast_to(jnp.sin(omega)[:, :, None],
                              (t_steps, FREQ, HIDDEN))

    # U_a pre-broadcast to (F, HIDDEN)
    u_a_b = jnp.broadcast_to(params["u_a"], (FREQ, HIDDEN))

    # folded epilogue: logits = h @ (W_p @ w_fc.T) + (b_p @ w_fc.T + b_fc)
    w_eff = params["W_p"] @ params["w_fc"].T                            # (H, 1)
    b_eff = params["b_p"] @ params["w_fc"].T + params["b_fc"]           # (1, 1)

    # stream time over a grid of T-chunks; state carried in VMEM scratch
    t_chunk = _largest_divisor_leq(t_steps, max_t_chunk)
    n_chunks = t_steps // t_chunk

    grid_spec = pltpu.PrefetchScalarGridSpec(
        num_scalar_prefetch=0,
        grid=(n_chunks,),
        in_specs=[
            pl.BlockSpec((t_chunk, n, GATE_PAD), lambda c: (c, 0, 0)),   # xz
            pl.BlockSpec((HIDDEN, GATE_PAD), lambda c: (0, 0)),          # u_cat
            pl.BlockSpec((FREQ, HIDDEN), lambda c: (0, 0)),              # u_a
            pl.BlockSpec((1, HIDDEN), lambda c: (0, 0)),                 # b_a
            pl.BlockSpec((t_chunk, FREQ, HIDDEN), lambda c: (c, 0, 0)),  # re
            pl.BlockSpec((t_chunk, FREQ, HIDDEN), lambda c: (c, 0, 0)),  # im
            pl.BlockSpec((HIDDEN, 1), lambda c: (0, 0)),                 # w_eff
            pl.BlockSpec((1, 1), lambda c: (0, 0)),                      # b_eff
        ],
        out_specs=pl.BlockSpec((n, 1), lambda c: (0, 0)),
        scratch_shapes=[
            pltpu.VMEM((n, HIDDEN), jnp.float32),        # h carry
            pltpu.VMEM((n, FREQ, HIDDEN), jnp.float32),  # S_re carry
            pltpu.VMEM((n, FREQ, HIDDEN), jnp.float32),  # S_im carry
        ],
    )

    out = pl.pallas_call(
        sfm_kernel,
        out_shape=jax.ShapeDtypeStruct((n, 1), jnp.float32),
        grid_spec=grid_spec,
        compiler_params=pltpu.CompilerParams(
            dimension_semantics=("arbitrary",)),
    )(xz, u_cat, u_a_b, params["b_a"], re_tab, im_tab, w_eff, b_eff)
    return out[:, 0]


def make_params(key):
    ks = jax.random.split(key, 16)

    def xavier(k, shape):
        bound = float(np.sqrt(6.0 / (shape[0] + shape[1])))
        return jax.random.uniform(k, shape, jnp.float32, -bound, bound)

    # TODO(synk): PyTorch uses orthogonal init for the U_* matrices; we use a
    # deterministic xavier-uniform surrogate (synthetic weights, not a checkpoint).
    lin_b = float(1.0 / np.sqrt(OUTPUT))
    return {
        "W_i": xavier(ks[0], (D_FEAT, HIDDEN)),
        "U_i": xavier(ks[1], (HIDDEN, HIDDEN)),
        "b_i": jnp.zeros((1, HIDDEN), jnp.float32),
        "W_ste": xavier(ks[2], (D_FEAT, HIDDEN)),
        "U_ste": xavier(ks[3], (HIDDEN, HIDDEN)),
        "b_ste": jnp.ones((1, HIDDEN), jnp.float32),
        "W_fre": xavier(ks[4], (D_FEAT, FREQ)),
        "U_fre": xavier(ks[5], (HIDDEN, FREQ)),
        "b_fre": jnp.ones((1, FREQ), jnp.float32),
        "W_c": xavier(ks[6], (D_FEAT, HIDDEN)),
        "U_c": xavier(ks[7], (HIDDEN, HIDDEN)),
        "b_c": jnp.zeros((1, HIDDEN), jnp.float32),
        "W_o": xavier(ks[8], (D_FEAT, HIDDEN)),
        "U_o": xavier(ks[9], (HIDDEN, HIDDEN)),
        "b_o": jnp.zeros((1, HIDDEN), jnp.float32),
        "u_a": xavier(ks[10], (FREQ, 1)),                    # U_a column (F, 1)
        "b_a": jnp.zeros((1, HIDDEN), jnp.float32),
        "W_p": xavier(ks[11], (HIDDEN, OUTPUT)),
        "b_p": jnp.zeros((1, OUTPUT), jnp.float32),
        "freq": (jnp.arange(FREQ, dtype=jnp.float32) / FREQ).reshape(1, FREQ),
        "w_fc": jax.random.uniform(ks[12], (1, OUTPUT), jnp.float32, -lin_b, lin_b),
        "b_fc": jax.random.uniform(ks[13], (1, 1), jnp.float32, -lin_b, lin_b),
    }


def sfm_ref(x, params):
    """Pure-JAX reference of the PyTorch forward (float32)."""
    n = x.shape[0]
    t_steps = x.shape[1] // D_FEAT
    xr = jnp.transpose(x.reshape(n, D_FEAT, t_steps).astype(jnp.float32), (2, 0, 1))
    h = jnp.zeros((n, HIDDEN), jnp.float32)
    s_re = jnp.zeros((n, HIDDEN, FREQ), jnp.float32)
    s_im = jnp.zeros((n, HIDDEN, FREQ), jnp.float32)
    p = jnp.zeros((n, OUTPUT), jnp.float32)
    freq = params["freq"]
    for ts in range(t_steps):
        xt = xr[ts]
        x_i = xt @ params["W_i"] + params["b_i"]
        x_ste = xt @ params["W_ste"] + params["b_ste"]
        x_fre = xt @ params["W_fre"] + params["b_fre"]
        x_c = xt @ params["W_c"] + params["b_c"]
        x_o = xt @ params["W_o"] + params["b_o"]
        i_g = _hardsigmoid(x_i + h @ params["U_i"])
        ste = _hardsigmoid(x_ste + h @ params["U_ste"])
        fre = _hardsigmoid(x_fre + h @ params["U_fre"])
        f = ste[:, :, None] * fre[:, None, :]
        c = i_g * jnp.tanh(x_c + h @ params["U_c"])
        omega = 2.0 * np.pi * (ts + 1.0) * freq
        re = jnp.cos(omega)[None, :, :]
        im = jnp.sin(omega)[None, :, :]
        s_re = f * s_re + c[:, :, None] * re
        s_im = f * s_im + c[:, :, None] * im
        amp = s_re ** 2 + s_im ** 2
        a_a = (amp.reshape(-1, FREQ) @ params["u_a"]).reshape(n, HIDDEN)
        a = jnp.tanh(a_a + params["b_a"])
        o = _hardsigmoid(x_o + h @ params["U_o"])
        h = o * a
        p = h @ params["W_p"] + params["b_p"]
    logits = jnp.sum(p * params["w_fc"], axis=-1) + params["b_fc"][0, 0]
    return jax.nn.softmax(logits, axis=0)


if __name__ == "__main__":
    key = jax.random.PRNGKey(0)
    pkey, xkey = jax.random.split(key)
    params = make_params(pkey)

    batch, t_steps = 4, 8                      # input (N, d_feat * T) = (4, 48)
    x = jax.random.normal(xkey, (batch, D_FEAT * t_steps), jnp.float32)

    out = jax.block_until_ready(sfm_forward(x, params))
    ref = jax.block_until_ready(sfm_ref(x, params))

    assert out.shape == (batch,)
    np.testing.assert_allclose(np.asarray(out), np.asarray(ref),
                               rtol=1e-2, atol=5e-3)
    print("KERNEL_OK")
</pallas_src>

<mosaic_0001>
module attributes {stable_mosaic.version = 11 : i64} {
  func.func @sfm_kernel(%arg0: i32, %arg1: memref<8x4x640xf32, #tpu.memory_space<vmem>>, %arg2: memref<64x640xf32, #tpu.memory_space<vmem>>, %arg3: memref<10x64xf32, #tpu.memory_space<vmem>>, %arg4: memref<1x64xf32, #tpu.memory_space<vmem>>, %arg5: memref<8x10x64xf32, #tpu.memory_space<vmem>>, %arg6: memref<8x10x64xf32, #tpu.memory_space<vmem>>, %arg7: memref<64x1xf32, #tpu.memory_space<vmem>>, %arg8: memref<1x1xf32, #tpu.memory_space<vmem>>, %arg9: memref<4x1xf32, #tpu.memory_space<vmem>>, %arg10: memref<4x64xf32, #tpu.memory_space<vmem>>, %arg11: memref<4x10x64xf32, #tpu.memory_space<vmem>>, %arg12: memref<4x10x64xf32, #tpu.memory_space<vmem>>) attributes {dimension_semantics = [#tpu.dimension_semantics<arbitrary>], iteration_bounds = array<i64: 1>, scalar_prefetch = 0 : i64, scratch_operands = 3 : i64, tpu.core_type = #tpu.core_type<tc>, window_params = [{transform_indices = @transform_0, window_bounds = array<i64: 8, 4, 640>}, {pipeline_mode = #tpu.pipeline_mode<synchronous>, transform_indices = @transform_1, window_bounds = array<i64: 64, 640>}, {pipeline_mode = #tpu.pipeline_mode<synchronous>, transform_indices = @transform_2, window_bounds = array<i64: 10, 64>}, {pipeline_mode = #tpu.pipeline_mode<synchronous>, transform_indices = @transform_3, window_bounds = array<i64: 1, 64>}, {transform_indices = @transform_4, window_bounds = array<i64: 8, 10, 64>}, {transform_indices = @transform_5, window_bounds = array<i64: 8, 10, 64>}, {pipeline_mode = #tpu.pipeline_mode<synchronous>, transform_indices = @transform_6, window_bounds = array<i64: 64, 1>}, {pipeline_mode = #tpu.pipeline_mode<synchronous>, transform_indices = @transform_7, window_bounds = array<i64: 1, 1>}, {pipeline_mode = #tpu.pipeline_mode<synchronous>, transform_indices = @transform_8, window_bounds = array<i64: 4, 1>}]} {
    %c0_i32 = arith.constant 0 : i32
    %0 = arith.cmpi eq, %arg0, %c0_i32 : i32
    %1 = arith.extui %0 : i1 to i32
    %c0_i32_0 = arith.constant 0 : i32
    %2 = arith.cmpi ne, %1, %c0_i32_0 : i32
    scf.if %2 {
      %cst_216 = arith.constant 0.000000e+00 : f32
      %640 = vector.broadcast %cst_216 : f32 to vector<4x64xf32>
      %c0_217 = arith.constant 0 : index
      %c0_218 = arith.constant 0 : index
      %641 = vector.load %arg10[%c0_217, %c0_218] : memref<4x64xf32, #tpu.memory_space<vmem>>, vector<4x64xf32>
      tpu.vector_store %arg10[%c0_217, %c0_218], %640 {strides = array<i32>} : memref<4x64xf32, #tpu.memory_space<vmem>>, vector<4x64xf32>,
      %cst_219 = arith.constant 0.000000e+00 : f32
      %642 = vector.broadcast %cst_219 : f32 to vector<4x10x64xf32>
      %c0_220 = arith.constant 0 : index
      %c0_221 = arith.constant 0 : index
      %c0_222 = arith.constant 0 : index
      %643 = vector.load %arg11[%c0_220, %c0_221, %c0_222] : memref<4x10x64xf32, #tpu.memory_space<vmem>>, vector<4x10x64xf32>
      tpu.vector_store %arg11[%c0_220, %c0_221, %c0_222], %642 {strides = array<i32>} : memref<4x10x64xf32, #tpu.memory_space<vmem>>, vector<4x10x64xf32>,
      %cst_223 = arith.constant 0.000000e+00 : f32
      %644 = vector.broadcast %cst_223 : f32 to vector<4x10x64xf32>
      %c0_224 = arith.constant 0 : index
      %c0_225 = arith.constant 0 : index
      %c0_226 = arith.constant 0 : index
      %645 = vector.load %arg12[%c0_224, %c0_225, %c0_226] : memref<4x10x64xf32, #tpu.memory_space<vmem>>, vector<4x10x64xf32>
      tpu.vector_store %arg12[%c0_224, %c0_225, %c0_226], %644 {strides = array<i32>} : memref<4x10x64xf32, #tpu.memory_space<vmem>>, vector<4x10x64xf32>,
    } else {
    }
    %c0 = arith.constant 0 : index
    %c0_1 = arith.constant 0 : index
    %3 = vector.load %arg2[%c0, %c0_1] : memref<64x640xf32, #tpu.memory_space<vmem>>, vector<64x640xf32>
    %c0_2 = arith.constant 0 : index
    %c0_3 = arith.constant 0 : index
    %4 = vector.load %arg3[%c0_2, %c0_3] : memref<10x64xf32, #tpu.memory_space<vmem>>, vector<10x64xf32>
    %5 = vector.shape_cast %4 : vector<10x64xf32> to vector<1x10x64xf32>
    %c0_4 = arith.constant 0 : index
    %c0_5 = arith.constant 0 : index
    %6 = vector.load %arg4[%c0_4, %c0_5] : memref<1x64xf32, #tpu.memory_space<vmem>>, vector<1x64xf32>
    %c0_6 = arith.constant 0 : index
    %c0_7 = arith.constant 0 : index
    %7 = vector.load %arg10[%c0_6, %c0_7] : memref<4x64xf32, #tpu.memory_space<vmem>>, vector<4x64xf32>
    %c0_8 = arith.constant 0 : index
    %c0_9 = arith.constant 0 : index
    %c0_10 = arith.constant 0 : index
    %8 = vector.load %arg11[%c0_8, %c0_9, %c0_10] : memref<4x10x64xf32, #tpu.memory_space<vmem>>, vector<4x10x64xf32>
    %c0_11 = arith.constant 0 : index
    %c0_12 = arith.constant 0 : index
    %c0_13 = arith.constant 0 : index
    %9 = vector.load %arg12[%c0_11, %c0_12, %c0_13] : memref<4x10x64xf32, #tpu.memory_space<vmem>>, vector<4x10x64xf32>
    %c0_i32_14 = arith.constant 0 : i32
    %10 = arith.index_cast %c0_i32_14 : i32 to index
    %c0_15 = arith.constant 0 : index
    %c0_16 = arith.constant 0 : index
    %11 = vector.load %arg1[%10, %c0_15, %c0_16] : memref<8x4x640xf32, #tpu.memory_space<vmem>>, vector<1x4x640xf32>
    %12 = vector.shape_cast %11 : vector<1x4x640xf32> to vector<4x640xf32>
    %cst = arith.constant dense<0.000000e+00> : vector<4x640xf32>
    %13 = tpu.matmul %7, %3, %cst {dimension_numbers = #tpu.dot_dimension_numbers<[1], [0], [0], [1], [0, 0, 1, 1], [], []>} : vector<4x64xf32>, vector<64x640xf32>, vector<4x640xf32> -> vector<4x640xf32>
    %14 = arith.addf %12, %13 : vector<4x640xf32>
    %15 = vector.extract_strided_slice %14 {offsets = [0, 0], sizes = [4, 64], strides = [1, 1]} : vector<4x640xf32> to vector<4x64xf32>
    %cst_17 = arith.constant 6.000000e+00 : f32
    %16 = vector.broadcast %cst_17 : f32 to vector<4x64xf32>
    %17 = arith.divf %15, %16 : vector<4x64xf32>
    %cst_18 = arith.constant 5.000000e-01 : f32
    %18 = vector.broadcast %cst_18 : f32 to vector<4x64xf32>
    %19 = arith.addf %17, %18 : vector<4x64xf32>
    %cst_19 = arith.constant 0.000000e+00 : f32
    %cst_20 = arith.constant 1.000000e+00 : f32
    %20 = vector.broadcast %cst_19 : f32 to vector<4x64xf32>
    %21 = arith.maximumf %20, %19 : vector<4x64xf32>
    %22 = vector.broadcast %cst_20 : f32 to vector<4x64xf32>
    %23 = arith.minimumf %22, %21 : vector<4x64xf32>
    %24 = vector.extract_strided_slice %14 {offsets = [0, 128], sizes = [4, 64], strides = [1, 1]} : vector<4x640xf32> to vector<4x64xf32>
    %cst_21 = arith.constant 6.000000e+00 : f32
    %25 = vector.broadcast %cst_21 : f32 to vector<4x64xf32>
    %26 = arith.divf %24, %25 : vector<4x64xf32>
    %cst_22 = arith.constant 5.000000e-01 : f32
    %27 = vector.broadcast %cst_22 : f32 to vector<4x64xf32>
    %28 = arith.addf %26, %27 : vector<4x64xf32>
    %cst_23 = arith.constant 0.000000e+00 : f32
    %cst_24 = arith.constant 1.000000e+00 : f32
    %29 = vector.broadcast %cst_23 : f32 to vector<4x64xf32>
    %30 = arith.maximumf %29, %28 : vector<4x64xf32>
    %31 = vector.broadcast %cst_24 : f32 to vector<4x64xf32>
    %32 = arith.minimumf %31, %30 : vector<4x64xf32>
    %33 = vector.extract_strided_slice %14 {offsets = [0, 384], sizes = [4, 64], strides = [1, 1]} : vector<4x640xf32> to vector<4x64xf32>
    %cst_25 = arith.constant 6.000000e+00 : f32
    %34 = vector.broadcast %cst_25 : f32 to vector<4x64xf32>
    %35 = arith.divf %33, %34 : vector<4x64xf32>
    %cst_26 = arith.constant 5.000000e-01 : f32
    %36 = vector.broadcast %cst_26 : f32 to vector<4x64xf32>
    %37 = arith.addf %35, %36 : vector<4x64xf32>
    %cst_27 = arith.constant 0.000000e+00 : f32
    %cst_28 = arith.constant 1.000000e+00 : f32
    %38 = vector.broadcast %cst_27 : f32 to vector<4x64xf32>
    %39 = arith.maximumf %38, %37 : vector<4x64xf32>
    %40 = vector.broadcast %cst_28 : f32 to vector<4x64xf32>
    %41 = arith.minimumf %40, %39 : vector<4x64xf32>
    %42 = vector.extract_strided_slice %14 {offsets = [0, 512], sizes = [4, 10], strides = [1, 1]} : vector<4x640xf32> to vector<4x10xf32>
    %cst_29 = arith.constant 6.000000e+00 : f32
    %43 = vector.broadcast %cst_29 : f32 to vector<4x10xf32>
    %44 = arith.divf %42, %43 : vector<4x10xf32>
    %cst_30 = arith.constant 5.000000e-01 : f32
    %45 = vector.broadcast %cst_30 : f32 to vector<4x10xf32>
    %46 = arith.addf %44, %45 : vector<4x10xf32>
    %cst_31 = arith.constant 0.000000e+00 : f32
    %cst_32 = arith.constant 1.000000e+00 : f32
    %47 = vector.broadcast %cst_31 : f32 to vector<4x10xf32>
    %48 = arith.maximumf %47, %46 : vector<4x10xf32>
    %49 = vector.broadcast %cst_32 : f32 to vector<4x10xf32>
    %50 = arith.minimumf %49, %48 : vector<4x10xf32>
    %51 = vector.extract_strided_slice %14 {offsets = [0, 256], sizes = [4, 64], strides = [1, 1]} : vector<4x640xf32> to vector<4x64xf32>
    %52 = math.tanh %51 : vector<4x64xf32>
    %53 = arith.mulf %23, %52 : vector<4x64xf32>
    %54 = vector.shape_cast %50 : vector<4x10xf32> to vector<4x10x1xf32>
    %55 = vector.shape_cast %32 : vector<4x64xf32> to vector<4x1x64xf32>
    %56 = vector.broadcast %54 : vector<4x10x1xf32> to vector<4x10x64xf32>
    %57 = vector.broadcast %55 : vector<4x1x64xf32> to vector<4x10x64xf32>
    %58 = arith.mulf %56, %57 : vector<4x10x64xf32>
    %59 = vector.shape_cast %53 : vector<4x64xf32> to vector<4x1x64xf32>
    %60 = arith.mulf %58, %8 : vector<4x10x64xf32>
    %61 = arith.index_cast %c0_i32_14 : i32 to index
    %c0_33 = arith.constant 0 : index
    %c0_34 = arith.constant 0 : index
    %62 = vector.load %arg5[%61, %c0_33, %c0_34] : memref<8x10x64xf32, #tpu.memory_space<vmem>>, vector<1x10x64xf32>
    %63 = vector.shape_cast %62 : vector<1x10x64xf32> to vector<10x64xf32>
    %64 = vector.shape_cast %63 : vector<10x64xf32> to vector<1x10x64xf32>
    %65 = vector.broadcast %59 : vector<4x1x64xf32> to vector<4x10x64xf32>
    %66 = vector.broadcast %64 : vector<1x10x64xf32> to vector<4x10x64xf32>
    %67 = arith.mulf %65, %66 : vector<4x10x64xf32>
    %68 = arith.addf %60, %67 : vector<4x10x64xf32>
    %69 = arith.mulf %58, %9 : vector<4x10x64xf32>
    %70 = arith.index_cast %c0_i32_14 : i32 to index
    %c0_35 = arith.constant 0 : index
    %c0_36 = arith.constant 0 : index
    %71 = vector.load %arg6[%70, %c0_35, %c0_36] : memref<8x10x64xf32, #tpu.memory_space<vmem>>, vector<1x10x64xf32>
    %72 = vector.shape_cast %71 : vector<1x10x64xf32> to vector<10x64xf32>
    %73 = vector.shape_cast %72 : vector<10x64xf32> to vector<1x10x64xf32>
    %74 = vector.broadcast %59 : vector<4x1x64xf32> to vector<4x10x64xf32>
    %75 = vector.broadcast %73 : vector<1x10x64xf32> to vector<4x10x64xf32>
    %76 = arith.mulf %74, %75 : vector<4x10x64xf32>
    %77 = arith.addf %69, %76 : vector<4x10x64xf32>
    %78 = arith.mulf %68, %68 : vector<4x10x64xf32>
    %79 = arith.mulf %77, %77 : vector<4x10x64xf32>
    %80 = arith.addf %78, %79 : vector<4x10x64xf32>
    %81 = vector.broadcast %5 : vector<1x10x64xf32> to vector<4x10x64xf32>
    %82 = arith.mulf %80, %81 : vector<4x10x64xf32>
    %cst_37 = arith.constant dense<0.000000e+00> : vector<4x64xf32>
    %83 = vector.multi_reduction <add>, %82, %cst_37 [1] : vector<4x10x64xf32> to vector<4x64xf32>
    %84 = vector.broadcast %6 : vector<1x64xf32> to vector<4x64xf32>
    %85 = arith.addf %83, %84 : vector<4x64xf32>
    %86 = math.tanh %85 : vector<4x64xf32>
    %87 = arith.mulf %41, %86 : vector<4x64xf32>
    %c1_i32 = arith.constant 1 : i32
    %88 = arith.index_cast %c1_i32 : i32 to index
    %c0_38 = arith.constant 0 : index
    %c0_39 = arith.constant 0 : index
    %89 = vector.load %arg1[%88, %c0_38, %c0_39] : memref<8x4x640xf32, #tpu.memory_space<vmem>>, vector<1x4x640xf32>
    %90 = vector.shape_cast %89 : vector<1x4x640xf32> to vector<4x640xf32>
    %cst_40 = arith.constant dense<0.000000e+00> : vector<4x640xf32>
    %91 = tpu.matmul %87, %3, %cst_40 {dimension_numbers = #tpu.dot_dimension_numbers<[1], [0], [0], [1], [0, 0, 1, 1], [], []>} : vector<4x64xf32>, vector<64x640xf32>, vector<4x640xf32> -> vector<4x640xf32>
    %92 = arith.addf %90, %91 : vector<4x640xf32>
    %93 = vector.extract_strided_slice %92 {offsets = [0, 0], sizes = [4, 64], strides = [1, 1]} : vector<4x640xf32> to vector<4x64xf32>
    %cst_41 = arith.constant 6.000000e+00 : f32
    %94 = vector.broadcast %cst_41 : f32 to vector<4x64xf32>
    %95 = arith.divf %93, %94 : vector<4x64xf32>
    %cst_42 = arith.constant 5.000000e-01 : f32
    %96 = vector.broadcast %cst_42 : f32 to vector<4x64xf32>
    %97 = arith.addf %95, %96 : vector<4x64xf32>
    %cst_43 = arith.constant 0.000000e+00 : f32
    %cst_44 = arith.constant 1.000000e+00 : f32
    %98 = vector.broadcast %cst_43 : f32 to vector<4x64xf32>
    %99 = arith.maximumf %98, %97 : vector<4x64xf32>
    %100 = vector.broadcast %cst_44 : f32 to vector<4x64xf32>
    %101 = arith.minimumf %100, %99 : vector<4x64xf32>
    %102 = vector.extract_strided_slice %92 {offsets = [0, 128], sizes = [4, 64], strides = [1, 1]} : vector<4x640xf32> to vector<4x64xf32>
    %cst_45 = arith.constant 6.000000e+00 : f32
    %103 = vector.broadcast %cst_45 : f32 to vector<4x64xf32>
    %104 = arith.divf %102, %103 : vector<4x64xf32>
    %cst_46 = arith.constant 5.000000e-01 : f32
    %105 = vector.broadcast %cst_46 : f32 to vector<4x64xf32>
    %106 = arith.addf %104, %105 : vector<4x64xf32>
    %cst_47 = arith.constant 0.000000e+00 : f32
    %cst_48 = arith.constant 1.000000e+00 : f32
    %107 = vector.broadcast %cst_47 : f32 to vector<4x64xf32>
    %108 = arith.maximumf %107, %106 : vector<4x64xf32>
    %109 = vector.broadcast %cst_48 : f32 to vector<4x64xf32>
    %110 = arith.minimumf %109, %108 : vector<4x64xf32>
    %111 = vector.extract_strided_slice %92 {offsets = [0, 384], sizes = [4, 64], strides = [1, 1]} : vector<4x640xf32> to vector<4x64xf32>
    %cst_49 = arith.constant 6.000000e+00 : f32
    %112 = vector.broadcast %cst_49 : f32 to vector<4x64xf32>
    %113 = arith.divf %111, %112 : vector<4x64xf32>
    %cst_50 = arith.constant 5.000000e-01 : f32
    %114 = vector.broadcast %cst_50 : f32 to vector<4x64xf32>
    %115 = arith.addf %113, %114 : vector<4x64xf32>
    %cst_51 = arith.constant 0.000000e+00 : f32
    %cst_52 = arith.constant 1.000000e+00 : f32
    %116 = vector.broadcast %cst_51 : f32 to vector<4x64xf32>
    %117 = arith.maximumf %116, %115 : vector<4x64xf32>
    %118 = vector.broadcast %cst_52 : f32 to vector<4x64xf32>
    %119 = arith.minimumf %118, %117 : vector<4x64xf32>
    %120 = vector.extract_strided_slice %92 {offsets = [0, 512], sizes = [4, 10], strides = [1, 1]} : vector<4x640xf32> to vector<4x10xf32>
    %cst_53 = arith.constant 6.000000e+00 : f32
    %121 = vector.broadcast %cst_53 : f32 to vector<4x10xf32>
    %122 = arith.divf %120, %121 : vector<4x10xf32>
    %cst_54 = arith.constant 5.000000e-01 : f32
    %123 = vector.broadcast %cst_54 : f32 to vector<4x10xf32>
    %124 = arith.addf %122, %123 : vector<4x10xf32>
    %cst_55 = arith.constant 0.000000e+00 : f32
    %cst_56 = arith.constant 1.000000e+00 : f32
    %125 = vector.broadcast %cst_55 : f32 to vector<4x10xf32>
    %126 = arith.maximumf %125, %124 : vector<4x10xf32>
    %127 = vector.broadcast %cst_56 : f32 to vector<4x10xf32>
    %128 = arith.minimumf %127, %126 : vector<4x10xf32>
    %129 = vector.extract_strided_slice %92 {offsets = [0, 256], sizes = [4, 64], strides = [1, 1]} : vector<4x640xf32> to vector<4x64xf32>
    %130 = math.tanh %129 : vector<4x64xf32>
    %131 = arith.mulf %101, %130 : vector<4x64xf32>
    %132 = vector.shape_cast %128 : vector<4x10xf32> to vector<4x10x1xf32>
    %133 = vector.shape_cast %110 : vector<4x64xf32> to vector<4x1x64xf32>
    %134 = vector.broadcast %132 : vector<4x10x1xf32> to vector<4x10x64xf32>
    %135 = vector.broadcast %133 : vector<4x1x64xf32> to vector<4x10x64xf32>
    %136 = arith.mulf %134, %135 : vector<4x10x64xf32>
    %137 = vector.shape_cast %131 : vector<4x64xf32> to vector<4x1x64xf32>
    %138 = arith.mulf %136, %68 : vector<4x10x64xf32>
    %139 = arith.index_cast %c1_i32 : i32 to index
    %c0_57 = arith.constant 0 : index
    %c0_58 = arith.constant 0 : index
    %140 = vector.load %arg5[%139, %c0_57, %c0_58] : memref<8x10x64xf32, #tpu.memory_space<vmem>>, vector<1x10x64xf32>
    %141 = vector.shape_cast %140 : vector<1x10x64xf32> to vector<10x64xf32>
    %142 = vector.shape_cast %141 : vector<10x64xf32> to vector<1x10x64xf32>
    %143 = vector.broadcast %137 : vector<4x1x64xf32> to vector<4x10x64xf32>
    %144 = vector.broadcast %142 : vector<1x10x64xf32> to vector<4x10x64xf32>
    %145 = arith.mulf %143, %144 : vector<4x10x64xf32>
    %146 = arith.addf %138, %145 : vector<4x10x64xf32>
    %147 = arith.mulf %136, %77 : vector<4x10x64xf32>
    %148 = arith.index_cast %c1_i32 : i32 to index
    %c0_59 = arith.constant 0 : index
    %c0_60 = arith.constant 0 : index
    %149 = vector.load %arg6[%148, %c0_59, %c0_60] : memref<8x10x64xf32, #tpu.memory_space<vmem>>, vector<1x10x64xf32>
    %150 = vector.shape_cast %149 : vector<1x10x64xf32> to vector<10x64xf32>
    %151 = vector.shape_cast %150 : vector<10x64xf32> to vector<1x10x64xf32>
    %152 = vector.broadcast %137 : vector<4x1x64xf32> to vector<4x10x64xf32>
    %153 = vector.broadcast %151 : vector<1x10x64xf32> to vector<4x10x64xf32>
    %154 = arith.mulf %152, %153 : vector<4x10x64xf32>
    %155 = arith.addf %147, %154 : vector<4x10x64xf32>
    %156 = arith.mulf %146, %146 : vector<4x10x64xf32>
    %157 = arith.mulf %155, %155 : vector<4x10x64xf32>
    %158 = arith.addf %156, %157 : vector<4x10x64xf32>
    %159 = vector.broadcast %5 : vector<1x10x64xf32> to vector<4x10x64xf32>
    %160 = arith.mulf %158, %159 : vector<4x10x64xf32>
    %cst_61 = arith.constant dense<0.000000e+00> : vector<4x64xf32>
    %161 = vector.multi_reduction <add>, %160, %cst_61 [1] : vector<4x10x64xf32> to vector<4x64xf32>
    %162 = vector.broadcast %6 : vector<1x64xf32> to vector<4x64xf32>
    %163 = arith.addf %161, %162 : vector<4x64xf32>
    %164 = math.tanh %163 : vector<4x64xf32>
    %165 = arith.mulf %119, %164 : vector<4x64xf32>
    %c2_i32 = arith.constant 2 : i32
    %166 = arith.index_cast %c2_i32 : i32 to index
    %c0_62 = arith.constant 0 : index
    %c0_63 = arith.constant 0 : index
    %167 = vector.load %arg1[%166, %c0_62, %c0_63] : memref<8x4x640xf32, #tpu.memory_space<vmem>>, vector<1x4x640xf32>
    %168 = vector.shape_cast %167 : vector<1x4x640xf32> to vector<4x640xf32>
    %cst_64 = arith.constant dense<0.000000e+00> : vector<4x640xf32>
    %169 = tpu.matmul %165, %3, %cst_64 {dimension_numbers = #tpu.dot_dimension_numbers<[1], [0], [0], [1], [0, 0, 1, 1], [], []>} : vector<4x64xf32>, vector<64x640xf32>, vector<4x640xf32> -> vector<4x640xf32>
    %170 = arith.addf %168, %169 : vector<4x640xf32>
    %171 = vector.extract_strided_slice %170 {offsets = [0, 0], sizes = [4, 64], strides = [1, 1]} : vector<4x640xf32> to vector<4x64xf32>
    %cst_65 = arith.constant 6.000000e+00 : f32
    %172 = vector.broadcast %cst_65 : f32 to vector<4x64xf32>
    %173 = arith.divf %171, %172 : vector<4x64xf32>
    %cst_66 = arith.constant 5.000000e-01 : f32
    %174 = vector.broadcast %cst_66 : f32 to vector<4x64xf32>
    %175 = arith.addf %173, %174 : vector<4x64xf32>
    %cst_67 = arith.constant 0.000000e+00 : f32
    %cst_68 = arith.constant 1.000000e+00 : f32
    %176 = vector.broadcast %cst_67 : f32 to vector<4x64xf32>
    %177 = arith.maximumf %176, %175 : vector<4x64xf32>
    %178 = vector.broadcast %cst_68 : f32 to vector<4x64xf32>
    %179 = arith.minimumf %178, %177 : vector<4x64xf32>
    %180 = vector.extract_strided_slice %170 {offsets = [0, 128], sizes = [4, 64], strides = [1, 1]} : vector<4x640xf32> to vector<4x64xf32>
    %cst_69 = arith.constant 6.000000e+00 : f32
    %181 = vector.broadcast %cst_69 : f32 to vector<4x64xf32>
    %182 = arith.divf %180, %181 : vector<4x64xf32>
    %cst_70 = arith.constant 5.000000e-01 : f32
    %183 = vector.broadcast %cst_70 : f32 to vector<4x64xf32>
    %184 = arith.addf %182, %183 : vector<4x64xf32>
    %cst_71 = arith.constant 0.000000e+00 : f32
    %cst_72 = arith.constant 1.000000e+00 : f32
    %185 = vector.broadcast %cst_71 : f32 to vector<4x64xf32>
    %186 = arith.maximumf %185, %184 : vector<4x64xf32>
    %187 = vector.broadcast %cst_72 : f32 to vector<4x64xf32>
    %188 = arith.minimumf %187, %186 : vector<4x64xf32>
    %189 = vector.extract_strided_slice %170 {offsets = [0, 384], sizes = [4, 64], strides = [1, 1]} : vector<4x640xf32> to vector<4x64xf32>
    %cst_73 = arith.constant 6.000000e+00 : f32
    %190 = vector.broadcast %cst_73 : f32 to vector<4x64xf32>
    %191 = arith.divf %189, %190 : vector<4x64xf32>
    %cst_74 = arith.constant 5.000000e-01 : f32
    %192 = vector.broadcast %cst_74 : f32 to vector<4x64xf32>
    %193 = arith.addf %191, %192 : vector<4x64xf32>
    %cst_75 = arith.constant 0.000000e+00 : f32
    %cst_76 = arith.constant 1.000000e+00 : f32
    %194 = vector.broadcast %cst_75 : f32 to vector<4x64xf32>
    %195 = arith.maximumf %194, %193 : vector<4x64xf32>
    %196 = vector.broadcast %cst_76 : f32 to vector<4x64xf32>
    %197 = arith.minimumf %196, %195 : vector<4x64xf32>
    %198 = vector.extract_strided_slice %170 {offsets = [0, 512], sizes = [4, 10], strides = [1, 1]} : vector<4x640xf32> to vector<4x10xf32>
    %cst_77 = arith.constant 6.000000e+00 : f32
    %199 = vector.broadcast %cst_77 : f32 to vector<4x10xf32>
    %200 = arith.divf %198, %199 : vector<4x10xf32>
    %cst_78 = arith.constant 5.000000e-01 : f32
    %201 = vector.broadcast %cst_78 : f32 to vector<4x10xf32>
    %202 = arith.addf %200, %201 : vector<4x10xf32>
    %cst_79 = arith.constant 0.000000e+00 : f32
    %cst_80 = arith.constant 1.000000e+00 : f32
    %203 = vector.broadcast %cst_79 : f32 to vector<4x10xf32>
    %204 = arith.maximumf %203, %202 : vector<4x10xf32>
    %205 = vector.broadcast %cst_80 : f32 to vector<4x10xf32>
    %206 = arith.minimumf %205, %204 : vector<4x10xf32>
    %207 = vector.extract_strided_slice %170 {offsets = [0, 256], sizes = [4, 64], strides = [1, 1]} : vector<4x640xf32> to vector<4x64xf32>
    %208 = math.tanh %207 : vector<4x64xf32>
    %209 = arith.mulf %179, %208 : vector<4x64xf32>
    %210 = vector.shape_cast %206 : vector<4x10xf32> to vector<4x10x1xf32>
    %211 = vector.shape_cast %188 : vector<4x64xf32> to vector<4x1x64xf32>
    %212 = vector.broadcast %210 : vector<4x10x1xf32> to vector<4x10x64xf32>
    %213 = vector.broadcast %211 : vector<4x1x64xf32> to vector<4x10x64xf32>
    %214 = arith.mulf %212, %213 : vector<4x10x64xf32>
    %215 = vector.shape_cast %209 : vector<4x64xf32> to vector<4x1x64xf32>
    %216 = arith.mulf %214, %146 : vector<4x10x64xf32>
    %217 = arith.index_cast %c2_i32 : i32 to index
    %c0_81 = arith.constant 0 : index
    %c0_82 = arith.constant 0 : index
    %218 = vector.load %arg5[%217, %c0_81, %c0_82] : memref<8x10x64xf32, #tpu.memory_space<vmem>>, vector<1x10x64xf32>
    %219 = vector.shape_cast %218 : vector<1x10x64xf32> to vector<10x64xf32>
    %220 = vector.shape_cast %219 : vector<10x64xf32> to vector<1x10x64xf32>
    %221 = vector.broadcast %215 : vector<4x1x64xf32> to vector<4x10x64xf32>
    %222 = vector.broadcast %220 : vector<1x10x64xf32> to vector<4x10x64xf32>
    %223 = arith.mulf %221, %222 : vector<4x10x64xf32>
    %224 = arith.addf %216, %223 : vector<4x10x64xf32>
    %225 = arith.mulf %214, %155 : vector<4x10x64xf32>
    %226 = arith.index_cast %c2_i32 : i32 to index
    %c0_83 = arith.constant 0 : index
    %c0_84 = arith.constant 0 : index
    %227 = vector.load %arg6[%226, %c0_83, %c0_84] : memref<8x10x64xf32, #tpu.memory_space<vmem>>, vector<1x10x64xf32>
    %228 = vector.shape_cast %227 : vector<1x10x64xf32> to vector<10x64xf32>
    %229 = vector.shape_cast %228 : vector<10x64xf32> to vector<1x10x64xf32>
    %230 = vector.broadcast %215 : vector<4x1x64xf32> to vector<4x10x64xf32>
    %231 = vector.broadcast %229 : vector<1x10x64xf32> to vector<4x10x64xf32>
    %232 = arith.mulf %230, %231 : vector<4x10x64xf32>
    %233 = arith.addf %225, %232 : vector<4x10x64xf32>
    %234 = arith.mulf %224, %224 : vector<4x10x64xf32>
    %235 = arith.mulf %233, %233 : vector<4x10x64xf32>
    %236 = arith.addf %234, %235 : vector<4x10x64xf32>
    %237 = vector.broadcast %5 : vector<1x10x64xf32> to vector<4x10x64xf32>
    %238 = arith.mulf %236, %237 : vector<4x10x64xf32>
    %cst_85 = arith.constant dense<0.000000e+00> : vector<4x64xf32>
    %239 = vector.multi_reduction <add>, %238, %cst_85 [1] : vector<4x10x64xf32> to vector<4x64xf32>
    %240 = vector.broadcast %6 : vector<1x64xf32> to vector<4x64xf32>
    %241 = arith.addf %239, %240 : vector<4x64xf32>
    %242 = math.tanh %241 : vector<4x64xf32>
    %243 = arith.mulf %197, %242 : vector<4x64xf32>
    %c3_i32 = arith.constant 3 : i32
    %244 = arith.index_cast %c3_i32 : i32 to index
    %c0_86 = arith.constant 0 : index
    %c0_87 = arith.constant 0 : index
    %245 = vector.load %arg1[%244, %c0_86, %c0_87] : memref<8x4x640xf32, #tpu.memory_space<vmem>>, vector<1x4x640xf32>
    %246 = vector.shape_cast %245 : vector<1x4x640xf32> to vector<4x640xf32>
    %cst_88 = arith.constant dense<0.000000e+00> : vector<4x640xf32>
    %247 = tpu.matmul %243, %3, %cst_88 {dimension_numbers = #tpu.dot_dimension_numbers<[1], [0], [0], [1], [0, 0, 1, 1], [], []>} : vector<4x64xf32>, vector<64x640xf32>, vector<4x640xf32> -> vector<4x640xf32>
    %248 = arith.addf %246, %247 : vector<4x640xf32>
    %249 = vector.extract_strided_slice %248 {offsets = [0, 0], sizes = [4, 64], strides = [1, 1]} : vector<4x640xf32> to vector<4x64xf32>
    %cst_89 = arith.constant 6.000000e+00 : f32
    %250 = vector.broadcast %cst_89 : f32 to vector<4x64xf32>
    %251 = arith.divf %249, %250 : vector<4x64xf32>
    %cst_90 = arith.constant 5.000000e-01 : f32
    %252 = vector.broadcast %cst_90 : f32 to vector<4x64xf32>
    %253 = arith.addf %251, %252 : vector<4x64xf32>
    %cst_91 = arith.constant 0.000000e+00 : f32
    %cst_92 = arith.constant 1.000000e+00 : f32
    %254 = vector.broadcast %cst_91 : f32 to vector<4x64xf32>
    %255 = arith.maximumf %254, %253 : vector<4x64xf32>
    %256 = vector.broadcast %cst_92 : f32 to vector<4x64xf32>
    %257 = arith.minimumf %256, %255 : vector<4x64xf32>
    %258 = vector.extract_strided_slice %248 {offsets = [0, 128], sizes = [4, 64], strides = [1, 1]} : vector<4x640xf32> to vector<4x64xf32>
    %cst_93 = arith.constant 6.000000e+00 : f32
    %259 = vector.broadcast %cst_93 : f32 to vector<4x64xf32>
    %260 = arith.divf %258, %259 : vector<4x64xf32>
    %cst_94 = arith.constant 5.000000e-01 : f32
    %261 = vector.broadcast %cst_94 : f32 to vector<4x64xf32>
    %262 = arith.addf %260, %261 : vector<4x64xf32>
    %cst_95 = arith.constant 0.000000e+00 : f32
    %cst_96 = arith.constant 1.000000e+00 : f32
    %263 = vector.broadcast %cst_95 : f32 to vector<4x64xf32>
    %264 = arith.maximumf %263, %262 : vector<4x64xf32>
    %265 = vector.broadcast %cst_96 : f32 to vector<4x64xf32>
    %266 = arith.minimumf %265, %264 : vector<4x64xf32>
    %267 = vector.extract_strided_slice %248 {offsets = [0, 384], sizes = [4, 64], strides = [1, 1]} : vector<4x640xf32> to vector<4x64xf32>
    %cst_97 = arith.constant 6.000000e+00 : f32
    %268 = vector.broadcast %cst_97 : f32 to vector<4x64xf32>
    %269 = arith.divf %267, %268 : vector<4x64xf32>
    %cst_98 = arith.constant 5.000000e-01 : f32
    %270 = vector.broadcast %cst_98 : f32 to vector<4x64xf32>
    %271 = arith.addf %269, %270 : vector<4x64xf32>
    %cst_99 = arith.constant 0.000000e+00 : f32
    %cst_100 = arith.constant 1.000000e+00 : f32
    %272 = vector.broadcast %cst_99 : f32 to vector<4x64xf32>
    %273 = arith.maximumf %272, %271 : vector<4x64xf32>
    %274 = vector.broadcast %cst_100 : f32 to vector<4x64xf32>
    %275 = arith.minimumf %274, %273 : vector<4x64xf32>
    %276 = vector.extract_strided_slice %248 {offsets = [0, 512], sizes = [4, 10], strides = [1, 1]} : vector<4x640xf32> to vector<4x10xf32>
    %cst_101 = arith.constant 6.000000e+00 : f32
    %277 = vector.broadcast %cst_101 : f32 to vector<4x10xf32>
    %278 = arith.divf %276, %277 : vector<4x10xf32>
    %cst_102 = arith.constant 5.000000e-01 : f32
    %279 = vector.broadcast %cst_102 : f32 to vector<4x10xf32>
    %280 = arith.addf %278, %279 : vector<4x10xf32>
    %cst_103 = arith.constant 0.000000e+00 : f32
    %cst_104 = arith.constant 1.000000e+00 : f32
    %281 = vector.broadcast %cst_103 : f32 to vector<4x10xf32>
    %282 = arith.maximumf %281, %280 : vector<4x10xf32>
    %283 = vector.broadcast %cst_104 : f32 to vector<4x10xf32>
    %284 = arith.minimumf %283, %282 : vector<4x10xf32>
    %285 = vector.extract_strided_slice %248 {offsets = [0, 256], sizes = [4, 64], strides = [1, 1]} : vector<4x640xf32> to vector<4x64xf32>
    %286 = math.tanh %285 : vector<4x64xf32>
    %287 = arith.mulf %257, %286 : vector<4x64xf32>
    %288 = vector.shape_cast %284 : vector<4x10xf32> to vector<4x10x1xf32>
    %289 = vector.shape_cast %266 : vector<4x64xf32> to vector<4x1x64xf32>
    %290 = vector.broadcast %288 : vector<4x10x1xf32> to vector<4x10x64xf32>
    %291 = vector.broadcast %289 : vector<4x1x64xf32> to vector<4x10x64xf32>
    %292 = arith.mulf %290, %291 : vector<4x10x64xf32>
    %293 = vector.shape_cast %287 : vector<4x64xf32> to vector<4x1x64xf32>
    %294 = arith.mulf %292, %224 : vector<4x10x64xf32>
    %295 = arith.index_cast %c3_i32 : i32 to index
    %c0_105 = arith.constant 0 : index
    %c0_106 = arith.constant 0 : index
    %296 = vector.load %arg5[%295, %c0_105, %c0_106] : memref<8x10x64xf32, #tpu.memory_space<vmem>>, vector<1x10x64xf32>
    %297 = vector.shape_cast %296 : vector<1x10x64xf32> to vector<10x64xf32>
    %298 = vector.shape_cast %297 : vector<10x64xf32> to vector<1x10x64xf32>
    %299 = vector.broadcast %293 : vector<4x1x64xf32> to vector<4x10x64xf32>
    %300 = vector.broadcast %298 : vector<1x10x64xf32> to vector<4x10x64xf32>
    %301 = arith.mulf %299, %300 : vector<4x10x64xf32>
    %302 = arith.addf %294, %301 : vector<4x10x64xf32>
    %303 = arith.mulf %292, %233 : vector<4x10x64xf32>
    %304 = arith.index_cast %c3_i32 : i32 to index
    %c0_107 = arith.constant 0 : index
    %c0_108 = arith.constant 0 : index
    %305 = vector.load %arg6[%304, %c0_107, %c0_108] : memref<8x10x64xf32, #tpu.memory_space<vmem>>, vector<1x10x64xf32>
    %306 = vector.shape_cast %305 : vector<1x10x64xf32> to vector<10x64xf32>
    %307 = vector.shape_cast %306 : vector<10x64xf32> to vector<1x10x64xf32>
    %308 = vector.broadcast %293 : vector<4x1x64xf32> to vector<4x10x64xf32>
    %309 = vector.broadcast %307 : vector<1x10x64xf32> to vector<4x10x64xf32>
    %310 = arith.mulf %308, %309 : vector<4x10x64xf32>
    %311 = arith.addf %303, %310 : vector<4x10x64xf32>
    %312 = arith.mulf %302, %302 : vector<4x10x64xf32>
    %313 = arith.mulf %311, %311 : vector<4x10x64xf32>
    %314 = arith.addf %312, %313 : vector<4x10x64xf32>
    %315 = vector.broadcast %5 : vector<1x10x64xf32> to vector<4x10x64xf32>
    %316 = arith.mulf %314, %315 : vector<4x10x64xf32>
    %cst_109 = arith.constant dense<0.000000e+00> : vector<4x64xf32>
    %317 = vector.multi_reduction <add>, %316, %cst_109 [1] : vector<4x10x64xf32> to vector<4x64xf32>
    %318 = vector.broadcast %6 : vector<1x64xf32> to vector<4x64xf32>
    %319 = arith.addf %317, %318 : vector<4x64xf32>
    %320 = math.tanh %319 : vector<4x64xf32>
    %321 = arith.mulf %275, %320 : vector<4x64xf32>
    %c4_i32 = arith.constant 4 : i32
    %322 = arith.index_cast %c4_i32 : i32 to index
    %c0_110 = arith.constant 0 : index
    %c0_111 = arith.constant 0 : index
    %323 = vector.load %arg1[%322, %c0_110, %c0_111] : memref<8x4x640xf32, #tpu.memory_space<vmem>>, vector<1x4x640xf32>
    %324 = vector.shape_cast %323 : vector<1x4x640xf32> to vector<4x640xf32>
    %cst_112 = arith.constant dense<0.000000e+00> : vector<4x640xf32>
    %325 = tpu.matmul %321, %3, %cst_112 {dimension_numbers = #tpu.dot_dimension_numbers<[1], [0], [0], [1], [0, 0, 1, 1], [], []>} : vector<4x64xf32>, vector<64x640xf32>, vector<4x640xf32> -> vector<4x640xf32>
    %326 = arith.addf %324, %325 : vector<4x640xf32>
    %327 = vector.extract_strided_slice %326 {offsets = [0, 0], sizes = [4, 64], strides = [1, 1]} : vector<4x640xf32> to vector<4x64xf32>
    %cst_113 = arith.constant 6.000000e+00 : f32
    %328 = vector.broadcast %cst_113 : f32 to vector<4x64xf32>
    %329 = arith.divf %327, %328 : vector<4x64xf32>
    %cst_114 = arith.constant 5.000000e-01 : f32
    %330 = vector.broadcast %cst_114 : f32 to vector<4x64xf32>
    %331 = arith.addf %329, %330 : vector<4x64xf32>
    %cst_115 = arith.constant 0.000000e+00 : f32
    %cst_116 = arith.constant 1.000000e+00 : f32
    %332 = vector.broadcast %cst_115 : f32 to vector<4x64xf32>
    %333 = arith.maximumf %332, %331 : vector<4x64xf32>
    %334 = vector.broadcast %cst_116 : f32 to vector<4x64xf32>
    %335 = arith.minimumf %334, %333 : vector<4x64xf32>
    %336 = vector.extract_strided_slice %326 {offsets = [0, 128], sizes = [4, 64], strides = [1, 1]} : vector<4x640xf32> to vector<4x64xf32>
    %cst_117 = arith.constant 6.000000e+00 : f32
    %337 = vector.broadcast %cst_117 : f32 to vector<4x64xf32>
    %338 = arith.divf %336, %337 : vector<4x64xf32>
    %cst_118 = arith.constant 5.000000e-01 : f32
    %339 = vector.broadcast %cst_118 : f32 to vector<4x64xf32>
    %340 = arith.addf %338, %339 : vector<4x64xf32>
    %cst_119 = arith.constant 0.000000e+00 : f32
    %cst_120 = arith.constant 1.000000e+00 : f32
    %341 = vector.broadcast %cst_119 : f32 to vector<4x64xf32>
    %342 = arith.maximumf %341, %340 : vector<4x64xf32>
    %343 = vector.broadcast %cst_120 : f32 to vector<4x64xf32>
    %344 = arith.minimumf %343, %342 : vector<4x64xf32>
    %345 = vector.extract_strided_slice %326 {offsets = [0, 384], sizes = [4, 64], strides = [1, 1]} : vector<4x640xf32> to vector<4x64xf32>
    %cst_121 = arith.constant 6.000000e+00 : f32
    %346 = vector.broadcast %cst_121 : f32 to vector<4x64xf32>
    %347 = arith.divf %345, %346 : vector<4x64xf32>
    %cst_122 = arith.constant 5.000000e-01 : f32
    %348 = vector.broadcast %cst_122 : f32 to vector<4x64xf32>
    %349 = arith.addf %347, %348 : vector<4x64xf32>
    %cst_123 = arith.constant 0.000000e+00 : f32
    %cst_124 = arith.constant 1.000000e+00 : f32
    %350 = vector.broadcast %cst_123 : f32 to vector<4x64xf32>
    %351 = arith.maximumf %350, %349 : vector<4x64xf32>
    %352 = vector.broadcast %cst_124 : f32 to vector<4x64xf32>
    %353 = arith.minimumf %352, %351 : vector<4x64xf32>
    %354 = vector.extract_strided_slice %326 {offsets = [0, 512], sizes = [4, 10], strides = [1, 1]} : vector<4x640xf32> to vector<4x10xf32>
    %cst_125 = arith.constant 6.000000e+00 : f32
    %355 = vector.broadcast %cst_125 : f32 to vector<4x10xf32>
    %356 = arith.divf %354, %355 : vector<4x10xf32>
    %cst_126 = arith.constant 5.000000e-01 : f32
    %357 = vector.broadcast %cst_126 : f32 to vector<4x10xf32>
    %358 = arith.addf %356, %357 : vector<4x10xf32>
    %cst_127 = arith.constant 0.000000e+00 : f32
    %cst_128 = arith.constant 1.000000e+00 : f32
    %359 = vector.broadcast %cst_127 : f32 to vector<4x10xf32>
    %360 = arith.maximumf %359, %358 : vector<4x10xf32>
    %361 = vector.broadcast %cst_128 : f32 to vector<4x10xf32>
    %362 = arith.minimumf %361, %360 : vector<4x10xf32>
    %363 = vector.extract_strided_slice %326 {offsets = [0, 256], sizes = [4, 64], strides = [1, 1]} : vector<4x640xf32> to vector<4x64xf32>
    %364 = math.tanh %363 : vector<4x64xf32>
    %365 = arith.mulf %335, %364 : vector<4x64xf32>
    %366 = vector.shape_cast %362 : vector<4x10xf32> to vector<4x10x1xf32>
    %367 = vector.shape_cast %344 : vector<4x64xf32> to vector<4x1x64xf32>
    %368 = vector.broadcast %366 : vector<4x10x1xf32> to vector<4x10x64xf32>
    %369 = vector.broadcast %367 : vector<4x1x64xf32> to vector<4x10x64xf32>
    %370 = arith.mulf %368, %369 : vector<4x10x64xf32>
    %371 = vector.shape_cast %365 : vector<4x64xf32> to vector<4x1x64xf32>
    %372 = arith.mulf %370, %302 : vector<4x10x64xf32>
    %373 = arith.index_cast %c4_i32 : i32 to index
    %c0_129 = arith.constant 0 : index
    %c0_130 = arith.constant 0 : index
    %374 = vector.load %arg5[%373, %c0_129, %c0_130] : memref<8x10x64xf32, #tpu.memory_space<vmem>>, vector<1x10x64xf32>
    %375 = vector.shape_cast %374 : vector<1x10x64xf32> to vector<10x64xf32>
    %376 = vector.shape_cast %375 : vector<10x64xf32> to vector<1x10x64xf32>
    %377 = vector.broadcast %371 : vector<4x1x64xf32> to vector<4x10x64xf32>
    %378 = vector.broadcast %376 : vector<1x10x64xf32> to vector<4x10x64xf32>
    %379 = arith.mulf %377, %378 : vector<4x10x64xf32>
    %380 = arith.addf %372, %379 : vector<4x10x64xf32>
    %381 = arith.mulf %370, %311 : vector<4x10x64xf32>
    %382 = arith.index_cast %c4_i32 : i32 to index
    %c0_131 = arith.constant 0 : index
    %c0_132 = arith.constant 0 : index
    %383 = vector.load %arg6[%382, %c0_131, %c0_132] : memref<8x10x64xf32, #tpu.memory_space<vmem>>, vector<1x10x64xf32>
    %384 = vector.shape_cast %383 : vector<1x10x64xf32> to vector<10x64xf32>
    %385 = vector.shape_cast %384 : vector<10x64xf32> to vector<1x10x64xf32>
    %386 = vector.broadcast %371 : vector<4x1x64xf32> to vector<4x10x64xf32>
    %387 = vector.broadcast %385 : vector<1x10x64xf32> to vector<4x10x64xf32>
    %388 = arith.mulf %386, %387 : vector<4x10x64xf32>
    %389 = arith.addf %381, %388 : vector<4x10x64xf32>
    %390 = arith.mulf %380, %380 : vector<4x10x64xf32>
    %391 = arith.mulf %389, %389 : vector<4x10x64xf32>
    %392 = arith.addf %390, %391 : vector<4x10x64xf32>
    %393 = vector.broadcast %5 : vector<1x10x64xf32> to vector<4x10x64xf32>
    %394 = arith.mulf %392, %393 : vector<4x10x64xf32>
    %cst_133 = arith.constant dense<0.000000e+00> : vector<4x64xf32>
    %395 = vector.multi_reduction <add>, %394, %cst_133 [1] : vector<4x10x64xf32> to vector<4x64xf32>
    %396 = vector.broadcast %6 : vector<1x64xf32> to vector<4x64xf32>
    %397 = arith.addf %395, %396 : vector<4x64xf32>
    %398 = math.tanh %397 : vector<4x64xf32>
    %399 = arith.mulf %353, %398 : vector<4x64xf32>
    %c5_i32 = arith.constant 5 : i32
    %400 = arith.index_cast %c5_i32 : i32 to index
    %c0_134 = arith.constant 0 : index
    %c0_135 = arith.constant 0 : index
    %401 = vector.load %arg1[%400, %c0_134, %c0_135] : memref<8x4x640xf32, #tpu.memory_space<vmem>>, vector<1x4x640xf32>
    %402 = vector.shape_cast %401 : vector<1x4x640xf32> to vector<4x640xf32>
    %cst_136 = arith.constant dense<0.000000e+00> : vector<4x640xf32>
    %403 = tpu.matmul %399, %3, %cst_136 {dimension_numbers = #tpu.dot_dimension_numbers<[1], [0], [0], [1], [0, 0, 1, 1], [], []>} : vector<4x64xf32>, vector<64x640xf32>, vector<4x640xf32> -> vector<4x640xf32>
    %404 = arith.addf %402, %403 : vector<4x640xf32>
    %405 = vector.extract_strided_slice %404 {offsets = [0, 0], sizes = [4, 64], strides = [1, 1]} : vector<4x640xf32> to vector<4x64xf32>
    %cst_137 = arith.constant 6.000000e+00 : f32
    %406 = vector.broadcast %cst_137 : f32 to vector<4x64xf32>
    %407 = arith.divf %405, %406 : vector<4x64xf32>
    %cst_138 = arith.constant 5.000000e-01 : f32
    %408 = vector.broadcast %cst_138 : f32 to vector<4x64xf32>
    %409 = arith.addf %407, %408 : vector<4x64xf32>
    %cst_139 = arith.constant 0.000000e+00 : f32
    %cst_140 = arith.constant 1.000000e+00 : f32
    %410 = vector.broadcast %cst_139 : f32 to vector<4x64xf32>
    %411 = arith.maximumf %410, %409 : vector<4x64xf32>
    %412 = vector.broadcast %cst_140 : f32 to vector<4x64xf32>
    %413 = arith.minimumf %412, %411 : vector<4x64xf32>
    %414 = vector.extract_strided_slice %404 {offsets = [0, 128], sizes = [4, 64], strides = [1, 1]} : vector<4x640xf32> to vector<4x64xf32>
    %cst_141 = arith.constant 6.000000e+00 : f32
    %415 = vector.broadcast %cst_141 : f32 to vector<4x64xf32>
    %416 = arith.divf %414, %415 : vector<4x64xf32>
    %cst_142 = arith.constant 5.000000e-01 : f32
    %417 = vector.broadcast %cst_142 : f32 to vector<4x64xf32>
    %418 = arith.addf %416, %417 : vector<4x64xf32>
    %cst_143 = arith.constant 0.000000e+00 : f32
    %cst_144 = arith.constant 1.000000e+00 : f32
    %419 = vector.broadcast %cst_143 : f32 to vector<4x64xf32>
    %420 = arith.maximumf %419, %418 : vector<4x64xf32>
    %421 = vector.broadcast %cst_144 : f32 to vector<4x64xf32>
    %422 = arith.minimumf %421, %420 : vector<4x64xf32>
    %423 = vector.extract_strided_slice %404 {offsets = [0, 384], sizes = [4, 64], strides = [1, 1]} : vector<4x640xf32> to vector<4x64xf32>
    %cst_145 = arith.constant 6.000000e+00 : f32
    %424 = vector.broadcast %cst_145 : f32 to vector<4x64xf32>
    %425 = arith.divf %423, %424 : vector<4x64xf32>
    %cst_146 = arith.constant 5.000000e-01 : f32
    %426 = vector.broadcast %cst_146 : f32 to vector<4x64xf32>
    %427 = arith.addf %425, %426 : vector<4x64xf32>
    %cst_147 = arith.constant 0.000000e+00 : f32
    %cst_148 = arith.constant 1.000000e+00 : f32
    %428 = vector.broadcast %cst_147 : f32 to vector<4x64xf32>
    %429 = arith.maximumf %428, %427 : vector<4x64xf32>
    %430 = vector.broadcast %cst_148 : f32 to vector<4x64xf32>
    %431 = arith.minimumf %430, %429 : vector<4x64xf32>
    %432 = vector.extract_strided_slice %404 {offsets = [0, 512], sizes = [4, 10], strides = [1, 1]} : vector<4x640xf32> to vector<4x10xf32>
    %cst_149 = arith.constant 6.000000e+00 : f32
    %433 = vector.broadcast %cst_149 : f32 to vector<4x10xf32>
    %434 = arith.divf %432, %433 : vector<4x10xf32>
    %cst_150 = arith.constant 5.000000e-01 : f32
    %435 = vector.broadcast %cst_150 : f32 to vector<4x10xf32>
    %436 = arith.addf %434, %435 : vector<4x10xf32>
    %cst_151 = arith.constant 0.000000e+00 : f32
    %cst_152 = arith.constant 1.000000e+00 : f32
    %437 = vector.broadcast %cst_151 : f32 to vector<4x10xf32>
    %438 = arith.maximumf %437, %436 : vector<4x10xf32>
    %439 = vector.broadcast %cst_152 : f32 to vector<4x10xf32>
    %440 = arith.minimumf %439, %438 : vector<4x10xf32>
    %441 = vector.extract_strided_slice %404 {offsets = [0, 256], sizes = [4, 64], strides = [1, 1]} : vector<4x640xf32> to vector<4x64xf32>
    %442 = math.tanh %441 : vector<4x64xf32>
    %443 = arith.mulf %413, %442 : vector<4x64xf32>
    %444 = vector.shape_cast %440 : vector<4x10xf32> to vector<4x10x1xf32>
    %445 = vector.shape_cast %422 : vector<4x64xf32> to vector<4x1x64xf32>
    %446 = vector.broadcast %444 : vector<4x10x1xf32> to vector<4x10x64xf32>
    %447 = vector.broadcast %445 : vector<4x1x64xf32> to vector<4x10x64xf32>
    %448 = arith.mulf %446, %447 : vector<4x10x64xf32>
    %449 = vector.shape_cast %443 : vector<4x64xf32> to vector<4x1x64xf32>
    %450 = arith.mulf %448, %380 : vector<4x10x64xf32>
    %451 = arith.index_cast %c5_i32 : i32 to index
    %c0_153 = arith.constant 0 : index
    %c0_154 = arith.constant 0 : index
    %452 = vector.load %arg5[%451, %c0_153, %c0_154] : memref<8x10x64xf32, #tpu.memory_space<vmem>>, vector<1x10x64xf32>
    %453 = vector.shape_cast %452 : vector<1x10x64xf32> to vector<10x64xf32>
    %454 = vector.shape_cast %453 : vector<10x64xf32> to vector<1x10x64xf32>
    %455 = vector.broadcast %449 : vector<4x1x64xf32> to vector<4x10x64xf32>
    %456 = vector.broadcast %454 : vector<1x10x64xf32> to vector<4x10x64xf32>
    %457 = arith.mulf %455, %456 : vector<4x10x64xf32>
    %458 = arith.addf %450, %457 : vector<4x10x64xf32>
    %459 = arith.mulf %448, %389 : vector<4x10x64xf32>
    %460 = arith.index_cast %c5_i32 : i32 to index
    %c0_155 = arith.constant 0 : index
    %c0_156 = arith.constant 0 : index
    %461 = vector.load %arg6[%460, %c0_155, %c0_156] : memref<8x10x64xf32, #tpu.memory_space<vmem>>, vector<1x10x64xf32>
    %462 = vector.shape_cast %461 : vector<1x10x64xf32> to vector<10x64xf32>
    %463 = vector.shape_cast %462 : vector<10x64xf32> to vector<1x10x64xf32>
    %464 = vector.broadcast %449 : vector<4x1x64xf32> to vector<4x10x64xf32>
    %465 = vector.broadcast %463 : vector<1x10x64xf32> to vector<4x10x64xf32>
    %466 = arith.mulf %464, %465 : vector<4x10x64xf32>
    %467 = arith.addf %459, %466 : vector<4x10x64xf32>
    %468 = arith.mulf %458, %458 : vector<4x10x64xf32>
    %469 = arith.mulf %467, %467 : vector<4x10x64xf32>
    %470 = arith.addf %468, %469 : vector<4x10x64xf32>
    %471 = vector.broadcast %5 : vector<1x10x64xf32> to vector<4x10x64xf32>
    %472 = arith.mulf %470, %471 : vector<4x10x64xf32>
    %cst_157 = arith.constant dense<0.000000e+00> : vector<4x64xf32>
    %473 = vector.multi_reduction <add>, %472, %cst_157 [1] : vector<4x10x64xf32> to vector<4x64xf32>
    %474 = vector.broadcast %6 : vector<1x64xf32> to vector<4x64xf32>
    %475 = arith.addf %473, %474 : vector<4x64xf32>
    %476 = math.tanh %475 : vector<4x64xf32>
    %477 = arith.mulf %431, %476 : vector<4x64xf32>
    %c6_i32 = arith.constant 6 : i32
    %478 = arith.index_cast %c6_i32 : i32 to index
    %c0_158 = arith.constant 0 : index
    %c0_159 = arith.constant 0 : index
    %479 = vector.load %arg1[%478, %c0_158, %c0_159] : memref<8x4x640xf32, #tpu.memory_space<vmem>>, vector<1x4x640xf32>
    %480 = vector.shape_cast %479 : vector<1x4x640xf32> to vector<4x640xf32>
    %cst_160 = arith.constant dense<0.000000e+00> : vector<4x640xf32>
    %481 = tpu.matmul %477, %3, %cst_160 {dimension_numbers = #tpu.dot_dimension_numbers<[1], [0], [0], [1], [0, 0, 1, 1], [], []>} : vector<4x64xf32>, vector<64x640xf32>, vector<4x640xf32> -> vector<4x640xf32>
    %482 = arith.addf %480, %481 : vector<4x640xf32>
    %483 = vector.extract_strided_slice %482 {offsets = [0, 0], sizes = [4, 64], strides = [1, 1]} : vector<4x640xf32> to vector<4x64xf32>
    %cst_161 = arith.constant 6.000000e+00 : f32
    %484 = vector.broadcast %cst_161 : f32 to vector<4x64xf32>
    %485 = arith.divf %483, %484 : vector<4x64xf32>
    %cst_162 = arith.constant 5.000000e-01 : f32
    %486 = vector.broadcast %cst_162 : f32 to vector<4x64xf32>
    %487 = arith.addf %485, %486 : vector<4x64xf32>
    %cst_163 = arith.constant 0.000000e+00 : f32
    %cst_164 = arith.constant 1.000000e+00 : f32
    %488 = vector.broadcast %cst_163 : f32 to vector<4x64xf32>
    %489 = arith.maximumf %488, %487 : vector<4x64xf32>
    %490 = vector.broadcast %cst_164 : f32 to vector<4x64xf32>
    %491 = arith.minimumf %490, %489 : vector<4x64xf32>
    %492 = vector.extract_strided_slice %482 {offsets = [0, 128], sizes = [4, 64], strides = [1, 1]} : vector<4x640xf32> to vector<4x64xf32>
    %cst_165 = arith.constant 6.000000e+00 : f32
    %493 = vector.broadcast %cst_165 : f32 to vector<4x64xf32>
    %494 = arith.divf %492, %493 : vector<4x64xf32>
    %cst_166 = arith.constant 5.000000e-01 : f32
    %495 = vector.broadcast %cst_166 : f32 to vector<4x64xf32>
    %496 = arith.addf %494, %495 : vector<4x64xf32>
    %cst_167 = arith.constant 0.000000e+00 : f32
    %cst_168 = arith.constant 1.000000e+00 : f32
    %497 = vector.broadcast %cst_167 : f32 to vector<4x64xf32>
    %498 = arith.maximumf %497, %496 : vector<4x64xf32>
    %499 = vector.broadcast %cst_168 : f32 to vector<4x64xf32>
    %500 = arith.minimumf %499, %498 : vector<4x64xf32>
    %501 = vector.extract_strided_slice %482 {offsets = [0, 384], sizes = [4, 64], strides = [1, 1]} : vector<4x640xf32> to vector<4x64xf32>
    %cst_169 = arith.constant 6.000000e+00 : f32
    %502 = vector.broadcast %cst_169 : f32 to vector<4x64xf32>
    %503 = arith.divf %501, %502 : vector<4x64xf32>
    %cst_170 = arith.constant 5.000000e-01 : f32
    %504 = vector.broadcast %cst_170 : f32 to vector<4x64xf32>
    %505 = arith.addf %503, %504 : vector<4x64xf32>
    %cst_171 = arith.constant 0.000000e+00 : f32
    %cst_172 = arith.constant 1.000000e+00 : f32
    %506 = vector.broadcast %cst_171 : f32 to vector<4x64xf32>
    %507 = arith.maximumf %506, %505 : vector<4x64xf32>
    %508 = vector.broadcast %cst_172 : f32 to vector<4x64xf32>
    %509 = arith.minimumf %508, %507 : vector<4x64xf32>
    %510 = vector.extract_strided_slice %482 {offsets = [0, 512], sizes = [4, 10], strides = [1, 1]} : vector<4x640xf32> to vector<4x10xf32>
    %cst_173 = arith.constant 6.000000e+00 : f32
    %511 = vector.broadcast %cst_173 : f32 to vector<4x10xf32>
    %512 = arith.divf %510, %511 : vector<4x10xf32>
    %cst_174 = arith.constant 5.000000e-01 : f32
    %513 = vector.broadcast %cst_174 : f32 to vector<4x10xf32>
    %514 = arith.addf %512, %513 : vector<4x10xf32>
    %cst_175 = arith.constant 0.000000e+00 : f32
    %cst_176 = arith.constant 1.000000e+00 : f32
    %515 = vector.broadcast %cst_175 : f32 to vector<4x10xf32>
    %516 = arith.maximumf %515, %514 : vector<4x10xf32>
    %517 = vector.broadcast %cst_176 : f32 to vector<4x10xf32>
    %518 = arith.minimumf %517, %516 : vector<4x10xf32>
    %519 = vector.extract_strided_slice %482 {offsets = [0, 256], sizes = [4, 64], strides = [1, 1]} : vector<4x640xf32> to vector<4x64xf32>
    %520 = math.tanh %519 : vector<4x64xf32>
    %521 = arith.mulf %491, %520 : vector<4x64xf32>
    %522 = vector.shape_cast %518 : vector<4x10xf32> to vector<4x10x1xf32>
    %523 = vector.shape_cast %500 : vector<4x64xf32> to vector<4x1x64xf32>
    %524 = vector.broadcast %522 : vector<4x10x1xf32> to vector<4x10x64xf32>
    %525 = vector.broadcast %523 : vector<4x1x64xf32> to vector<4x10x64xf32>
    %526 = arith.mulf %524, %525 : vector<4x10x64xf32>
    %527 = vector.shape_cast %521 : vector<4x64xf32> to vector<4x1x64xf32>
    %528 = arith.mulf %526, %458 : vector<4x10x64xf32>
    %529 = arith.index_cast %c6_i32 : i32 to index
    %c0_177 = arith.constant 0 : index
    %c0_178 = arith.constant 0 : index
    %530 = vector.load %arg5[%529, %c0_177, %c0_178] : memref<8x10x64xf32, #tpu.memory_space<vmem>>, vector<1x10x64xf32>
    %531 = vector.shape_cast %530 : vector<1x10x64xf32> to vector<10x64xf32>
    %532 = vector.shape_cast %531 : vector<10x64xf32> to vector<1x10x64xf32>
    %533 = vector.broadcast %527 : vector<4x1x64xf32> to vector<4x10x64xf32>
    %534 = vector.broadcast %532 : vector<1x10x64xf32> to vector<4x10x64xf32>
    %535 = arith.mulf %533, %534 : vector<4x10x64xf32>
    %536 = arith.addf %528, %535 : vector<4x10x64xf32>
    %537 = arith.mulf %526, %467 : vector<4x10x64xf32>
    %538 = arith.index_cast %c6_i32 : i32 to index
    %c0_179 = arith.constant 0 : index
    %c0_180 = arith.constant 0 : index
    %539 = vector.load %arg6[%538, %c0_179, %c0_180] : memref<8x10x64xf32, #tpu.memory_space<vmem>>, vector<1x10x64xf32>
    %540 = vector.shape_cast %539 : vector<1x10x64xf32> to vector<10x64xf32>
    %541 = vector.shape_cast %540 : vector<10x64xf32> to vector<1x10x64xf32>
    %542 = vector.broadcast %527 : vector<4x1x64xf32> to vector<4x10x64xf32>
    %543 = vector.broadcast %541 : vector<1x10x64xf32> to vector<4x10x64xf32>
    %544 = arith.mulf %542, %543 : vector<4x10x64xf32>
    %545 = arith.addf %537, %544 : vector<4x10x64xf32>
    %546 = arith.mulf %536, %536 : vector<4x10x64xf32>
    %547 = arith.mulf %545, %545 : vector<4x10x64xf32>
    %548 = arith.addf %546, %547 : vector<4x10x64xf32>
    %549 = vector.broadcast %5 : vector<1x10x64xf32> to vector<4x10x64xf32>
    %550 = arith.mulf %548, %549 : vector<4x10x64xf32>
    %cst_181 = arith.constant dense<0.000000e+00> : vector<4x64xf32>
    %551 = vector.multi_reduction <add>, %550, %cst_181 [1] : vector<4x10x64xf32> to vector<4x64xf32>
    %552 = vector.broadcast %6 : vector<1x64xf32> to vector<4x64xf32>
    %553 = arith.addf %551, %552 : vector<4x64xf32>
    %554 = math.tanh %553 : vector<4x64xf32>
    %555 = arith.mulf %509, %554 : vector<4x64xf32>
    %c7_i32 = arith.constant 7 : i32
    %556 = arith.index_cast %c7_i32 : i32 to index
    %c0_182 = arith.constant 0 : index
    %c0_183 = arith.constant 0 : index
    %557 = vector.load %arg1[%556, %c0_182, %c0_183] : memref<8x4x640xf32, #tpu.memory_space<vmem>>, vector<1x4x640xf32>
    %558 = vector.shape_cast %557 : vector<1x4x640xf32> to vector<4x640xf32>
    %cst_184 = arith.constant dense<0.000000e+00> : vector<4x640xf32>
    %559 = tpu.matmul %555, %3, %cst_184 {dimension_numbers = #tpu.dot_dimension_numbers<[1], [0], [0], [1], [0, 0, 1, 1], [], []>} : vector<4x64xf32>, vector<64x640xf32>, vector<4x640xf32> -> vector<4x640xf32>
    %560 = arith.addf %558, %559 : vector<4x640xf32>
    %561 = vector.extract_strided_slice %560 {offsets = [0, 0], sizes = [4, 64], strides = [1, 1]} : vector<4x640xf32> to vector<4x64xf32>
    %cst_185 = arith.constant 6.000000e+00 : f32
    %562 = vector.broadcast %cst_185 : f32 to vector<4x64xf32>
    %563 = arith.divf %561, %562 : vector<4x64xf32>
    %cst_186 = arith.constant 5.000000e-01 : f32
    %564 = vector.broadcast %cst_186 : f32 to vector<4x64xf32>
    %565 = arith.addf %563, %564 : vector<4x64xf32>
    %cst_187 = arith.constant 0.000000e+00 : f32
    %cst_188 = arith.constant 1.000000e+00 : f32
    %566 = vector.broadcast %cst_187 : f32 to vector<4x64xf32>
    %567 = arith.maximumf %566, %565 : vector<4x64xf32>
    %568 = vector.broadcast %cst_188 : f32 to vector<4x64xf32>
    %569 = arith.minimumf %568, %567 : vector<4x64xf32>
    %570 = vector.extract_strided_slice %560 {offsets = [0, 128], sizes = [4, 64], strides = [1, 1]} : vector<4x640xf32> to vector<4x64xf32>
    %cst_189 = arith.constant 6.000000e+00 : f32
    %571 = vector.broadcast %cst_189 : f32 to vector<4x64xf32>
    %572 = arith.divf %570, %571 : vector<4x64xf32>
    %cst_190 = arith.constant 5.000000e-01 : f32
    %573 = vector.broadcast %cst_190 : f32 to vector<4x64xf32>
    %574 = arith.addf %572, %573 : vector<4x64xf32>
    %cst_191 = arith.constant 0.000000e+00 : f32
    %cst_192 = arith.constant 1.000000e+00 : f32
    %575 = vector.broadcast %cst_191 : f32 to vector<4x64xf32>
    %576 = arith.maximumf %575, %574 : vector<4x64xf32>
    %577 = vector.broadcast %cst_192 : f32 to vector<4x64xf32>
    %578 = arith.minimumf %577, %576 : vector<4x64xf32>
    %579 = vector.extract_strided_slice %560 {offsets = [0, 384], sizes = [4, 64], strides = [1, 1]} : vector<4x640xf32> to vector<4x64xf32>
    %cst_193 = arith.constant 6.000000e+00 : f32
    %580 = vector.broadcast %cst_193 : f32 to vector<4x64xf32>
    %581 = arith.divf %579, %580 : vector<4x64xf32>
    %cst_194 = arith.constant 5.000000e-01 : f32
    %582 = vector.broadcast %cst_194 : f32 to vector<4x64xf32>
    %583 = arith.addf %581, %582 : vector<4x64xf32>
    %cst_195 = arith.constant 0.000000e+00 : f32
    %cst_196 = arith.constant 1.000000e+00 : f32
    %584 = vector.broadcast %cst_195 : f32 to vector<4x64xf32>
    %585 = arith.maximumf %584, %583 : vector<4x64xf32>
    %586 = vector.broadcast %cst_196 : f32 to vector<4x64xf32>
    %587 = arith.minimumf %586, %585 : vector<4x64xf32>
    %588 = vector.extract_strided_slice %560 {offsets = [0, 512], sizes = [4, 10], strides = [1, 1]} : vector<4x640xf32> to vector<4x10xf32>
    %cst_197 = arith.constant 6.000000e+00 : f32
    %589 = vector.broadcast %cst_197 : f32 to vector<4x10xf32>
    %590 = arith.divf %588, %589 : vector<4x10xf32>
    %cst_198 = arith.constant 5.000000e-01 : f32
    %591 = vector.broadcast %cst_198 : f32 to vector<4x10xf32>
    %592 = arith.addf %590, %591 : vector<4x10xf32>
    %cst_199 = arith.constant 0.000000e+00 : f32
    %cst_200 = arith.constant 1.000000e+00 : f32
    %593 = vector.broadcast %cst_199 : f32 to vector<4x10xf32>
    %594 = arith.maximumf %593, %592 : vector<4x10xf32>
    %595 = vector.broadcast %cst_200 : f32 to vector<4x10xf32>
    %596 = arith.minimumf %595, %594 : vector<4x10xf32>
    %597 = vector.extract_strided_slice %560 {offsets = [0, 256], sizes = [4, 64], strides = [1, 1]} : vector<4x640xf32> to vector<4x64xf32>
    %598 = math.tanh %597 : vector<4x64xf32>
    %599 = arith.mulf %569, %598 : vector<4x64xf32>
    %600 = vector.shape_cast %596 : vector<4x10xf32> to vector<4x10x1xf32>
    %601 = vector.shape_cast %578 : vector<4x64xf32> to vector<4x1x64xf32>
    %602 = vector.broadcast %600 : vector<4x10x1xf32> to vector<4x10x64xf32>
    %603 = vector.broadcast %601 : vector<4x1x64xf32> to vector<4x10x64xf32>
    %604 = arith.mulf %602, %603 : vector<4x10x64xf32>
    %605 = vector.shape_cast %599 : vector<4x64xf32> to vector<4x1x64xf32>
    %606 = arith.mulf %604, %536 : vector<4x10x64xf32>
    %607 = arith.index_cast %c7_i32 : i32 to index
    %c0_201 = arith.constant 0 : index
    %c0_202 = arith.constant 0 : index
    %608 = vector.load %arg5[%607, %c0_201, %c0_202] : memref<8x10x64xf32, #tpu.memory_space<vmem>>, vector<1x10x64xf32>
    %609 = vector.shape_cast %608 : vector<1x10x64xf32> to vector<10x64xf32>
    %610 = vector.shape_cast %609 : vector<10x64xf32> to vector<1x10x64xf32>
    %611 = vector.broadcast %605 : vector<4x1x64xf32> to vector<4x10x64xf32>
    %612 = vector.broadcast %610 : vector<1x10x64xf32> to vector<4x10x64xf32>
    %613 = arith.mulf %611, %612 : vector<4x10x64xf32>
    %614 = arith.addf %606, %613 : vector<4x10x64xf32>
    %615 = arith.mulf %604, %545 : vector<4x10x64xf32>
    %616 = arith.index_cast %c7_i32 : i32 to index
    %c0_203 = arith.constant 0 : index
    %c0_204 = arith.constant 0 : index
    %617 = vector.load %arg6[%616, %c0_203, %c0_204] : memref<8x10x64xf32, #tpu.memory_space<vmem>>, vector<1x10x64xf32>
    %618 = vector.shape_cast %617 : vector<1x10x64xf32> to vector<10x64xf32>
    %619 = vector.shape_cast %618 : vector<10x64xf32> to vector<1x10x64xf32>
    %620 = vector.broadcast %605 : vector<4x1x64xf32> to vector<4x10x64xf32>
    %621 = vector.broadcast %619 : vector<1x10x64xf32> to vector<4x10x64xf32>
    %622 = arith.mulf %620, %621 : vector<4x10x64xf32>
    %623 = arith.addf %615, %622 : vector<4x10x64xf32>
    %624 = arith.mulf %614, %614 : vector<4x10x64xf32>
    %625 = arith.mulf %623, %623 : vector<4x10x64xf32>
    %626 = arith.addf %624, %625 : vector<4x10x64xf32>
    %627 = vector.broadcast %5 : vector<1x10x64xf32> to vector<4x10x64xf32>
    %628 = arith.mulf %626, %627 : vector<4x10x64xf32>
    %cst_205 = arith.constant dense<0.000000e+00> : vector<4x64xf32>
    %629 = vector.multi_reduction <add>, %628, %cst_205 [1] : vector<4x10x64xf32> to vector<4x64xf32>
    %630 = vector.broadcast %6 : vector<1x64xf32> to vector<4x64xf32>
    %631 = arith.addf %629, %630 : vector<4x64xf32>
    %632 = math.tanh %631 : vector<4x64xf32>
    %633 = arith.mulf %587, %632 : vector<4x64xf32>
    %c8_i32 = arith.constant 8 : i32
    %c0_206 = arith.constant 0 : index
    %c0_207 = arith.constant 0 : index
    %634 = vector.load %arg10[%c0_206, %c0_207] : memref<4x64xf32, #tpu.memory_space<vmem>>, vector<4x64xf32>
    tpu.vector_store %arg10[%c0_206, %c0_207], %633 {strides = array<i32>} : memref<4x64xf32, #tpu.memory_space<vmem>>, vector<4x64xf32>,
    %c0_208 = arith.constant 0 : index
    %c0_209 = arith.constant 0 : index
    %c0_210 = arith.constant 0 : index
    %635 = vector.load %arg11[%c0_208, %c0_209, %c0_210] : memref<4x10x64xf32, #tpu.memory_space<vmem>>, vector<4x10x64xf32>
    tpu.vector_store %arg11[%c0_208, %c0_209, %c0_210], %614 {strides = array<i32>} : memref<4x10x64xf32, #tpu.memory_space<vmem>>, vector<4x10x64xf32>,
    %c0_211 = arith.constant 0 : index
    %c0_212 = arith.constant 0 : index
    %c0_213 = arith.constant 0 : index
    %636 = vector.load %arg12[%c0_211, %c0_212, %c0_213] : memref<4x10x64xf32, #tpu.memory_space<vmem>>, vector<4x10x64xf32>
    tpu.vector_store %arg12[%c0_211, %c0_212, %c0_213], %623 {strides = array<i32>} : memref<4x10x64xf32, #tpu.memory_space<vmem>>, vector<4x10x64xf32>,
    %c0_i32_214 = arith.constant 0 : i32
    %637 = arith.cmpi eq, %arg0, %c0_i32_214 : i32
    %638 = arith.extui %637 : i1 to i32
    %c0_i32_215 = arith.constant 0 : i32
    %639 = arith.cmpi ne, %638, %c0_i32_215 : i32
    scf.if %639 {
      %c0_216 = arith.constant 0 : index
      %c0_217 = arith.constant 0 : index
      %640 = vector.load %arg7[%c0_216, %c0_217] : memref<64x1xf32, #tpu.memory_space<vmem>>, vector<64x1xf32>
      %cst_218 = arith.constant dense<0.000000e+00> : vector<4x1xf32>
      %641 = tpu.matmul %633, %640, %cst_218 {dimension_numbers = #tpu.dot_dimension_numbers<[1], [0], [0], [1], [0, 0, 1, 1], [], []>} : vector<4x64xf32>, vector<64x1xf32>, vector<4x1xf32> -> vector<4x1xf32>
      %c0_219 = arith.constant 0 : index
      %c0_220 = arith.constant 0 : index
      %642 = vector.load %arg8[%c0_219, %c0_220] : memref<1x1xf32, #tpu.memory_space<vmem>>, vector<1x1xf32>
      %643 = vector.broadcast %642 : vector<1x1xf32> to vector<4x1xf32>
      %644 = arith.addf %641, %643 : vector<4x1xf32>
      %cst_221 = arith.constant dense<0xFF800000> : vector<1xf32>
      %645 = vector.multi_reduction <maximumf>, %644, %cst_221 [0] : vector<4x1xf32> to vector<1xf32>
      %646 = vector.shape_cast %645 : vector<1xf32> to vector<1x1xf32>
      %647 = vector.broadcast %646 : vector<1x1xf32> to vector<4x1xf32>
      %648 = arith.subf %644, %647 : vector<4x1xf32>
      %649 = math.exp %648 : vector<4x1xf32>
      %cst_222 = arith.constant dense<0.000000e+00> : vector<1xf32>
      %650 = vector.multi_reduction <add>, %649, %cst_222 [0] : vector<4x1xf32> to vector<1xf32>
      %651 = vector.shape_cast %650 : vector<1xf32> to vector<1x1xf32>
      %652 = vector.broadcast %651 : vector<1x1xf32> to vector<4x1xf32>
      %653 = arith.divf %649, %652 : vector<4x1xf32>
      %c0_223 = arith.constant 0 : index
      %c0_224 = arith.constant 0 : index
      %654 = vector.load %arg9[%c0_223, %c0_224] : memref<4x1xf32, #tpu.memory_space<vmem>>, vector<4x1xf32>
      tpu.vector_store %arg9[%c0_223, %c0_224], %653 {strides = array<i32>} : memref<4x1xf32, #tpu.memory_space<vmem>>, vector<4x1xf32>,
    } else {
    }
    return
  }
  func.func @transform_0(%arg0: i32) -> (i32, i32, i32) {
    %c0_i32 = arith.constant 0 : i32
    %c0_i32_0 = arith.constant 0 : i32
    %c0_i32_1 = arith.constant 0 : i32
    return %arg0, %c0_i32, %c0_i32_0 : i32, i32, i32
  }
  func.func @transform_1(%arg0: i32) -> (i32, i32) {
    %c0_i32 = arith.constant 0 : i32
    %c0_i32_0 = arith.constant 0 : i32
    %c0_i32_1 = arith.constant 0 : i32
    return %c0_i32, %c0_i32_0 : i32, i32
  }
  func.func @transform_2(%arg0: i32) -> (i32, i32) {
    %c0_i32 = arith.constant 0 : i32
    %c0_i32_0 = arith.constant 0 : i32
    %c0_i32_1 = arith.constant 0 : i32
    return %c0_i32, %c0_i32_0 : i32, i32
  }
  func.func @transform_3(%arg0: i32) -> (i32, i32) {
    %c0_i32 = arith.constant 0 : i32
    %c0_i32_0 = arith.constant 0 : i32
    %c0_i32_1 = arith.constant 0 : i32
    return %c0_i32, %c0_i32_0 : i32, i32
  }
  func.func @transform_4(%arg0: i32) -> (i32, i32, i32) {
    %c0_i32 = arith.constant 0 : i32
    %c0_i32_0 = arith.constant 0 : i32
    %c0_i32_1 = arith.constant 0 : i32
    return %arg0, %c0_i32, %c0_i32_0 : i32, i32, i32
  }
  func.func @transform_5(%arg0: i32) -> (i32, i32, i32) {
    %c0_i32 = arith.constant 0 : i32
    %c0_i32_0 = arith.constant 0 : i32
    %c0_i32_1 = arith.constant 0 : i32
    return %arg0, %c0_i32, %c0_i32_0 : i32, i32, i32
  }
  func.func @transform_6(%arg0: i32) -> (i32, i32) {
    %c0_i32 = arith.constant 0 : i32
    %c0_i32_0 = arith.constant 0 : i32
    %c0_i32_1 = arith.constant 0 : i32
    return %c0_i32, %c0_i32_0 : i32, i32
  }
  func.func @transform_7(%arg0: i32) -> (i32, i32) {
    %c0_i32 = arith.constant 0 : i32
    %c0_i32_0 = arith.constant 0 : i32
    %c0_i32_1 = arith.constant 0 : i32
    return %c0_i32, %c0_i32_0 : i32, i32
  }
  func.func @transform_8(%arg0: i32) -> (i32, i32) {
    %c0_i32 = arith.constant 0 : i32
    %c0_i32_0 = arith.constant 0 : i32
    %c0_i32_1 = arith.constant 0 : i32
    return %c0_i32, %c0_i32_0 : i32, i32
  }
}

</mosaic_0001>

<bundles_post_ra>
// kernel: tpu_custom_call.1
= control target key start
LH: loop header
LB: loop body
LE: loop exit
PB: predicated region body
PF: predicated region fallthrough
CT: control target
= control target key end

     0   :  { %s7326_s0 = inlined_call_operand.vmem [shape: f32[8,4,640], index: 0, kind: input, shape index: {}]   ;;  %s7327_s1 = inlined_call_operand.vmem [shape: f32[64,640], index: 1, kind: input, shape index: {}]   ;;  %s7328_s2 = inlined_call_operand.hbm [shape: f32[10,64], index: 2, kind: input, shape index: {}]   ;;  %s7329_s3 = inlined_call_operand.vmem [shape: f32[1,64], index: 3, kind: input, shape index: {}]   ;;  %s7330_s4 = inlined_call_operand.vmem [shape: f32[8,10,64], index: 4, kind: input, shape index: {}]   ;;  %s7331_s5 = inlined_call_operand.vmem [shape: f32[8,10,64], index: 5, kind: input, shape index: {}]   ;;  %s7332_s6 = inlined_call_operand.vmem [shape: f32[64,1], index: 6, kind: input, shape index: {}]   ;;  %s7333_s7 = inlined_call_operand.<no memory space> [shape: f32[1,1], index: 7, kind: input, shape index: {}]   ;;  %s7334_s8 = inlined_call_operand.vmem [shape: f32[4,1], index: 8, kind: output, shape index: {}]  }
   0x1   :  { %v13_v0 = vstv %s7333_s7 }
   0x2   :  { %14 = vst [vmem:[#allocation5] sm:$0x1] %v13_v0 }
   0x3   :  { %15 = vsyncpa [#allocation7], 0  ;;  %s5420_s29 = smov [#allocation6]   ;;  %s5396_s11 = scalar_lea.hbm %s7328_s2, 256 }
   0x4   :  { %s25_s30 = sshll.u32 %s5420_s29, 4  ;;  %p5397_p0 = scmp.ne.s32.totalorder %s7328_s2, %s5396_s11  ;;  %s26_s30 = int_to_ptr.vmem [resolvable:$true] %s25_s30 }
   0x5   :  { %p5400_p1 = scmp.lt.u32.totalorder %s5396_s11, %s7328_s2 }
   0x7   :  { %p5402_p2 = pnand %p5400_p1, %p5397_p0 }
   0x9   :  { %5405 = shalt.err (!%p5402_p2)
}
   0xa   :  { %s5406_s7 = scalar_lea.vmem %s26_s30, 256  ;;  %p5411_p4 = scmp.lt.s32.totalorder %s26_s30, %s26_s30 }
   0xb   :  { %p5407_p3 = scmp.ne.s32.totalorder %s26_s30, %s5406_s7  ;;  %p5412_p5 = scmp.lt.s32.totalorder %s5406_s7, %s5406_s7 }
   0xd   :  { %p5413_p6 = por %p5412_p5, %p5411_p4 }
   0xf   :  { %p5414_p7 = pnand %p5413_p6, %p5407_p3 }
  0x11   :  { %5417 = shalt.err (!%p5414_p7)
}
  0x12   :  { %s5421_s16 = smov 128   ;;  %s5422_s17 = smov 8  }
  0x13   :  { %31 = dma.hbm_to_vmem [thread:$0]  %s7328_s2, 256, %s26_s30, [#allocation7], %s5421_s16, %s5421_s16, %s5422_s17  }
  0x14   :  { %5418 = dma.done.wait [#allocation7], 256  }
  0x15   :  { %5419 = vsyncadd [#allocation7], 4294967040  ;;  %vm49_vm0 = vcmask 519168   ;;  %vm51_vm1 = vcmask 523264   ;;  %v7337_v1 = vmov 0.0   ;;  %v70_v2 = vld [vmem:[%s7327_s1 + $0x8] sm:$0xff] }
  0x16   :  { %200 = vmatprep.mubr.f32.mxu0 %v7337_v1  ;;  %271 = vmatprep.mubr.f32.mxu1 %v7337_v1  ;;  %50 = vst.msk [vmem:[#allocation2] sm:$0xf] %vm49_vm0, %v7337_v1  ;;  %v75_v3 = vld [vmem:[%s7327_s1 + $0x30] sm:$0xff]  ;;  %v72_v4 = vld [vmem:[%s7327_s1 + $0x18] sm:$0xff]  ;;  %v77_v6 = vld [vmem:[%s7327_s1 + $0x40] sm:$0xff]  ;;  %v7335_v54 = vmov 0.0|0.0  }
  0x17   :  { %52 = vst.msk [vmem:[#allocation3] sm:$0xff] %vm51_vm1, %v7337_v1  ;;  %55 = vst.msk [vmem:[#allocation3 + $0x10] sm:$0xff] %vm51_vm1, %v7337_v1  ;;  %v5516_v5 = vpack.c.bf16 %v75_v3, %v70_v2  ;;  %v69_v7 = vld [vmem:[%s7327_s1] sm:$0xff]  ;;  %v74_v8 = vld [vmem:[%s7327_s1 + $0x28] sm:$0xff]  ;;  %v5527_v9 = vpack.c.bf16 %v77_v6, %v72_v4  ;;  %vm5425_vm2 = vmmov 0   ;;  %vm53_vm3 = vcmask 517120  }
  0x18   :  { %57 = vst.msk [vmem:[#allocation3 + $0x20] sm:$0xff] %vm51_vm1, %v7337_v1  ;;  %59 = vst.msk [vmem:[#allocation3 + $0x30] sm:$0xff] %vm51_vm1, %v7337_v1  ;;  %v5529_v10 = vpack.c.bf16 %v74_v8, %v69_v7  ;;  %v71_v11 = vld [vmem:[%s7327_s1 + $0x10] sm:$0xff]  ;;  %v76_v12 = vld [vmem:[%s7327_s1 + $0x38] sm:$0xff]  ;;  %vm666_vm4 = vcmask 1041409   ;;  %vm668_vm5 = vcmask 1045509  }
  0x19   :  { %61 = vst.msk [vmem:[#allocation4] sm:$0xff] %vm51_vm1, %v7337_v1  ;;  %63 = vst.msk [vmem:[#allocation4 + $0x10] sm:$0xff] %vm51_vm1, %v7337_v1  ;;  %v80_v13 = vld [vmem:[%s7327_s1 + $0x58] sm:$0xff]  ;;  %4933 = vmatprep.subr.bf16.mxu0 %v5516_v5  ;;  %v5541_v14 = vpack.c.bf16 %v76_v12, %v71_v11  ;;  %v85_v15 = vld [vmem:[%s7327_s1 + $0x80] sm:$0xff]  ;;  %4949 = vmatprep.subr.bf16.mxu1 %v5527_v9  ;;  %vm671_vm6 = vcmask 1042434   ;;  %vm673_vm7 = vcmask 1046534  }
  0x1a   :  { %65 = vst.msk [vmem:[#allocation4 + $0x20] sm:$0xff] %vm51_vm1, %v7337_v1  ;;  %67 = vst.msk [vmem:[#allocation4 + $0x30] sm:$0xff] %vm51_vm1, %v7337_v1  ;;  %v82_v16 = vld [vmem:[%s7327_s1 + $0x68] sm:$0xff]  ;;  %v87_v17 = vld [vmem:[%s7327_s1 + $0x90] sm:$0xff]  ;;  %4935 = vmatpush1.bf16.msra.mxu0 %v5529_v10  ;;  %v5554_v18 = vpack.c.bf16 %v85_v15, %v80_v13  ;;  %vm676_vm8 = vcmask 1043459   ;;  %vm678_vm9 = vcmask 1047559  }
  0x1b   :  { %7401 = vst [vmem:[#allocation9_spill] sm:$0xff] %v5516_v5  ;;  %7402 = vst [vmem:[#allocation10_spill] sm:$0xff] %v5527_v9  ;;  %v5556_v19 = vpack.c.bf16 %v87_v17, %v82_v16  ;;  %v79_v20 = vld [vmem:[%s7327_s1 + $0x50] sm:$0xff]  ;;  %v84_v21 = vld [vmem:[%s7327_s1 + $0x78] sm:$0xff]  ;;  %4951 = vmatpush1.bf16.msra.mxu1 %v5541_v14  ;;  %vm4578_vm10 = vcmask 3072  }
  0x1c   :  { %7403 = vst [vmem:[#allocation11_spill] sm:$0xff] %v5541_v14  ;;  %v81_v22 = vld [vmem:[%s7327_s1 + $0x60] sm:$0xff]  ;;  %v5568_v23 = vpack.c.bf16 %v84_v21, %v79_v20  ;;  %v86_v24 = vld [vmem:[%s7327_s1 + $0x88] sm:$0xff]  ;;  %v95_v26 = vld [vmem:[%s7327_s1 + $0xd0] sm:$0xff]  ;;  %4937 = vmatprep.subr.bf16.mxu0 %v5554_v18 }
  0x1d   :  { %7404 = vst [vmem:[#allocation12_spill] sm:$0xff] %v5556_v19  ;;  %v90_v25 = vld [vmem:[%s7327_s1 + $0xa8] sm:$0xff]  ;;  %4953 = vmatprep.subr.bf16.mxu1 %v5556_v19  ;;  %v5581_v27 = vpack.c.bf16 %v86_v24, %v81_v22  ;;  %v92_v29 = vld [vmem:[%s7327_s1 + $0xb8] sm:$0xff]  ;;  %v97_v30 = vld [vmem:[%s7327_s1 + $0xe0] sm:$0xff] }
  0x1e   :  { %v5583_v28 = vpack.c.bf16 %v95_v26, %v90_v25  ;;  %v89_v31 = vld [vmem:[%s7327_s1 + $0xa0] sm:$0xff]  ;;  %v5594_v32 = vpack.c.bf16 %v97_v30, %v92_v29  ;;  %v94_v33 = vld [vmem:[%s7327_s1 + $0xc8] sm:$0xff]  ;;  %v91_v34 = vld [vmem:[%s7327_s1 + $0xb0] sm:$0xff]  ;;  %4939 = vmatpush1.bf16.msra.mxu0 %v5568_v23  ;;  %56 = vst.msk [vmem:[#allocation3 + $0x18] sm:$0x3] %vm53_vm3, %v7337_v1  ;;  %v384_v25 = vlaneseq }
  0x1f   :  { %7405 = vst [vmem:[#allocation13_spill] sm:$0xff] %v5581_v27  ;;  %v96_v35 = vld [vmem:[%s7327_s1 + $0xd8] sm:$0xff]  ;;  %v5606_v36 = vpack.c.bf16 %v94_v33, %v89_v31  ;;  %v105_v38 = vld [vmem:[%s7327_s1 + $0x120] sm:$0xff]  ;;  %v102_v39 = vld [vmem:[%s7327_s1 + $0x108] sm:$0xff]  ;;  %4955 = vmatpush1.bf16.msra.mxu1 %v5581_v27 }
  0x20   :  { %7406 = vst [vmem:[#allocation14_spill] sm:$0xff] %v5594_v32  ;;  %v100_v37 = vld [vmem:[%s7327_s1 + $0xf8] sm:$0xff]  ;;  %4941 = vmatprep.subr.bf16.mxu0 %v5583_v28  ;;  %v5619_v40 = vpack.c.bf16 %v96_v35, %v91_v34  ;;  %v107_v42 = vld [vmem:[%s7327_s1 + $0x130] sm:$0xff]  ;;  %4957 = vmatprep.subr.bf16.mxu1 %v5594_v32  ;;  %v101_v46 = vld [vmem:[%s7327_s1 + $0x100] sm:$0xff]  ;;  %v385_v33 = vshrl.u32 %v384_v25, 7 }
  0x21   :  { %v5621_v41 = vpack.c.bf16 %v105_v38, %v100_v37  ;;  %v99_v43 = vld [vmem:[%s7327_s1 + $0xf0] sm:$0xff]  ;;  %v104_v44 = vld [vmem:[%s7327_s1 + $0x118] sm:$0xff]  ;;  %v5633_v45 = vpack.c.bf16 %v107_v42, %v102_v39  ;;  %v106_v47 = vld [vmem:[%s7327_s1 + $0x128] sm:$0xff]  ;;  %64 = vst.msk [vmem:[#allocation4 + $0x18] sm:$0x3] %vm53_vm3, %v7337_v1 }
  0x22   :  { %7407 = vst [vmem:[#allocation15_spill] sm:$0xff] %v5619_v40  ;;  %4943 = vmatpush1.bf16.msra.mxu0 %v5606_v36  ;;  %v5642_v48 = vpack.c.bf16 %v104_v44, %v99_v43  ;;  %v5646_v49 = vpack.c.bf16 %v106_v47, %v101_v46  ;;  %v73_v50 = vld [vmem:[%s7327_s1 + $0x20] sm:$0xff]  ;;  %v78_v51 = vld [vmem:[%s7327_s1 + $0x48] sm:$0xff]  ;;  %v83_v55 = vld [vmem:[%s7327_s1 + $0x70] sm:$0xff]  ;;  %v5744_v37 = vsub.s32 1, %v385_v33  ;;  %v5746_v39 = vsub.s32 0, %v385_v33 }
  0x23   :  { %7408 = vst [vmem:[#allocation16_spill] sm:$0xff] %v5633_v45  ;;  %4959 = vmatpush1.bf16.msra.mxu1 %v5619_v40  ;;  %4945 = vmatprep.subr.bf16.mxu0 %v5621_v41  ;;  %v112_v52 = vld [vmem:[#allocation2] sm:$0xf]  ;;  %v5656_v53 = vpack.c.bf16 %v78_v51, %v73_v50  ;;  %v88_v56 = vld [vmem:[%s7327_s1 + $0x98] sm:$0xff]  ;;  %v98_v59 = vld [vmem:[%s7327_s1 + $0xe8] sm:$0xff]  ;;  %v5750_v44 = vsub.s32 2, %v385_v33 }
  0x24   :  { %7409 = vst [vmem:[#allocation17_spill] sm:$0xff] %v5642_v48  ;;  %7410 = vst [vmem:[#allocation18_spill] sm:$0xff] %v5646_v49  ;;  %4961 = vmatprep.subr.bf16.mxu1 %v5633_v45  ;;  %v5670_v57 = vpack.c.bf16 %v88_v56, %v83_v55  ;;  %v93_v58 = vld [vmem:[%s7327_s1 + $0xc0] sm:$0xff]  ;;  %v103_v61 = vld [vmem:[%s7327_s1 + $0x110] sm:$0xff]  ;;  %v5753_v47 = vsub.s32 3, %v385_v33 }
  0x25   :  { %v5685_v60 = vpack.c.bf16 %v98_v59, %v93_v58  ;;  %v108_v62 = vld [vmem:[%s7327_s1 + $0x138] sm:$0xff]  ;;  %v129_v3 = vld [vmem:[%s7326_s0] sm:$0xff]  ;;  %v130_v7 = vld [vmem:[%s7326_s0 + $0x8] sm:$0xff]  ;;  %54 = vst.msk [vmem:[#allocation3 + $0x8] sm:$0x3] %vm53_vm3, %v7337_v1 }
  0x26   :  { %4947 = vmatpush1.bf16.msra.mxu0 %v5642_v48  ;;  %v5697_v63 = vpack.c.bf16 %v108_v62, %v103_v61  ;;  %v131_v20 = vld [vmem:[%s7326_s0 + $0x10] sm:$0xf]  ;;  %58 = vst.msk [vmem:[#allocation3 + $0x28] sm:$0x3] %vm53_vm3, %v7337_v1  ;;  %60 = vst.msk [vmem:[#allocation3 + $0x38] sm:$0x3] %vm53_vm3, %v7337_v1 }
  0x27   :  { %4963 = vmatpush1.bf16.msra.mxu1 %v5646_v49  ;;  %4964 = vmatprep.subr.bf16.mxu0 %v7335_v54  ;;  %62 = vst.msk [vmem:[#allocation4 + $0x8] sm:$0x3] %vm53_vm3, %v7337_v1  ;;  %66 = vst.msk [vmem:[#allocation4 + $0x28] sm:$0x3] %vm53_vm3, %v7337_v1  ;;  %v5426_v56 = vmov 1966171168  }
  0x28   :  { %4977 = vmatprep.subr.bf16.mxu1 %v5516_v5  ;;  %68 = vst.msk [vmem:[#allocation4 + $0x38] sm:$0x3] %vm53_vm3, %v7337_v1  ;;  %7411 = vst [vmem:[#allocation19_spill] sm:$0xff] %v5744_v37  ;;  %v430_v58 = vunpack.c.l.s4 %v5426_v56  ;;  %v560_v25 = vld [vmem:[%s7331_s5] sm:$0xff] }
  0x29   :  { %4604 = vmatmul.mubr.msk.f32.vlgmr.msra.gmra.mrb[0].mxu0 %vm51_vm1, %v112_v52  ;;  %7412 = vst [vmem:[#allocation20_spill] sm:$0xff] %v5746_v39  ;;  %7413 = vst [vmem:[#allocation21_spill] sm:$0xff] %v5750_v44 }
  0x2a   :  { %4605 = vmatmul.mubr.msk.f32.vlgmr.msra.gmra.mrb[0].mxu1 %vm51_vm1, %v112_v52  ;;  %4966 = vmatpush3.bf16.msra.mxu0 %v5656_v53  ;;  %7414 = vst [vmem:[#allocation22_spill] sm:$0xff] %v5753_v47  ;;  %v431_v61 = vunpack.c.0.s8 %v430_v58 }
  0x2b   :  { %4967 = vmatprep.subr.bf16.mxu0 %v7335_v54  ;;  %4777 = vmatprep.mubr.msk.f32.mxu0 %vm5425_vm2, %v7337_v1 }
  0x2c   :  { %4979 = vmatpush1.bf16.msra.mxu1 %v5529_v10  ;;  %753 = vmatprep.mubr.f32.mxu1 %v7337_v1 }
  0x2d   :  { %4981 = vmatprep.subr.bf16.mxu1 %v5554_v18 }
  0x2e   :  { %4969 = vmatpush3.bf16.msra.mxu0 %v5670_v57 }
  0x2f   :  { %4970 = vmatprep.subr.bf16.mxu0 %v7335_v54 }
  0x30   :  { %4983 = vmatpush1.bf16.msra.mxu1 %v5568_v23 }
  0x31   :  { %4985 = vmatprep.subr.bf16.mxu1 %v5583_v28 }
  0x32   :  { %4972 = vmatpush3.bf16.msra.mxu0 %v5685_v60 }
  0x33   :  { %4973 = vmatprep.subr.bf16.mxu0 %v7335_v54 }
  0x34   :  { %4987 = vmatpush1.bf16.msra.mxu1 %v5606_v36 }
  0x35   :  { %4989 = vmatprep.subr.bf16.mxu1 %v5621_v41 }
  0x36   :  { %4975 = vmatpush3.bf16.msra.mxu0 %v5697_v63 }
  0x37   :  { %4993 = vmatprep.subr.bf16.mxu0 %v5527_v9 }
  0x38   :  { %4991 = vmatpush1.bf16.msra.mxu1 %v5642_v48 }
  0x39   :  { %4778 = vmatmul.mubr.msk.f32.vlgmr.msra.gmra.mrb[2].mxu0 %vm51_vm1, %v112_v52  ;;  %5008 = vmatprep.subr.bf16.mxu1 %v7335_v54 }
  0x3a   :  { %4995 = vmatpush1.bf16.msra.mxu0 %v5541_v14  ;;  %824 = vmatprep.mubr.f32.mxu0 %v7337_v1 }
  0x3b   :  { %4997 = vmatprep.subr.bf16.mxu0 %v5556_v19 }
  0x3e   :  { %4999 = vmatpush1.bf16.msra.mxu0 %v5581_v27 }
  0x3f   :  { %5001 = vmatprep.subr.bf16.mxu0 %v5594_v32 }
  0x42   :  { %5003 = vmatpush1.bf16.msra.mxu0 %v5619_v40 }
  0x43   :  { %5005 = vmatprep.subr.bf16.mxu0 %v5633_v45 }
  0x46   :  { %5007 = vmatpush1.bf16.msra.mxu0 %v5646_v49 }
  0x47   :  { %5021 = vmatprep.subr.bf16.mxu0 %v5516_v5 }
  0xfc   :  { %v202_v0 = vpop.f32.mrb[0].mxu0 }
  0xfd   :  { %v273_v2 = vpop.f32.mrb[0].mxu1  ;;  %v204_v4 = vpop.f32.mrb[1].mxu0 }
  0xfe   :  { %v352_v6 = vcombine.low %v202_v0, %v204_v4  ;;  %v275_v8 = vpop.f32.mrb[1].mxu1  ;;  %v5756_v0 = vsub.s32 %v431_v61, %v385_v33 }
  0xff   :  { %v353_v11 = vcombine.low %v273_v2, %v275_v8 }
 0x100   :  { %v356_v12 = vadd.f32 %v352_v6, %v129_v3  ;;  %7415 = vst [vmem:[#allocation23_spill] sm:$0xff] %v5756_v0 }
 0x101   :  { %v5722_v13 = vadd.f32 %v353_v11, %v130_v7 }
 0x102   :  { %v360_v15 = vmul.f32 0.16666667, %v356_v12  ;;  %v365_v51 = vrot.slane %v356_v12, 4 }
 0x103   :  { %5303 = vtanh.f32 %v5722_v13 }
 0x104   :  { %v361_v16 = vadd.f32 0.5, %v360_v15  ;;  %v367_v52 = vmul.f32 0.16666667, %v365_v51  ;;  %v113_v51 = vld [vmem:[#allocation3] sm:$0xff] }
 0x106   :  { %v362_v17 = vmax.f32 %v361_v16, 0.0  ;;  %v368_v55 = vadd.f32 0.5, %v367_v52  ;;  %v121_v52 = vld [vmem:[#allocation4] sm:$0xff] }
 0x108   :  { %v363_v21 = vmin.f32 %v362_v17, 1.0  ;;  %v369_v59 = vmax.f32 %v368_v55, 0.0 }
 0x10a   :  { %v370_v62 = vmin.f32 %v369_v59, 1.0 }
 0x10c   :  { %v344_v22 = vpop.f32.mrb[2].mxu0  ;;  %v435_v2 = vrot.slane %v370_v62, %v5756_v0 }
 0x10d   :  { %v5304_v24 = vpop.eup %5303  ;;  %v358_v26 = vadd.f32 %v344_v22, %v131_v20  ;;  %v4779_v29 = vpop.f32.mrb[3].mxu0 }
 0x10e   :  { %v383_v30 = vmul.f32 %v5304_v24, %v363_v21  ;;  %v436_v4 = vcombine.high %v435_v2, %v435_v2  ;;  %v443_v11 = vrot.slane %v435_v2, %v5756_v0  ;;  %v514_v21 = vld [vmem:[%s7330_s4] sm:$0xff] }
 0x10f   :  { %v378_v31 = vmul.f32 0.16666667, %v358_v26  ;;  %v515_v26 = vld [vmem:[%s7330_s4 + $0x8] sm:$0x3] }
 0x110   :  { %v488_v3 = vrot.slane %v383_v30, %v5756_v0  ;;  %v450_v8 = vrot.slane %v436_v4, %v5756_v0  ;;  %v451_v17 = vcombine.high %v443_v11, %v443_v11  ;;  %v456_v29 = vrot.slane %v443_v11, %v5746_v39 }
 0x111   :  { %v379_v34 = vadd.f32 0.5, %v378_v31  ;;  %v115_v31 = vld [vmem:[#allocation3 + $0x10] sm:$0xff] }
 0x112   :  { %v489_v6 = vcombine.high %v488_v3, %v488_v3  ;;  %v496_v7 = vrot.slane %v488_v3, %v5756_v0  ;;  %v452_v20 = vcombine.high %v450_v8, %v450_v8  ;;  %v460_v33 = vrot.slane %v450_v8, %v5746_v39 }
 0x113   :  { %v380_v35 = vmax.f32 %v379_v34, 0.0 }
 0x114   :  { %v503_v12 = vrot.slane %v489_v6, %v5756_v0  ;;  %v504_v15 = vcombine.high %v496_v7, %v496_v7  ;;  %v519_v16 = vrot.slane %v496_v7, %v5746_v39 }
 0x115   :  { %v381_v38 = vmin.f32 %v380_v35, 1.0  ;;  %v561_v35 = vld [vmem:[%s7331_s5 + $0x8] sm:$0x3] }
 0x116   :  { %v523_v22 = vrot.slane %v503_v12, %v5746_v39  ;;  %v505_v24 = vcombine.high %v503_v12, %v503_v12  ;;  %v527_v30 = vrot.slane %v504_v15, %v5746_v39  ;;  %v536_v34 = vmul.f32 %v519_v16, %v514_v21 }
 0x117   :  { %v398_v42 = vrot.slane %v381_v38, %v5744_v37  ;;  %v387_v43 = vrot.slane %v381_v38, %v5746_v39  ;;  %v409_v46 = vrot.slane %v381_v38, %v5750_v44  ;;  %v420_v50 = vrot.slane %v381_v38, %v5753_v47 }
 0x118   :  { %v464_v38 = vrot.slane %v451_v17, %v5746_v39  ;;  %v562_v55 = vmul.f32 %v560_v25, %v519_v16  ;;  %v537_v58 = vmul.f32 %v519_v16, %v515_v26  ;;  %v531_v59 = vrot.slane %v505_v24, %v5746_v39 }
 0x119   :  { %400 = vbcast.lane.b32.xlu0 %v398_v42, 256  ;;  %389 = vbcast.lane.b32.xlu1 %v387_v43, 256  ;;  %v564_v61 = vmul.f32 %v560_v25, %v523_v22  ;;  %v539_v3 = vmul.f32 %v523_v22, %v515_v26  ;;  %v565_v4 = vmul.f32 %v561_v35, %v523_v22 }
 0x11a   :  { %v563_v6 = vmul.f32 %v561_v35, %v519_v16  ;;  %v540_v7 = vmul.f32 %v527_v30, %v514_v21  ;;  %v566_v8 = vmul.f32 %v560_v25, %v527_v30  ;;  %v5786_v0 = vmul.f32 %v527_v30, %v515_v26 }
 0x11b   :  { %v5788_v47 = vmul.f32 %v561_v35, %v527_v30  ;;  %v5790_v24 = vmul.f32 %v531_v59, %v514_v21  ;;  %v5802_v44 = vmul.f32 %v531_v59, %v515_v26  ;;  %v5804_v30 = vmul.f32 %v561_v35, %v531_v59  ;;  %v125_v35 = vld [vmem:[#allocation4 + $0x20] sm:$0xff] }
 0x11d   :  { %404 = vbcast.lane.b32.xlu0 %v398_v42, 264  ;;  %393 = vbcast.lane.b32.xlu1 %v387_v43, 264  ;;  %v5783_v42 = vrot.slane %v452_v20, %v5746_v39  ;;  %v123_v43 = vld [vmem:[#allocation4 + $0x10] sm:$0xff]  ;;  %v116_v20 = vld [vmem:[#allocation3 + $0x18] sm:$0x3] }
 0x121   :  { %411 = vbcast.lane.b32.xlu0 %v409_v46, 256  ;;  %415 = vbcast.lane.b32.xlu1 %v409_v46, 264  ;;  %v538_v46 = vmul.f32 %v523_v22, %v514_v21 }
 0x125   :  { %422 = vbcast.lane.b32.xlu0 %v420_v50, 256  ;;  %426 = vbcast.lane.b32.xlu1 %v420_v50, 264 }
 0x18b   :  { %v401_v50 = vpop.permute.xlu0 %400  ;;  %v390_v56 = vpop.permute.xlu1 %389 }
 0x18c   :  { %v475_v62 = vmul.f32 %v460_v33, %v401_v50  ;;  %v473_v2 = vmul.f32 %v456_v29, %v390_v56  ;;  %v5792_v50 = vmul.f32 %v560_v25, %v531_v59 }
 0x18e   :  { %v508_v11 = vmul.f32 %v475_v62, %v115_v31  ;;  %v554_v12 = vmul.f32 %v475_v62, %v123_v43  ;;  %v506_v15 = vmul.f32 %v473_v2, %v113_v51  ;;  %v552_v17 = vmul.f32 %v473_v2, %v121_v52  ;;  %v124_v43 = vld [vmem:[#allocation4 + $0x18] sm:$0x3]  ;;  %v114_v51 = vld [vmem:[#allocation3 + $0x8] sm:$0x3] }
 0x18f   :  { %v405_v54 = vpop.permute.xlu0 %404  ;;  %v394_v1 = vpop.permute.xlu1 %393  ;;  %v122_v52 = vld [vmem:[#allocation4 + $0x8] sm:$0x3] }
 0x190   :  { %v5794_v56 = vadd.f32 %v538_v46, %v508_v11  ;;  %v5796_v16 = vadd.f32 %v564_v61, %v554_v12  ;;  %v5798_v22 = vadd.f32 %v536_v34, %v506_v15  ;;  %v5800_v31 = vadd.f32 %v562_v55, %v552_v17  ;;  %v5814_v55 = vld [vmem:[#allocation6] sm:$0xff] }
 0x191   :  { %v476_v62 = vmul.f32 %v460_v33, %v405_v54  ;;  %v474_v2 = vmul.f32 %v456_v29, %v394_v1  ;;  %v117_v33 = vld [vmem:[#allocation3 + $0x20] sm:$0xff] }
 0x192   :  { %7416 = vst [vmem:[#allocation24_spill] sm:$0xff] %v5794_v56  ;;  %7417 = vst [vmem:[#allocation25_spill] sm:$0xff] %v5796_v16  ;;  %v580_v21 = vmul.f32 %v5794_v56, %v5794_v56  ;;  %v588_v25 = vmul.f32 %v5796_v16, %v5796_v16  ;;  %v578_v34 = vmul.f32 %v5798_v22, %v5798_v22 }
 0x193   :  { %7418 = vst [vmem:[#allocation26_spill] sm:$0xff] %v5798_v22  ;;  %7419 = vst [vmem:[#allocation27_spill] sm:$0xff] %v5800_v31  ;;  %v586_v46 = vmul.f32 %v5800_v31, %v5800_v31  ;;  %v509_v54 = vmul.f32 %v476_v62, %v116_v20  ;;  %v555_v1 = vmul.f32 %v476_v62, %v124_v43  ;;  %v412_v59 = vpop.permute.xlu0 %411  ;;  %v416_v61 = vpop.permute.xlu1 %415  ;;  %v118_v62 = vld [vmem:[#allocation3 + $0x28] sm:$0x3] }
 0x194   :  { %v507_v26 = vmul.f32 %v474_v2, %v114_v51  ;;  %v553_v29 = vmul.f32 %v474_v2, %v122_v52  ;;  %v596_v11 = vadd.f32 %v588_v25, %v580_v21  ;;  %v477_v15 = vmul.f32 %v464_v38, %v412_v59  ;;  %v126_v2 = vld [vmem:[#allocation4 + $0x28] sm:$0x3]  ;;  %v119_v59 = vld [vmem:[#allocation3 + $0x30] sm:$0xff] }
 0x195   :  { %v594_v12 = vadd.f32 %v586_v46, %v578_v34  ;;  %v478_v17 = vmul.f32 %v464_v38, %v416_v61  ;;  %v5816_v16 = vadd.f32 %v539_v3, %v509_v54  ;;  %v5818_v22 = vadd.f32 %v565_v4, %v555_v1  ;;  %v5836_v46 = vld [vmem:[#allocation6 + $0x8] sm:$0x3]  ;;  %v127_v61 = vld [vmem:[#allocation4 + $0x30] sm:$0xff] }
 0x196   :  { %v5820_v56 = vadd.f32 %v537_v58, %v507_v26  ;;  %v5822_v31 = vadd.f32 %v563_v6, %v553_v29  ;;  %v604_v20 = vmul.f32 %v596_v11, %v5814_v55  ;;  %v510_v51 = vmul.f32 %v477_v15, %v117_v33  ;;  %v120_v11 = vld [vmem:[#allocation3 + $0x38] sm:$0x3] }
 0x197   :  { %v602_v43 = vmul.f32 %v594_v12, %v5814_v55  ;;  %v556_v52 = vmul.f32 %v477_v15, %v125_v35  ;;  %v581_v21 = vmul.f32 %v5816_v16, %v5816_v16  ;;  %v589_v38 = vmul.f32 %v5818_v22, %v5818_v22  ;;  %v423_v4 = vpop.permute.xlu0 %422  ;;  %v427_v6 = vpop.permute.xlu1 %426 }
 0x198   :  { %v579_v58 = vmul.f32 %v5820_v56, %v5820_v56  ;;  %v587_v3 = vmul.f32 %v5822_v31, %v5822_v31  ;;  %v620_v25 = vsel %vm51_vm1, %v604_v20, 0.0  ;;  %v5838_v54 = vadd.f32 %v540_v7, %v510_v51 }
 0x199   :  { %v610_v34 = vsel %vm51_vm1, %v602_v43, 0.0  ;;  %v5840_v1 = vadd.f32 %v566_v8, %v556_v52  ;;  %v597_v26 = vadd.f32 %v589_v38, %v581_v21  ;;  %v511_v33 = vmul.f32 %v478_v17, %v118_v62  ;;  %v128_v21 = vld [vmem:[#allocation4 + $0x38] sm:$0x3] }
 0x19a   :  { %v595_v29 = vadd.f32 %v587_v3, %v579_v58  ;;  %v557_v35 = vmul.f32 %v478_v17, %v126_v2  ;;  %v582_v12 = vmul.f32 %v5838_v54, %v5838_v54  ;;  %v479_v20 = vmul.f32 %v5783_v42, %v423_v4 }
 0x19b   :  { %v590_v15 = vmul.f32 %v5840_v1, %v5840_v1  ;;  %v480_v7 = vmul.f32 %v5783_v42, %v427_v6  ;;  %v605_v8 = vmul.f32 %v597_v26, %v5836_v46  ;;  %v5851_v51 = vadd.f32 %v5786_v0, %v511_v33 }
 0x19c   :  { %v603_v43 = vmul.f32 %v595_v29, %v5836_v46  ;;  %v5854_v17 = vadd.f32 %v5788_v47, %v557_v35  ;;  %v512_v62 = vmul.f32 %v479_v20, %v119_v59  ;;  %v558_v2 = vmul.f32 %v479_v20, %v127_v61 }
 0x19d   :  { %v598_v52 = vadd.f32 %v590_v15, %v582_v12  ;;  %v513_v38 = vmul.f32 %v480_v7, %v120_v11  ;;  %v621_v58 = vsel %vm53_vm3, %v605_v8, 0.0  ;;  %v583_v42 = vmul.f32 %v5851_v51, %v5851_v51 }
 0x19e   :  { %v612_v3 = vsel %vm53_vm3, %v603_v43, 0.0  ;;  %v591_v4 = vmul.f32 %v5854_v17, %v5854_v17  ;;  %v622_v0 = vadd.f32 %v621_v58, %v620_v25  ;;  %v5864_v26 = vadd.f32 %v5790_v24, %v512_v62 }
 0x19f   :  { %v613_v6 = vadd.f32 %v612_v3, %v610_v34  ;;  %v606_v47 = vmul.f32 %v598_v52, %v5814_v55  ;;  %v5867_v33 = vadd.f32 %v5792_v50, %v558_v2  ;;  %v5870_v35 = vadd.f32 %v5802_v44, %v513_v38 }
 0x1a0   :  { %v599_v29 = vadd.f32 %v591_v4, %v583_v42  ;;  %v559_v59 = vmul.f32 %v480_v7, %v128_v21  ;;  %v623_v61 = vrot.slane %v622_v0, 4  ;;  %v584_v25 = vmul.f32 %v5864_v26, %v5864_v26 }
 0x1a1   :  { %v614_v11 = vrot.slane %v613_v6, 4  ;;  %v629_v12 = vsel %vm51_vm1, %v606_v47, 0.0  ;;  %v592_v24 = vmul.f32 %v5867_v33, %v5867_v33  ;;  %v585_v44 = vmul.f32 %v5870_v35, %v5870_v35 }
 0x1a2   :  { %v607_v34 = vmul.f32 %v599_v29, %v5836_v46  ;;  %v5879_v15 = vadd.f32 %v5804_v30, %v559_v59  ;;  %v624_v50 = vadd.f32 %v623_v61, %v622_v0  ;;  %v5892_v29 = vld [vmem:[%s7329_s3] ss:$0 sm:$0xff] }
 0x1a3   :  { %v615_v20 = vadd.f32 %v614_v11, %v613_v6  ;;  %v600_v8 = vadd.f32 %v592_v24, %v584_v25 }
 0x1a4   :  { %v630_v7 = vsel %vm53_vm3, %v607_v34, 0.0  ;;  %v593_v43 = vmul.f32 %v5879_v15, %v5879_v15  ;;  %v625_v52 = vrot.slane %v624_v50, 2 }
 0x1a5   :  { %v616_v62 = vrot.slane %v615_v20, 2  ;;  %v631_v2 = vadd.f32 %v630_v7, %v629_v12  ;;  %v608_v21 = vmul.f32 %v600_v8, %v5814_v55 }
 0x1a6   :  { %v601_v38 = vadd.f32 %v593_v43, %v585_v44  ;;  %v626_v58 = vadd.f32 %v625_v52, %v624_v50 }
 0x1a7   :  { %v617_v30 = vadd.f32 %v616_v62, %v615_v20  ;;  %v632_v3 = vrot.slane %v631_v2, 4  ;;  %v638_v42 = vsel %vm51_vm1, %v608_v21, 0.0 }
 0x1a8   :  { %v609_v4 = vmul.f32 %v601_v38, %v5836_v46  ;;  %v627_v0 = vrot.slane %v626_v58, 1  ;;  %v372_v38 = vrot.slane %v5722_v13, 4 }
 0x1a9   :  { %v618_v6 = vrot.slane %v617_v30, 1  ;;  %v633_v47 = vadd.f32 %v632_v3, %v631_v2 }
 0x1aa   :  { %v639_v59 = vsel %vm53_vm3, %v609_v4, 0.0  ;;  %v628_v61 = vadd.f32 %v627_v0, %v626_v58  ;;  %v374_v3 = vmul.f32 0.16666667, %v372_v38 }
 0x1ab   :  { %v634_v11 = vrot.slane %v633_v47, 2  ;;  %v640_v12 = vadd.f32 %v639_v59, %v638_v42  ;;  %v619_v25 = vadd.f32 %v618_v6, %v617_v30 }
 0x1ac   :  { %v654_v34 = vadd.f32 %v5892_v29, %v628_v61  ;;  %v375_v6 = vadd.f32 0.5, %v374_v3 }
 0x1ad   :  { %v635_v24 = vadd.f32 %v634_v11, %v633_v47  ;;  %v641_v44 = vrot.slane %v640_v12, 4  ;;  %v653_v7 = vadd.f32 %v5892_v29, %v619_v25 }
 0x1ae   :  { %5305 = vtanh.f32 %v654_v34  ;;  %v376_v11 = vmax.f32 %v375_v6, 0.0 }
 0x1af   :  { %v636_v50 = vrot.slane %v635_v24, 1  ;;  %v642_v20 = vadd.f32 %v641_v44, %v640_v12  ;;  %5307 = vtanh.f32 %v653_v7  ;;  %v7420_v7 = vmov 0.0  }
 0x1b1   :  { %v637_v8 = vadd.f32 %v636_v50, %v635_v24  ;;  %v643_v43 = vrot.slane %v642_v20, 2  ;;  %v377_v24 = vmin.f32 %v376_v11, 1.0 }
 0x1b3   :  { %v655_v52 = vadd.f32 %v5892_v29, %v637_v8  ;;  %v644_v62 = vadd.f32 %v643_v43, %v642_v20  ;;  %v7421_v8 = vmov 0.0|0.0  }
 0x1b5   :  { %5309 = vtanh.f32 %v655_v52  ;;  %v645_v2 = vrot.slane %v644_v62, 1 }
 0x1b7   :  { %v646_v21 = vadd.f32 %v645_v2, %v644_v62  ;;  %v4608_v62 = vld [vmem:[%s7326_s0 + $0x14] sm:$0xff] }
 0x1b8   :  { %v5306_v58 = vpop.eup %5305 }
 0x1b9   :  { %v656_v30 = vadd.f32 %v5892_v29, %v646_v21  ;;  %v665_v42 = vrot.slane %v5306_v58, 7  ;;  %v5308_v4 = vpop.eup %5307  ;;  %v4609_v21 = vld [vmem:[%s7326_s0 + $0x1c] sm:$0xff] }
 0x1bb   :  { %5311 = vtanh.f32 %v656_v30  ;;  %v667_v47 = vsel %vm666_vm4, %v665_v42, %v5308_v4 }
 0x1bc   :  { %v669_v61 = vsel %vm668_vm5, %v665_v42, %v667_v47  ;;  %v4610_v47 = vld [vmem:[%s7326_s0 + $0x24] sm:$0xf] }
 0x1bf   :  { %v5310_v0 = vpop.eup %5309 }
 0x1c0   :  { %v670_v59 = vrot.slane %v5310_v0, 6 }
 0x1c2   :  { %v672_v13 = vsel %vm671_vm6, %v670_v59, %v669_v61 }
 0x1c3   :  { %v674_v34 = vsel %vm673_vm7, %v670_v59, %v672_v13 }
 0x1c5   :  { %v5312_v12 = vpop.eup %5311 }
 0x1c6   :  { %v675_v25 = vrot.slane %v5312_v12, 5 }
 0x1c8   :  { %v677_v44 = vsel %vm676_vm8, %v675_v25, %v674_v34 }
 0x1c9   :  { %v679_v50 = vsel %vm678_vm9, %v675_v25, %v677_v44 }
 0x1ca   :  { %v681_v20 = vmul.f32 %v679_v50, %v377_v24 }
 0x1cc   :  { %4611 = vmatmul.mubr.msk.f32.vlgmr.msra.gmra.mrb[2].mxu1 %vm51_vm1, %v681_v20  ;;  %4612 = vmatmul.mubr.msk.f32.vlgmr.msra.gmra.mrb[4].mxu0 %vm51_vm1, %v681_v20 }
 0x1cd   :  { %5010 = vmatpush3.bf16.msra.mxu1 %v5656_v53  ;;  %4796 = vmatprep.mubr.msk.f32.mxu1 %vm5425_vm2, %v7420_v7 }
 0x1ce   :  { %5011 = vmatprep.subr.bf16.mxu1 %v7421_v8  ;;  %5023 = vmatpush1.bf16.msra.mxu0 %v5529_v10 }
 0x1cf   :  { %5025 = vmatprep.subr.bf16.mxu0 %v5554_v18  ;;  %1294 = vmatprep.mubr.f32.mxu0 %v7420_v7 }
 0x1d1   :  { %5013 = vmatpush3.bf16.msra.mxu1 %v5670_v57 }
 0x1d2   :  { %5014 = vmatprep.subr.bf16.mxu1 %v7421_v8  ;;  %5027 = vmatpush1.bf16.msra.mxu0 %v5568_v23 }
 0x1d3   :  { %5029 = vmatprep.subr.bf16.mxu0 %v5583_v28 }
 0x1d5   :  { %5016 = vmatpush3.bf16.msra.mxu1 %v5685_v60 }
 0x1d6   :  { %5017 = vmatprep.subr.bf16.mxu1 %v7421_v8  ;;  %5031 = vmatpush1.bf16.msra.mxu0 %v5606_v36 }
 0x1d7   :  { %5033 = vmatprep.subr.bf16.mxu0 %v5621_v41 }
 0x1d9   :  { %5019 = vmatpush3.bf16.msra.mxu1 %v5697_v63 }
 0x1da   :  { %5037 = vmatprep.subr.bf16.mxu1 %v5527_v9  ;;  %5035 = vmatpush1.bf16.msra.mxu0 %v5642_v48 }
 0x1db   :  { %5052 = vmatprep.subr.bf16.mxu0 %v7421_v8 }
 0x1dc   :  { %4797 = vmatmul.mubr.msk.f32.vlgmr.msra.gmra.mrb[4].mxu1 %vm51_vm1, %v681_v20 }
 0x1dd   :  { %5039 = vmatpush1.bf16.msra.mxu1 %v5541_v14  ;;  %1365 = vmatprep.mubr.f32.mxu1 %v7420_v7 }
 0x1de   :  { %5041 = vmatprep.subr.bf16.mxu1 %v5556_v19 }
 0x1e1   :  { %5043 = vmatpush1.bf16.msra.mxu1 %v5581_v27 }
 0x1e2   :  { %5045 = vmatprep.subr.bf16.mxu1 %v5594_v32 }
 0x1e5   :  { %5047 = vmatpush1.bf16.msra.mxu1 %v5619_v40  ;;  %v7425_v40 = vld [vmem:[#allocation24_spill] sm:$0xff] }
 0x1e6   :  { %5049 = vmatprep.subr.bf16.mxu1 %v5633_v45 }
 0x1e9   :  { %5051 = vmatpush1.bf16.msra.mxu1 %v5646_v49 }
 0x1ea   :  { %5065 = vmatprep.subr.bf16.mxu1 %v5516_v5 }
 0x29f   :  { %v755_v43 = vpop.f32.mrb[2].mxu1  ;;  %v826_v52 = vpop.f32.mrb[4].mxu0 }
 0x2a0   :  { %v757_v2 = vpop.f32.mrb[3].mxu1  ;;  %v828_v38 = vpop.f32.mrb[5].mxu0 }
 0x2a1   :  { %v905_v58 = vcombine.low %v755_v43, %v757_v2  ;;  %v906_v30 = vcombine.low %v826_v52, %v828_v38  ;;  %v7422_v52 = vld [vmem:[#allocation21_spill] sm:$0xff]  ;;  %v7423_v2 = vld [vmem:[#allocation22_spill] sm:$0xff] }
 0x2a3   :  { %v909_v3 = vadd.f32 %v4608_v62, %v905_v58  ;;  %v5943_v42 = vadd.f32 %v4609_v21, %v906_v30 }
 0x2a5   :  { %v912_v4 = vmul.f32 0.16666667, %v909_v3  ;;  %5313 = vtanh.f32 %v5943_v42  ;;  %v917_v38 = vrot.slane %v909_v3, 4 }
 0x2a7   :  { %v913_v0 = vadd.f32 0.5, %v912_v4  ;;  %v919_v58 = vmul.f32 0.16666667, %v917_v38  ;;  %v5975_v38 = vld [vmem:[%s7331_s5 + $0x10] sm:$0xff] }
 0x2a9   :  { %v914_v6 = vmax.f32 %v913_v0, 0.0  ;;  %v920_v30 = vadd.f32 0.5, %v919_v58 }
 0x2ab   :  { %v915_v59 = vmin.f32 %v914_v6, 1.0  ;;  %v921_v4 = vmax.f32 %v920_v30, 0.0  ;;  %v7424_v6 = vld [vmem:[#allocation23_spill] sm:$0xff] }
 0x2ad   :  { %v922_v0 = vmin.f32 %v921_v4, 1.0 }
 0x2af   :  { %v5314_v61 = vpop.eup %5313  ;;  %v897_v11 = vpop.f32.mrb[4].mxu1 }
 0x2b0   :  { %v935_v13 = vmul.f32 %v5314_v61, %v915_v59  ;;  %v911_v12 = vadd.f32 %v4610_v47, %v897_v11  ;;  %v4798_v25 = vpop.f32.mrb[5].mxu1  ;;  %v987_v47 = vrot.slane %v922_v0, %v7424_v6 }
 0x2b2   :  { %v930_v34 = vmul.f32 0.16666667, %v911_v12  ;;  %v1040_v59 = vrot.slane %v935_v13, %v7424_v6  ;;  %v988_v61 = vcombine.high %v987_v47, %v987_v47  ;;  %v995_v25 = vrot.slane %v987_v47, %v7424_v6  ;;  %v4617_v13 = vld [vmem:[%s7331_s5 + $0x18] sm:$0x3] }
 0x2b4   :  { %v931_v24 = vadd.f32 0.5, %v930_v34  ;;  %v1041_v11 = vcombine.high %v1040_v59, %v1040_v59  ;;  %v1002_v12 = vrot.slane %v988_v61, %v7424_v6  ;;  %v1048_v34 = vrot.slane %v1040_v59, %v7424_v6 }
 0x2b5   :  { %v1008_v4 = vrot.slane %v995_v25, %v5746_v39 }
 0x2b6   :  { %v932_v44 = vmax.f32 %v931_v24, 0.0  ;;  %v1055_v24 = vrot.slane %v1041_v11, %v7424_v6  ;;  %v1004_v3 = vcombine.high %v1002_v12, %v1002_v12  ;;  %v1012_v30 = vrot.slane %v1002_v12, %v5746_v39 }
 0x2b8   :  { %v933_v50 = vmin.f32 %v932_v44, 1.0  ;;  %v1003_v44 = vcombine.high %v995_v25, %v995_v25  ;;  %v1057_v58 = vcombine.high %v1055_v24, %v1055_v24  ;;  %v5981_v47 = vrot.slane %v1004_v3, %v5746_v39 }
 0x2ba   :  { %v950_v20 = vrot.slane %v933_v50, %v5744_v37  ;;  %v939_v43 = vrot.slane %v933_v50, %v5746_v39  ;;  %v961_v62 = vrot.slane %v933_v50, %v7422_v52  ;;  %v972_v21 = vrot.slane %v933_v50, %v7423_v2 }
 0x2bb   :  { %v1072_v50 = vrot.slane %v1048_v34, %v5746_v39  ;;  %v1016_v0 = vrot.slane %v1003_v44, %v5746_v39  ;;  %v5989_v3 = vrot.slane %v1057_v58, %v5746_v39 }
 0x2bc   :  { %956 = vbcast.lane.b32.xlu1 %v950_v20, 264  ;;  %952 = vbcast.lane.b32.xlu0 %v950_v20, 256  ;;  %v1056_v20 = vcombine.high %v1048_v34, %v1048_v34 }
 0x2bd   :  { %v1117_v34 = vmul.f32 %v4617_v13, %v1072_v50  ;;  %v1116_v12 = vmul.f32 %v5975_v38, %v1072_v50 }
 0x2be   :  { %v1080_v2 = vrot.slane %v1056_v20, %v5746_v39  ;;  %v7426_v20 = vld [vmem:[#allocation25_spill] sm:$0xff] }
 0x2c0   :  { %945 = vbcast.lane.b32.xlu1 %v939_v43, 264  ;;  %941 = vbcast.lane.b32.xlu0 %v939_v43, 256  ;;  %v4615_v43 = vld [vmem:[%s7330_s4 + $0x18] sm:$0x3]  ;;  %v1120_v14 = vmul.f32 %v5975_v38, %v1080_v2 }
 0x2c1   :  { %v1090_v11 = vmul.f32 %v4615_v43, %v1072_v50 }
 0x2c4   :  { %967 = vbcast.lane.b32.xlu1 %v961_v62, 264  ;;  %963 = vbcast.lane.b32.xlu0 %v961_v62, 256  ;;  %v1076_v62 = vrot.slane %v1055_v24, %v5746_v39 }
 0x2c6   :  { %v1092_v37 = vmul.f32 %v4615_v43, %v1076_v62  ;;  %v1119_v5 = vmul.f32 %v4617_v13, %v1076_v62  ;;  %v1118_v44 = vmul.f32 %v5975_v38, %v1076_v62 }
 0x2c8   :  { %978 = vbcast.lane.b32.xlu1 %v972_v21, 264  ;;  %974 = vbcast.lane.b32.xlu0 %v972_v21, 256  ;;  %v5970_v21 = vld [vmem:[%s7330_s4 + $0x10] sm:$0xff] }
 0x2c9   :  { %v1089_v6 = vmul.f32 %v5970_v21, %v1072_v50  ;;  %v1091_v25 = vmul.f32 %v5970_v21, %v1076_v62  ;;  %v1121_v50 = vmul.f32 %v4617_v13, %v1080_v2  ;;  %v1093_v19 = vmul.f32 %v5970_v21, %v1080_v2 }
 0x32e   :  { %v957_v59 = vpop.permute.xlu1 %956  ;;  %v953_v61 = vpop.permute.xlu0 %952 }
 0x32f   :  { %v1028_v52 = vmul.f32 %v1012_v30, %v957_v59  ;;  %v1027_v24 = vmul.f32 %v1012_v30, %v953_v61  ;;  %v1094_v61 = vmul.f32 %v4615_v43, %v1080_v2 }
 0x331   :  { %v1061_v49 = vmul.f32 %v1028_v52, %v5816_v16  ;;  %v1108_v45 = vmul.f32 %v1028_v52, %v5818_v22  ;;  %v1060_v32 = vmul.f32 %v1027_v24, %v7425_v40  ;;  %v1107_v59 = vmul.f32 %v1027_v24, %v7426_v20 }
 0x332   :  { %v946_v27 = vpop.permute.xlu1 %945  ;;  %v942_v30 = vpop.permute.xlu0 %941  ;;  %v1096_v52 = vmul.f32 %v4615_v43, %v5989_v3  ;;  %v1123_v24 = vmul.f32 %v4617_v13, %v5989_v3  ;;  %v7432_v43 = vld [vmem:[#allocation27_spill] sm:$0xff] }
 0x333   :  { %v5997_v62 = vadd.f32 %v1092_v37, %v1061_v49  ;;  %v5999_v58 = vadd.f32 %v1119_v5, %v1108_v45  ;;  %v6001_v39 = vadd.f32 %v1091_v25, %v1060_v32  ;;  %v6003_v16 = vadd.f32 %v1118_v44, %v1107_v59  ;;  %v7431_v49 = vld [vmem:[#allocation26_spill] sm:$0xff] }
 0x334   :  { %v1026_v22 = vmul.f32 %v1008_v4, %v946_v27  ;;  %v1025_v40 = vmul.f32 %v1008_v4, %v942_v30 }
 0x335   :  { %7427 = vst [vmem:[#allocation24_spill] sm:$0xff] %v5997_v62  ;;  %7428 = vst [vmem:[#allocation25_spill] sm:$0xff] %v5999_v58  ;;  %v1135_v20 = vmul.f32 %v5997_v62, %v5997_v62  ;;  %v1143_v2 = vmul.f32 %v5999_v58, %v5999_v58  ;;  %v1134_v5 = vmul.f32 %v6001_v39, %v6001_v39 }
 0x336   :  { %7429 = vst [vmem:[#allocation28_spill] sm:$0xff] %v6001_v39  ;;  %7430 = vst [vmem:[#allocation29_spill] sm:$0xff] %v6003_v16  ;;  %v1142_v32 = vmul.f32 %v6003_v16, %v6003_v16  ;;  %v1059_v45 = vmul.f32 %v1026_v22, %v5820_v56  ;;  %v1106_v27 = vmul.f32 %v1026_v22, %v5822_v31  ;;  %v968_v4 = vpop.permute.xlu1 %967  ;;  %v964_v25 = vpop.permute.xlu0 %963 }
 0x337   :  { %v1058_v37 = vmul.f32 %v1025_v40, %v7431_v49  ;;  %v1105_v13 = vmul.f32 %v1025_v40, %v7432_v43  ;;  %v1151_v44 = vadd.f32 %v1143_v2, %v1135_v20  ;;  %v1030_v30 = vmul.f32 %v1016_v0, %v968_v4 }
 0x338   :  { %v1150_v59 = vadd.f32 %v1142_v32, %v1134_v5  ;;  %v1029_v58 = vmul.f32 %v1016_v0, %v964_v25  ;;  %v6019_v62 = vadd.f32 %v1090_v11, %v1059_v45  ;;  %v6021_v39 = vadd.f32 %v1117_v34, %v1106_v27 }
 0x339   :  { %v6023_v48 = vadd.f32 %v1089_v6, %v1058_v37  ;;  %v6025_v16 = vadd.f32 %v1116_v12, %v1105_v13  ;;  %v1159_v56 = vmul.f32 %v1151_v44, %v5836_v46  ;;  %v1063_v22 = vmul.f32 %v1030_v30, %v5851_v51 }
 0x33a   :  { %v1158_v31 = vmul.f32 %v1150_v59, %v5814_v55  ;;  %v1110_v40 = vmul.f32 %v1030_v30, %v5854_v17  ;;  %v1133_v20 = vmul.f32 %v6019_v62, %v6019_v62  ;;  %v1141_v0 = vmul.f32 %v6021_v39, %v6021_v39  ;;  %v979_v34 = vpop.permute.xlu1 %978 }
 0x33b   :  { %v1132_v6 = vmul.f32 %v6023_v48, %v6023_v48  ;;  %v1140_v11 = vmul.f32 %v6025_v16, %v6025_v16  ;;  %v1174_v12 = vsel %vm53_vm3, %v1159_v56, 0.0  ;;  %v6041_v51 = vadd.f32 %v1094_v61, %v1063_v22  ;;  %v975_v56 = vpop.permute.xlu0 %974 }
 0x33c   :  { %v1173_v2 = vsel %vm51_vm1, %v1158_v31, 0.0  ;;  %v6043_v17 = vadd.f32 %v1121_v50, %v1110_v40  ;;  %v1149_v32 = vadd.f32 %v1141_v0, %v1133_v20  ;;  %v1062_v27 = vmul.f32 %v1029_v58, %v5838_v54 }
 0x33d   :  { %v1175_v5 = vadd.f32 %v1174_v12, %v1173_v2  ;;  %v1148_v45 = vadd.f32 %v1140_v11, %v1132_v6  ;;  %v1137_v49 = vmul.f32 %v6041_v51, %v6041_v51  ;;  %v1109_v43 = vmul.f32 %v1029_v58, %v5840_v1 }
 0x33e   :  { %v1145_v37 = vmul.f32 %v6043_v17, %v6043_v17  ;;  %v1032_v13 = vmul.f32 %v5981_v47, %v979_v34  ;;  %v1157_v61 = vmul.f32 %v1149_v32, %v5836_v46  ;;  %v6054_v25 = vadd.f32 %v1093_v19, %v1062_v27 }
 0x33f   :  { %v1176_v4 = vrot.slane %v1175_v5, 4  ;;  %v1156_v50 = vmul.f32 %v1148_v45, %v5814_v55  ;;  %v6056_v59 = vadd.f32 %v1120_v14, %v1109_v43  ;;  %v1095_v12 = vmul.f32 %v5970_v21, %v5989_v3 }
 0x340   :  { %v1153_v44 = vadd.f32 %v1145_v37, %v1137_v49  ;;  %v1065_v54 = vmul.f32 %v1032_v13, %v5870_v35  ;;  %v1112_v30 = vmul.f32 %v1032_v13, %v5879_v15  ;;  %v1165_v1 = vsel %vm53_vm3, %v1157_v61, 0.0 }
 0x341   :  { %v1177_v31 = vadd.f32 %v1176_v4, %v1175_v5  ;;  %v1164_v58 = vsel %vm51_vm1, %v1156_v50, 0.0  ;;  %v1136_v22 = vmul.f32 %v6054_v25, %v6054_v25  ;;  %v1144_v14 = vmul.f32 %v6056_v59, %v6056_v59 }
 0x342   :  { %v1166_v40 = vadd.f32 %v1165_v1, %v1164_v58  ;;  %v1161_v19 = vmul.f32 %v1153_v44, %v5836_v46  ;;  %v6067_v20 = vadd.f32 %v1096_v52, %v1065_v54  ;;  %v6069_v0 = vadd.f32 %v1123_v24, %v1112_v30 }
 0x343   :  { %v1178_v35 = vrot.slane %v1177_v31, 2  ;;  %v1031_v15 = vmul.f32 %v5981_v47, %v975_v56  ;;  %v1152_v11 = vadd.f32 %v1144_v14, %v1136_v22  ;;  %v1122_v24 = vmul.f32 %v5975_v38, %v5989_v3 }
 0x344   :  { %v1167_v6 = vrot.slane %v1166_v40, 4  ;;  %v1139_v34 = vmul.f32 %v6067_v20, %v6067_v20  ;;  %v1147_v2 = vmul.f32 %v6069_v0, %v6069_v0  ;;  %v1183_v47 = vsel %vm53_vm3, %v1161_v19, 0.0 }
 0x345   :  { %v1064_v5 = vmul.f32 %v1031_v15, %v5864_v26  ;;  %v1111_v52 = vmul.f32 %v1031_v15, %v5867_v33  ;;  %v1160_v45 = vmul.f32 %v1152_v11, %v5814_v55  ;;  %v1179_v27 = vadd.f32 %v1178_v35, %v1177_v31 }
 0x346   :  { %v1168_v32 = vadd.f32 %v1167_v6, %v1166_v40  ;;  %v1155_v49 = vadd.f32 %v1147_v2, %v1139_v34 }
 0x347   :  { %v6084_v37 = vadd.f32 %v1095_v12, %v1064_v5  ;;  %v6086_v21 = vadd.f32 %v1122_v24, %v1111_v52  ;;  %v1182_v13 = vsel %vm51_vm1, %v1160_v45, 0.0  ;;  %v1180_v61 = vrot.slane %v1179_v27, 1 }
 0x348   :  { %v1169_v43 = vrot.slane %v1168_v32, 2  ;;  %v1184_v26 = vadd.f32 %v1183_v47, %v1182_v13  ;;  %v1163_v38 = vmul.f32 %v1155_v49, %v5836_v46 }
 0x349   :  { %v1138_v33 = vmul.f32 %v6084_v37, %v6084_v37  ;;  %v1146_v3 = vmul.f32 %v6086_v21, %v6086_v21  ;;  %v1181_v1 = vadd.f32 %v1180_v61, %v1179_v27 }
 0x34a   :  { %v1170_v4 = vadd.f32 %v1169_v43, %v1168_v32  ;;  %v1185_v50 = vrot.slane %v1184_v26, 4  ;;  %v1192_v56 = vsel %vm53_vm3, %v1163_v38, 0.0  ;;  %v924_v32 = vrot.slane %v5943_v42, 4 }
 0x34b   :  { %v1154_v54 = vadd.f32 %v1146_v3, %v1138_v33  ;;  %v1201_v35 = vadd.f32 %v5892_v29, %v1181_v1  ;;  %v7434_v1 = vld [vmem:[#allocation11_spill] sm:$0xff] }
 0x34c   :  { %v1171_v44 = vrot.slane %v1170_v4, 1  ;;  %v1186_v30 = vadd.f32 %v1185_v50, %v1184_v26  ;;  %v926_v49 = vmul.f32 0.16666667, %v924_v32 }
 0x34d   :  { %v1162_v31 = vmul.f32 %v1154_v54, %v5814_v55  ;;  %5315 = vtanh.f32 %v1201_v35  ;;  %v7440_v35 = vld [vmem:[#allocation18_spill] sm:$0xff] }
 0x34e   :  { %v1187_v58 = vrot.slane %v1186_v30, 2  ;;  %v1172_v22 = vadd.f32 %v1171_v44, %v1170_v4  ;;  %v927_v26 = vadd.f32 0.5, %v926_v49  ;;  %v4620_v49 = vld [vmem:[%s7326_s0 + $0x38] sm:$0xf] }
 0x34f   :  { %v1191_v40 = vsel %vm51_vm1, %v1162_v31, 0.0  ;;  %v7433_v31 = vld [vmem:[#allocation17_spill] sm:$0xff] }
 0x350   :  { %v1188_v19 = vadd.f32 %v1187_v58, %v1186_v30  ;;  %v1193_v14 = vadd.f32 %v1192_v56, %v1191_v40  ;;  %v1200_v11 = vadd.f32 %v5892_v29, %v1172_v22  ;;  %v928_v3 = vmax.f32 %v927_v26, 0.0  ;;  %v7435_v58 = vld [vmem:[#allocation12_spill] sm:$0xff]  ;;  %v7436_v22 = vld [vmem:[#allocation13_spill] sm:$0xff]  ;;  %v7437_v40 = vld [vmem:[#allocation14_spill] sm:$0xff] }
 0x352   :  { %v1189_v15 = vrot.slane %v1188_v19, 1  ;;  %v1194_v6 = vrot.slane %v1193_v14, 4  ;;  %5317 = vtanh.f32 %v1200_v11 }
 0x354   :  { %v1190_v34 = vadd.f32 %v1189_v15, %v1188_v19  ;;  %v1195_v12 = vadd.f32 %v1194_v6, %v1193_v14  ;;  %v7438_v19 = vld [vmem:[#allocation15_spill] sm:$0xff]  ;;  %v7439_v14 = vld [vmem:[#allocation16_spill] sm:$0xff]  ;;  %v7441_v15 = vld [vmem:[#allocation9_spill] sm:$0xff] }
 0x356   :  { %v1202_v2 = vadd.f32 %v5892_v29, %v1190_v34  ;;  %v1196_v5 = vrot.slane %v1195_v12, 2  ;;  %v4618_v34 = vld [vmem:[%s7326_s0 + $0x28] sm:$0xff] }
 0x357   :  { %v5316_v45 = vpop.eup %5315 }
 0x358   :  { %5319 = vtanh.f32 %v1202_v2  ;;  %v1197_v55 = vadd.f32 %v1196_v5, %v1195_v12  ;;  %v1212_v13 = vrot.slane %v5316_v45, 7  ;;  %v4619_v2 = vld [vmem:[%s7326_s0 + $0x30] sm:$0xff] }
 0x35a   :  { %v1198_v52 = vrot.slane %v1197_v55, 1 }
 0x35c   :  { %v1199_v24 = vadd.f32 %v1198_v52, %v1197_v55  ;;  %v5318_v27 = vpop.eup %5317 }
 0x35d   :  { %v1213_v33 = vsel %vm666_vm4, %v1212_v13, %v5318_v27 }
 0x35e   :  { %v1203_v47 = vadd.f32 %v5892_v29, %v1199_v24  ;;  %v1214_v38 = vsel %vm668_vm5, %v1212_v13, %v1213_v33  ;;  %v929_v29 = vmin.f32 %v928_v3, 1.0 }
 0x360   :  { %5321 = vtanh.f32 %v1203_v47 }
 0x362   :  { %v5320_v43 = vpop.eup %5319 }
 0x363   :  { %v1215_v4 = vrot.slane %v5320_v43, 6 }
 0x365   :  { %v1216_v61 = vsel %vm671_vm6, %v1215_v4, %v1214_v38 }
 0x366   :  { %v1217_v42 = vsel %vm673_vm7, %v1215_v4, %v1216_v61 }
 0x36a   :  { %v5322_v50 = vpop.eup %5321 }
 0x36b   :  { %v1218_v44 = vrot.slane %v5322_v50, 5 }
 0x36d   :  { %v1219_v54 = vsel %vm676_vm8, %v1218_v44, %v1217_v42  ;;  %v7442_v42 = vld [vmem:[#allocation19_spill] sm:$0xff] }
 0x36e   :  { %v1220_v30 = vsel %vm678_vm9, %v1218_v44, %v1219_v54  ;;  %v7443_v54 = vld [vmem:[#allocation20_spill] sm:$0xff] }
 0x36f   :  { %v1222_v56 = vmul.f32 %v1220_v30, %v929_v29 }
 0x371   :  { %4621 = vmatmul.mubr.msk.f32.vlgmr.msra.gmra.mrb[6].mxu0 %vm51_vm1, %v1222_v56  ;;  %4622 = vmatmul.mubr.msk.f32.vlgmr.msra.gmra.mrb[6].mxu1 %vm51_vm1, %v1222_v56 }
 0x372   :  { %5054 = vmatpush3.bf16.msra.mxu0 %v5656_v53  ;;  %4815 = vmatprep.mubr.msk.f32.mxu0 %vm5425_vm2, %v7420_v7 }
 0x373   :  { %5055 = vmatprep.subr.bf16.mxu0 %v7421_v8  ;;  %5067 = vmatpush1.bf16.msra.mxu1 %v5529_v10 }
 0x374   :  { %5069 = vmatprep.subr.bf16.mxu1 %v5554_v18  ;;  %1835 = vmatprep.mubr.f32.mxu1 %v7420_v7 }
 0x376   :  { %5057 = vmatpush3.bf16.msra.mxu0 %v5670_v57 }
 0x377   :  { %5058 = vmatprep.subr.bf16.mxu0 %v7421_v8  ;;  %5071 = vmatpush1.bf16.msra.mxu1 %v5568_v23 }
 0x378   :  { %5073 = vmatprep.subr.bf16.mxu1 %v5583_v28 }
 0x37a   :  { %5060 = vmatpush3.bf16.msra.mxu0 %v5685_v60 }
 0x37b   :  { %5061 = vmatprep.subr.bf16.mxu0 %v7421_v8  ;;  %5075 = vmatpush1.bf16.msra.mxu1 %v5606_v36 }
 0x37c   :  { %5077 = vmatprep.subr.bf16.mxu1 %v5621_v41 }
 0x37e   :  { %5063 = vmatpush3.bf16.msra.mxu0 %v5697_v63 }
 0x37f   :  { %5081 = vmatprep.subr.bf16.mxu0 %v5527_v9  ;;  %5079 = vmatpush1.bf16.msra.mxu1 %v7433_v31 }
 0x380   :  { %5096 = vmatprep.subr.bf16.mxu1 %v7421_v8 }
 0x381   :  { %4816 = vmatmul.mubr.msk.f32.vlgmr.msra.gmra.mrb[8].mxu0 %vm51_vm1, %v1222_v56  ;;  %v7444_v56 = vld [vmem:[#allocation21_spill] sm:$0xff] }
 0x382   :  { %5083 = vmatpush1.bf16.msra.mxu0 %v7434_v1  ;;  %1906 = vmatprep.mubr.f32.mxu0 %v7420_v7 }
 0x383   :  { %5085 = vmatprep.subr.bf16.mxu0 %v7435_v58 }
 0x386   :  { %5087 = vmatpush1.bf16.msra.mxu0 %v7436_v22 }
 0x387   :  { %5089 = vmatprep.subr.bf16.mxu0 %v7437_v40 }
 0x38a   :  { %5091 = vmatpush1.bf16.msra.mxu0 %v7438_v19  ;;  %v7449_v19 = vld [vmem:[#allocation28_spill] sm:$0xff] }
 0x38b   :  { %5093 = vmatprep.subr.bf16.mxu0 %v7439_v14 }
 0x38e   :  { %5095 = vmatpush1.bf16.msra.mxu0 %v7440_v35  ;;  %v7448_v35 = vld [vmem:[#allocation25_spill] sm:$0xff] }
 0x38f   :  { %5109 = vmatprep.subr.bf16.mxu0 %v7441_v15 }
 0x444   :  { %v1296_v6 = vpop.f32.mrb[6].mxu0  ;;  %v1367_v11 = vpop.f32.mrb[6].mxu1 }
 0x445   :  { %v1298_v12 = vpop.f32.mrb[7].mxu0  ;;  %v1369_v5 = vpop.f32.mrb[7].mxu1 }
 0x446   :  { %v1446_v55 = vcombine.low %v1296_v6, %v1298_v12  ;;  %v1447_v52 = vcombine.low %v1367_v11, %v1369_v5  ;;  %v7445_v11 = vld [vmem:[#allocation22_spill] sm:$0xff] }
 0x448   :  { %v1450_v24 = vadd.f32 %v4618_v34, %v1446_v55  ;;  %v6145_v32 = vadd.f32 %v4619_v2, %v1447_v52 }
 0x44a   :  { %v1453_v47 = vmul.f32 0.16666667, %v1450_v24  ;;  %5323 = vtanh.f32 %v6145_v32  ;;  %v1458_v12 = vrot.slane %v1450_v24, 4 }
 0x44c   :  { %v1454_v45 = vadd.f32 0.5, %v1453_v47  ;;  %v1460_v2 = vmul.f32 0.16666667, %v1458_v12  ;;  %v7446_v47 = vld [vmem:[#allocation23_spill] sm:$0xff] }
 0x44e   :  { %v1455_v27 = vmax.f32 %v1454_v45, 0.0  ;;  %v1461_v5 = vadd.f32 0.5, %v1460_v2 }
 0x450   :  { %v1456_v43 = vmin.f32 %v1455_v27, 1.0  ;;  %v1462_v55 = vmax.f32 %v1461_v5, 0.0 }
 0x452   :  { %v1463_v52 = vmin.f32 %v1462_v55, 1.0 }
 0x454   :  { %v5324_v13 = vpop.eup %5323  ;;  %v1438_v26 = vpop.f32.mrb[8].mxu0  ;;  %v1528_v45 = vrot.slane %v1463_v52, %v7446_v47 }
 0x455   :  { %v1476_v33 = vmul.f32 %v5324_v13, %v1456_v43  ;;  %v1452_v4 = vadd.f32 %v4620_v49, %v1438_v26  ;;  %v4817_v38 = vpop.f32.mrb[9].mxu0 }
 0x456   :  { %v1529_v49 = vcombine.high %v1528_v45, %v1528_v45  ;;  %v1536_v26 = vrot.slane %v1528_v45, %v7446_v47 }
 0x457   :  { %v1471_v3 = vmul.f32 0.16666667, %v1452_v4  ;;  %v1581_v27 = vrot.slane %v1476_v33, %v7446_v47 }
 0x458   :  { %v1543_v13 = vrot.slane %v1529_v49, %v7446_v47  ;;  %v1549_v2 = vrot.slane %v1536_v26, %v7443_v54 }
 0x459   :  { %v1472_v61 = vadd.f32 0.5, %v1471_v3  ;;  %v1582_v43 = vcombine.high %v1581_v27, %v1581_v27  ;;  %v1589_v4 = vrot.slane %v1581_v27, %v7446_v47  ;;  %v1544_v3 = vcombine.high %v1536_v26, %v1536_v26 }
 0x45a   :  { %v1545_v24 = vcombine.high %v1543_v13, %v1543_v13  ;;  %v1553_v12 = vrot.slane %v1543_v13, %v7443_v54 }
 0x45b   :  { %v1473_v50 = vmax.f32 %v1472_v61, 0.0  ;;  %v1596_v38 = vrot.slane %v1582_v43, %v7446_v47  ;;  %v1613_v61 = vrot.slane %v1589_v4, %v7443_v54  ;;  %v1557_v5 = vrot.slane %v1544_v3, %v7443_v54 }
 0x45c   :  { %v6183_v55 = vrot.slane %v1545_v24, %v7443_v54 }
 0x45d   :  { %v1474_v44 = vmin.f32 %v1473_v50, 1.0  ;;  %v1597_v50 = vcombine.high %v1589_v4, %v1589_v4  ;;  %v1617_v33 = vrot.slane %v1596_v38, %v7443_v54 }
 0x45f   :  { %v1491_v29 = vrot.slane %v1474_v44, %v7442_v42  ;;  %v1480_v30 = vrot.slane %v1474_v44, %v7443_v54  ;;  %v1502_v6 = vrot.slane %v1474_v44, %v7444_v56  ;;  %v1513_v34 = vrot.slane %v1474_v44, %v7445_v11  ;;  %v4625_v44 = vld [vmem:[%s7330_s4 + $0x28] sm:$0x3]  ;;  %v7447_v42 = vld [vmem:[#allocation24_spill] sm:$0xff] }
 0x460   :  { %v1631_v27 = vmul.f32 %v4625_v44, %v1613_v61  ;;  %v1621_v4 = vrot.slane %v1597_v50, %v7443_v54  ;;  %v1633_v47 = vmul.f32 %v4625_v44, %v1617_v33  ;;  %v7450_v50 = vld [vmem:[#allocation29_spill] sm:$0xff] }
 0x461   :  { %1497 = vbcast.lane.b32.xlu1 %v1491_v29, 264  ;;  %1493 = vbcast.lane.b32.xlu0 %v1491_v29, 256  ;;  %v4627_v29 = vld [vmem:[%s7331_s5 + $0x28] sm:$0x3] }
 0x462   :  { %v1658_v49 = vmul.f32 %v4627_v29, %v1613_v61  ;;  %v1660_v56 = vmul.f32 %v4627_v29, %v1617_v33 }
 0x465   :  { %1486 = vbcast.lane.b32.xlu1 %v1480_v30, 264  ;;  %1482 = vbcast.lane.b32.xlu0 %v1480_v30, 256  ;;  %v6172_v30 = vld [vmem:[%s7330_s4 + $0x20] sm:$0xff] }
 0x466   :  { %v1630_v43 = vmul.f32 %v6172_v30, %v1613_v61  ;;  %v1632_v26 = vmul.f32 %v6172_v30, %v1617_v33  ;;  %v1634_v58 = vmul.f32 %v6172_v30, %v1621_v4 }
 0x469   :  { %1508 = vbcast.lane.b32.xlu1 %v1502_v6, 264  ;;  %1504 = vbcast.lane.b32.xlu0 %v1502_v6, 256  ;;  %v6177_v6 = vld [vmem:[%s7331_s5 + $0x20] sm:$0xff] }
 0x46a   :  { %v1657_v13 = vmul.f32 %v6177_v6, %v1613_v61  ;;  %v1659_v3 = vmul.f32 %v6177_v6, %v1617_v33  ;;  %v1662_v61 = vmul.f32 %v4627_v29, %v1621_v4  ;;  %v1661_v1 = vmul.f32 %v6177_v6, %v1621_v4 }
 0x46d   :  { %1519 = vbcast.lane.b32.xlu1 %v1513_v34, 264  ;;  %1515 = vbcast.lane.b32.xlu0 %v1513_v34, 256  ;;  %v1598_v34 = vcombine.high %v1596_v38, %v1596_v38 }
 0x46f   :  { %v6191_v24 = vrot.slane %v1598_v34, %v7443_v54 }
 0x4d3   :  { %v1498_v52 = vpop.permute.xlu1 %1497  ;;  %v1494_v45 = vpop.permute.xlu0 %1493 }
 0x4d4   :  { %v1569_v11 = vmul.f32 %v1553_v12, %v1498_v52  ;;  %v1568_v38 = vmul.f32 %v1553_v12, %v1494_v45  ;;  %v1635_v45 = vmul.f32 %v4625_v44, %v1621_v4 }
 0x4d6   :  { %v1602_v15 = vmul.f32 %v1569_v11, %v7447_v42  ;;  %v1649_v14 = vmul.f32 %v1569_v11, %v7448_v35  ;;  %v1601_v40 = vmul.f32 %v1568_v38, %v7449_v19  ;;  %v1648_v22 = vmul.f32 %v1568_v38, %v7450_v50 }
 0x4d7   :  { %v1487_v52 = vpop.permute.xlu1 %1486  ;;  %v1483_v12 = vpop.permute.xlu0 %1482  ;;  %v1637_v11 = vmul.f32 %v4625_v44, %v6191_v24  ;;  %v1664_v38 = vmul.f32 %v4627_v29, %v6191_v24 }
 0x4d8   :  { %v6199_v33 = vadd.f32 %v1633_v47, %v1602_v15  ;;  %v6201_v34 = vadd.f32 %v1660_v56, %v1649_v14  ;;  %v6203_v54 = vadd.f32 %v1632_v26, %v1601_v40  ;;  %v6205_v42 = vadd.f32 %v1659_v3, %v1648_v22 }
 0x4d9   :  { %v1567_v35 = vmul.f32 %v1549_v2, %v1487_v52  ;;  %v1566_v19 = vmul.f32 %v1549_v2, %v1483_v12 }
 0x4da   :  { %7451 = vst [vmem:[#allocation26_spill] sm:$0xff] %v6201_v34  ;;  %7452 = vst [vmem:[#allocation27_spill] sm:$0xff] %v6203_v54  ;;  %v1676_v50 = vmul.f32 %v6199_v33, %v6199_v33  ;;  %v1684_v4 = vmul.f32 %v6201_v34, %v6201_v34  ;;  %v1675_v14 = vmul.f32 %v6203_v54, %v6203_v54 }
 0x4db   :  { %7453 = vst [vmem:[#allocation24_spill] sm:$0xff] %v6205_v42  ;;  %v1683_v40 = vmul.f32 %v6205_v42, %v6205_v42  ;;  %v1600_v22 = vmul.f32 %v1567_v35, %v6019_v62  ;;  %v1647_v15 = vmul.f32 %v1567_v35, %v6021_v39  ;;  %v1599_v56 = vmul.f32 %v1566_v19, %v6023_v48  ;;  %v1509_v44 = vpop.permute.xlu1 %1508  ;;  %v1505_v29 = vpop.permute.xlu0 %1504  ;;  %v6230_v62 = vld [vmem:[#allocation6] sm:$0xff] }
 0x4dc   :  { %v1646_v47 = vmul.f32 %v1566_v19, %v6025_v16  ;;  %v1692_v2 = vadd.f32 %v1684_v4, %v1676_v50  ;;  %v1571_v3 = vmul.f32 %v1557_v5, %v1509_v44  ;;  %v1570_v52 = vmul.f32 %v1557_v5, %v1505_v29 }
 0x4dd   :  { %v1691_v26 = vadd.f32 %v1683_v40, %v1675_v14  ;;  %v6221_v12 = vadd.f32 %v1631_v27, %v1600_v22  ;;  %v6223_v54 = vadd.f32 %v1658_v49, %v1647_v15  ;;  %v6225_v34 = vadd.f32 %v1630_v43, %v1599_v56 }
 0x4de   :  { %v6227_v42 = vadd.f32 %v1657_v13, %v1646_v47  ;;  %v1700_v39 = vmul.f32 %v1692_v2, %v5836_v46  ;;  %v1604_v16 = vmul.f32 %v1571_v3, %v6041_v51  ;;  %v1651_v35 = vmul.f32 %v1571_v3, %v6043_v17 }
 0x4df   :  { %v1699_v48 = vmul.f32 %v6230_v62, %v1691_v26  ;;  %v1674_v5 = vmul.f32 %v6221_v12, %v6221_v12  ;;  %v1682_v27 = vmul.f32 %v6223_v54, %v6223_v54  ;;  %v1673_v49 = vmul.f32 %v6225_v34, %v6225_v34  ;;  %v1520_v43 = vpop.permute.xlu1 %1519 }
 0x4e0   :  { %v1681_v46 = vmul.f32 %v6227_v42, %v6227_v42  ;;  %v1715_v13 = vsel %vm53_vm3, %v1700_v39, 0.0  ;;  %v6245_v51 = vadd.f32 %v1635_v45, %v1604_v16  ;;  %v6247_v17 = vadd.f32 %v1662_v61, %v1651_v35  ;;  %v6256_v45 = vld [vmem:[#allocation6 + $0x8] sm:$0x3] }
 0x4e1   :  { %v1714_v19 = vsel %vm51_vm1, %v1699_v48, 0.0  ;;  %v1690_v4 = vadd.f32 %v1682_v27, %v1674_v5  ;;  %v1603_v40 = vmul.f32 %v1570_v52, %v6054_v25  ;;  %v1650_v56 = vmul.f32 %v1570_v52, %v6056_v59  ;;  %v1516_v48 = vpop.permute.xlu0 %1515 }
 0x4e2   :  { %v1716_v50 = vadd.f32 %v1715_v13, %v1714_v19  ;;  %v1689_v14 = vadd.f32 %v1681_v46, %v1673_v49  ;;  %v1678_v22 = vmul.f32 %v6245_v51, %v6245_v51  ;;  %v1686_v15 = vmul.f32 %v6247_v17, %v6247_v17 }
 0x4e3   :  { %v1573_v47 = vmul.f32 %v6183_v55, %v1520_v43  ;;  %v1698_v61 = vmul.f32 %v6256_v45, %v1690_v4  ;;  %v6260_v2 = vadd.f32 %v1634_v58, %v1603_v40  ;;  %v6262_v26 = vadd.f32 %v1661_v1, %v1650_v56 }
 0x4e4   :  { %v1717_v44 = vrot.slane %v1716_v50, 4  ;;  %v1697_v29 = vmul.f32 %v6230_v62, %v1689_v14  ;;  %v1694_v25 = vadd.f32 %v1686_v15, %v1678_v22  ;;  %v1636_v19 = vmul.f32 %v6172_v30, %v6191_v24 }
 0x4e5   :  { %v1606_v3 = vmul.f32 %v1573_v47, %v6067_v20  ;;  %v1653_v39 = vmul.f32 %v1573_v47, %v6069_v0  ;;  %v1706_v52 = vsel %vm53_vm3, %v1698_v61, 0.0  ;;  %v1677_v35 = vmul.f32 %v6260_v2, %v6260_v2 }
 0x4e6   :  { %v1718_v59 = vadd.f32 %v1717_v44, %v1716_v50  ;;  %v1705_v16 = vsel %vm51_vm1, %v1697_v29, 0.0  ;;  %v1702_v58 = vmul.f32 %v6256_v45, %v1694_v25  ;;  %v1685_v1 = vmul.f32 %v6262_v26, %v6262_v26 }
 0x4e7   :  { %v1707_v5 = vadd.f32 %v1706_v52, %v1705_v16  ;;  %v6273_v27 = vadd.f32 %v1637_v11, %v1606_v3  ;;  %v6275_v49 = vadd.f32 %v1664_v38, %v1653_v39  ;;  %v1572_v0 = vmul.f32 %v6183_v55, %v1516_v48 }
 0x4e8   :  { %v1719_v20 = vrot.slane %v1718_v59, 2  ;;  %v1693_v43 = vadd.f32 %v1685_v1, %v1677_v35  ;;  %v1663_v11 = vmul.f32 %v6177_v6, %v6191_v24  ;;  %v1724_v55 = vsel %vm53_vm3, %v1702_v58, 0.0 }
 0x4e9   :  { %v1708_v46 = vrot.slane %v1707_v5, 4  ;;  %v1680_v13 = vmul.f32 %v6273_v27, %v6273_v27  ;;  %v1688_v50 = vmul.f32 %v6275_v49, %v6275_v49  ;;  %v1605_v4 = vmul.f32 %v1572_v0, %v6084_v37 }
 0x4ea   :  { %v1652_v38 = vmul.f32 %v1572_v0, %v6086_v21  ;;  %v1701_v40 = vmul.f32 %v6230_v62, %v1693_v43  ;;  %v1720_v22 = vadd.f32 %v1719_v20, %v1718_v59  ;;  %v6306_v0 = vld [vmem:[%s7329_s3] ss:$0 sm:$0xff] }
 0x4eb   :  { %v1709_v14 = vadd.f32 %v1708_v46, %v1707_v5  ;;  %v1696_v15 = vadd.f32 %v1688_v50, %v1680_v13  ;;  %v6290_v56 = vadd.f32 %v1636_v19, %v1605_v4 }
 0x4ec   :  { %v6292_v30 = vadd.f32 %v1663_v11, %v1652_v38  ;;  %v1723_v44 = vsel %vm51_vm1, %v1701_v40, 0.0  ;;  %v1721_v29 = vrot.slane %v1720_v22, 1 }
 0x4ed   :  { %v1710_v47 = vrot.slane %v1709_v14, 2  ;;  %v1725_v61 = vadd.f32 %v1724_v55, %v1723_v44  ;;  %v1679_v37 = vmul.f32 %v6290_v56, %v6290_v56  ;;  %v1704_v21 = vmul.f32 %v6256_v45, %v1696_v15 }
 0x4ee   :  { %v1687_v24 = vmul.f32 %v6292_v30, %v6292_v30  ;;  %v1722_v16 = vadd.f32 %v1721_v29, %v1720_v22  ;;  %v1465_v22 = vrot.slane %v6145_v32, 4 }
 0x4ef   :  { %v1711_v6 = vadd.f32 %v1710_v47, %v1709_v14  ;;  %v1726_v25 = vrot.slane %v1725_v61, 4  ;;  %v1733_v59 = vsel %vm53_vm3, %v1704_v21, 0.0 }
 0x4f0   :  { %v1695_v39 = vadd.f32 %v1687_v24, %v1679_v37  ;;  %v1742_v46 = vadd.f32 %v6306_v0, %v1722_v16 }
 0x4f1   :  { %v1712_v3 = vrot.slane %v1711_v6, 1  ;;  %v1727_v48 = vadd.f32 %v1726_v25, %v1725_v61  ;;  %v1467_v61 = vmul.f32 0.16666667, %v1465_v22 }
 0x4f2   :  { %v1703_v52 = vmul.f32 %v6230_v62, %v1695_v39  ;;  %5325 = vtanh.f32 %v1742_v46  ;;  %v7457_v46 = vld [vmem:[#allocation14_spill] sm:$0xff] }
 0x4f3   :  { %v1728_v35 = vrot.slane %v1727_v48, 2  ;;  %v1713_v5 = vadd.f32 %v1712_v3, %v1711_v6  ;;  %v1468_v21 = vadd.f32 0.5, %v1467_v61 }
 0x4f4   :  { %v1732_v58 = vsel %vm51_vm1, %v1703_v52, 0.0 }
 0x4f5   :  { %v1729_v1 = vadd.f32 %v1728_v35, %v1727_v48  ;;  %v1734_v20 = vadd.f32 %v1733_v59, %v1732_v58  ;;  %v1741_v19 = vadd.f32 %v6306_v0, %v1713_v5  ;;  %v1469_v3 = vmax.f32 %v1468_v21, 0.0  ;;  %v7454_v58 = vld [vmem:[#allocation11_spill] sm:$0xff] }
 0x4f6   :  { %v4630_v21 = vld [vmem:[%s7326_s0 + $0x4c] sm:$0xf] }
 0x4f7   :  { %v1730_v43 = vrot.slane %v1729_v1, 1  ;;  %v1735_v13 = vrot.slane %v1734_v20, 4  ;;  %5327 = vtanh.f32 %v1741_v19  ;;  %v1470_v52 = vmin.f32 %v1469_v3, 1.0  ;;  %v7460_v19 = vld [vmem:[#allocation18_spill] sm:$0xff] }
 0x4f9   :  { %v1731_v50 = vadd.f32 %v1730_v43, %v1729_v1  ;;  %v1736_v11 = vadd.f32 %v1735_v13, %v1734_v20  ;;  %v7455_v1 = vld [vmem:[#allocation12_spill] sm:$0xff]  ;;  %v7456_v20 = vld [vmem:[#allocation13_spill] sm:$0xff]  ;;  %v7458_v43 = vld [vmem:[#allocation15_spill] sm:$0xff] }
 0x4fa   :  { %v7459_v13 = vld [vmem:[#allocation16_spill] sm:$0xff] }
 0x4fb   :  { %v1743_v4 = vadd.f32 %v6306_v0, %v1731_v50  ;;  %v1737_v38 = vrot.slane %v1736_v11, 2  ;;  %v7461_v50 = vld [vmem:[#allocation9_spill] sm:$0xff] }
 0x4fc   :  { %v5326_v47 = vpop.eup %5325 }
 0x4fd   :  { %5329 = vtanh.f32 %v1743_v4  ;;  %v1738_v14 = vadd.f32 %v1737_v38, %v1736_v11  ;;  %v1753_v6 = vrot.slane %v5326_v47, 7  ;;  %v4628_v38 = vld [vmem:[%s7326_s0 + $0x3c] sm:$0xff] }
 0x4ff   :  { %v1739_v55 = vrot.slane %v1738_v14, 1 }
 0x501   :  { %v1740_v40 = vadd.f32 %v1739_v55, %v1738_v14  ;;  %v5328_v44 = vpop.eup %5327  ;;  %v4629_v55 = vld [vmem:[%s7326_s0 + $0x44] sm:$0xff] }
 0x502   :  { %v1754_v24 = vsel %vm666_vm4, %v1753_v6, %v5328_v44 }
 0x503   :  { %v1744_v15 = vadd.f32 %v6306_v0, %v1740_v40  ;;  %v1755_v25 = vsel %vm668_vm5, %v1753_v6, %v1754_v24 }
 0x505   :  { %5331 = vtanh.f32 %v1744_v15 }
 0x507   :  { %v5330_v37 = vpop.eup %5329 }
 0x508   :  { %v1756_v29 = vrot.slane %v5330_v37, 6 }
 0x50a   :  { %v1757_v39 = vsel %vm671_vm6, %v1756_v29, %v1755_v25 }
 0x50b   :  { %v1758_v32 = vsel %vm673_vm7, %v1756_v29, %v1757_v39 }
 0x50f   :  { %v5332_v48 = vpop.eup %5331 }
 0x510   :  { %v1759_v59 = vrot.slane %v5332_v48, 5 }
 0x512   :  { %v1760_v16 = vsel %vm676_vm8, %v1759_v59, %v1758_v32 }
 0x513   :  { %v1761_v35 = vsel %vm678_vm9, %v1759_v59, %v1760_v16 }
 0x514   :  { %v1763_v5 = vmul.f32 %v1761_v35, %v1470_v52  ;;  %v7462_v35 = vld [vmem:[#allocation19_spill] sm:$0xff] }
 0x516   :  { %4631 = vmatmul.mubr.msk.f32.vlgmr.msra.gmra.mrb[8].mxu1 %vm51_vm1, %v1763_v5  ;;  %4632 = vmatmul.mubr.msk.f32.vlgmr.msra.gmra.mrb[10].mxu0 %vm51_vm1, %v1763_v5 }
 0x517   :  { %5098 = vmatpush3.bf16.msra.mxu1 %v5656_v53  ;;  %4834 = vmatprep.mubr.msk.f32.mxu1 %vm5425_vm2, %v7420_v7 }
 0x518   :  { %5099 = vmatprep.subr.bf16.mxu1 %v7421_v8  ;;  %5111 = vmatpush1.bf16.msra.mxu0 %v5529_v10 }
 0x519   :  { %5113 = vmatprep.subr.bf16.mxu0 %v5554_v18  ;;  %2376 = vmatprep.mubr.f32.mxu0 %v7420_v7 }
 0x51b   :  { %5101 = vmatpush3.bf16.msra.mxu1 %v5670_v57 }
 0x51c   :  { %5102 = vmatprep.subr.bf16.mxu1 %v7421_v8  ;;  %5115 = vmatpush1.bf16.msra.mxu0 %v5568_v23 }
 0x51d   :  { %5117 = vmatprep.subr.bf16.mxu0 %v5583_v28 }
 0x51f   :  { %5104 = vmatpush3.bf16.msra.mxu1 %v5685_v60 }
 0x520   :  { %5105 = vmatprep.subr.bf16.mxu1 %v7421_v8  ;;  %5119 = vmatpush1.bf16.msra.mxu0 %v5606_v36 }
 0x521   :  { %5121 = vmatprep.subr.bf16.mxu0 %v5621_v41 }
 0x523   :  { %5107 = vmatpush3.bf16.msra.mxu1 %v5697_v63 }
 0x524   :  { %5125 = vmatprep.subr.bf16.mxu1 %v5527_v9  ;;  %5123 = vmatpush1.bf16.msra.mxu0 %v7433_v31 }
 0x525   :  { %5140 = vmatprep.subr.bf16.mxu0 %v7421_v8 }
 0x526   :  { %4835 = vmatmul.mubr.msk.f32.vlgmr.msra.gmra.mrb[10].mxu1 %vm51_vm1, %v1763_v5 }
 0x527   :  { %5127 = vmatpush1.bf16.msra.mxu1 %v7454_v58  ;;  %2447 = vmatprep.mubr.f32.mxu1 %v7420_v7 }
 0x528   :  { %5129 = vmatprep.subr.bf16.mxu1 %v7455_v1 }
 0x52b   :  { %5131 = vmatpush1.bf16.msra.mxu1 %v7456_v20  ;;  %v7468_v20 = vld [vmem:[#allocation27_spill] sm:$0xff] }
 0x52c   :  { %5133 = vmatprep.subr.bf16.mxu1 %v7457_v46 }
 0x52f   :  { %5135 = vmatpush1.bf16.msra.mxu1 %v7458_v43  ;;  %v7467_v43 = vld [vmem:[#allocation26_spill] sm:$0xff] }
 0x530   :  { %5137 = vmatprep.subr.bf16.mxu1 %v7459_v13 }
 0x533   :  { %5139 = vmatpush1.bf16.msra.mxu1 %v7460_v19 }
 0x534   :  { %5153 = vmatprep.subr.bf16.mxu1 %v7461_v50 }
 0x5e9   :  { %v1837_v11 = vpop.f32.mrb[8].mxu1  ;;  %v1908_v4 = vpop.f32.mrb[10].mxu0 }
 0x5ea   :  { %v1839_v14 = vpop.f32.mrb[9].mxu1  ;;  %v1910_v40 = vpop.f32.mrb[11].mxu0 }
 0x5eb   :  { %v1987_v22 = vcombine.low %v1837_v11, %v1839_v14  ;;  %v1988_v15 = vcombine.low %v1908_v4, %v1910_v40  ;;  %v7463_v11 = vld [vmem:[#allocation20_spill] sm:$0xff] }
 0x5ed   :  { %v1991_v47 = vadd.f32 %v4628_v38, %v1987_v22  ;;  %v6356_v44 = vadd.f32 %v4629_v55, %v1988_v15  ;;  %v7464_v38 = vld [vmem:[#allocation21_spill] sm:$0xff]  ;;  %v7465_v55 = vld [vmem:[#allocation22_spill] sm:$0xff] }
 0x5ef   :  { %v1994_v61 = vmul.f32 0.16666667, %v1991_v47  ;;  %5333 = vtanh.f32 %v6356_v44  ;;  %v1999_v22 = vrot.slane %v1991_v47, 4 }
 0x5f1   :  { %v1995_v37 = vadd.f32 0.5, %v1994_v61  ;;  %v2001_v15 = vmul.f32 0.16666667, %v1999_v22  ;;  %v6383_v22 = vld [vmem:[%s7330_s4 + $0x30] sm:$0xff] }
 0x5f3   :  { %v1996_v6 = vmax.f32 %v1995_v37, 0.0  ;;  %v2002_v61 = vadd.f32 0.5, %v2001_v15  ;;  %v6388_v15 = vld [vmem:[%s7331_s5 + $0x30] sm:$0xff] }
 0x5f5   :  { %v1997_v24 = vmin.f32 %v1996_v6, 1.0  ;;  %v2003_v37 = vmax.f32 %v2002_v61, 0.0 }
 0x5f7   :  { %v2004_v6 = vmin.f32 %v2003_v37, 1.0 }
 0x5f9   :  { %v5334_v29 = vpop.eup %5333  ;;  %v1979_v25 = vpop.f32.mrb[10].mxu1 }
 0x5fa   :  { %v2017_v3 = vmul.f32 %v5334_v29, %v1997_v24  ;;  %v1993_v39 = vadd.f32 %v4630_v21, %v1979_v25  ;;  %v4836_v48 = vpop.f32.mrb[11].mxu1  ;;  %v7466_v21 = vld [vmem:[#allocation23_spill] sm:$0xff] }
 0x5fb   :  { %v2069_v24 = vrot.slane %v2004_v6, %v7466_v21 }
 0x5fc   :  { %v2012_v59 = vmul.f32 0.16666667, %v1993_v39  ;;  %v2122_v29 = vrot.slane %v2017_v3, %v7466_v21  ;;  %v4637_v3 = vld [vmem:[%s7331_s5 + $0x38] sm:$0x3] }
 0x5fd   :  { %v2070_v25 = vcombine.high %v2069_v24, %v2069_v24 }
 0x5fe   :  { %v2013_v32 = vadd.f32 0.5, %v2012_v59  ;;  %v2123_v39 = vcombine.high %v2122_v29, %v2122_v29  ;;  %v2077_v59 = vrot.slane %v2069_v24, %v7466_v21 }
 0x5ff   :  { %v2084_v48 = vrot.slane %v2070_v25, %v7466_v21 }
 0x600   :  { %v2014_v52 = vmax.f32 %v2013_v32, 0.0  ;;  %v2130_v32 = vrot.slane %v2122_v29, %v7466_v21  ;;  %v2090_v6 = vrot.slane %v2077_v59, %v7463_v11 }
 0x601   :  { %v2086_v47 = vcombine.high %v2084_v48, %v2084_v48  ;;  %v2094_v37 = vrot.slane %v2084_v48, %v7463_v11 }
 0x602   :  { %v2015_v16 = vmin.f32 %v2014_v52, 1.0  ;;  %v2137_v52 = vrot.slane %v2123_v39, %v7466_v21 }
 0x603   :  { %v6394_v29 = vrot.slane %v2086_v47, %v7463_v11 }
 0x604   :  { %v2032_v5 = vrot.slane %v2015_v16, %v7462_v35  ;;  %v2021_v4 = vrot.slane %v2015_v16, %v7463_v11  ;;  %v2043_v14 = vrot.slane %v2015_v16, %v7464_v38  ;;  %v2054_v40 = vrot.slane %v2015_v16, %v7465_v55 }
 0x605   :  { %v2085_v16 = vcombine.high %v2077_v59, %v2077_v59  ;;  %v2139_v61 = vcombine.high %v2137_v52, %v2137_v52 }
 0x606   :  { %2038 = vbcast.lane.b32.xlu1 %v2032_v5, 264  ;;  %2034 = vbcast.lane.b32.xlu0 %v2032_v5, 256  ;;  %v2154_v5 = vrot.slane %v2130_v32, %v7463_v11 }
 0x607   :  { %v2098_v24 = vrot.slane %v2085_v16, %v7463_v11  ;;  %v6402_v47 = vrot.slane %v2139_v61, %v7463_v11 }
 0x608   :  { %v2199_v21 = vmul.f32 %v4637_v3, %v2154_v5  ;;  %v2171_v55 = vmul.f32 %v6383_v22, %v2154_v5  ;;  %v2198_v48 = vmul.f32 %v6388_v15, %v2154_v5 }
 0x60a   :  { %2027 = vbcast.lane.b32.xlu1 %v2021_v4, 264  ;;  %2023 = vbcast.lane.b32.xlu0 %v2021_v4, 256  ;;  %v2138_v4 = vcombine.high %v2130_v32, %v2130_v32 }
 0x60c   :  { %v2162_v38 = vrot.slane %v2138_v4, %v7463_v11  ;;  %v7469_v4 = vld [vmem:[#allocation24_spill] sm:$0xff] }
 0x60e   :  { %2049 = vbcast.lane.b32.xlu1 %v2043_v14, 264  ;;  %2045 = vbcast.lane.b32.xlu0 %v2043_v14, 256  ;;  %v4635_v14 = vld [vmem:[%s7330_s4 + $0x38] sm:$0x3]  ;;  %v2175_v31 = vmul.f32 %v6383_v22, %v2162_v38  ;;  %v2202_v9 = vmul.f32 %v6388_v15, %v2162_v38 }
 0x60f   :  { %v2172_v32 = vmul.f32 %v4635_v14, %v2154_v5  ;;  %v2203_v5 = vmul.f32 %v4637_v3, %v2162_v38 }
 0x612   :  { %2060 = vbcast.lane.b32.xlu1 %v2054_v40, 264  ;;  %2056 = vbcast.lane.b32.xlu0 %v2054_v40, 256  ;;  %v2158_v40 = vrot.slane %v2137_v52, %v7463_v11 }
 0x614   :  { %v2174_v50 = vmul.f32 %v4635_v14, %v2158_v40  ;;  %v2201_v19 = vmul.f32 %v4637_v3, %v2158_v40  ;;  %v2173_v59 = vmul.f32 %v6383_v22, %v2158_v40  ;;  %v2200_v16 = vmul.f32 %v6388_v15, %v2158_v40 }
 0x678   :  { %v2039_v25 = vpop.permute.xlu1 %2038  ;;  %v2035_v39 = vpop.permute.xlu0 %2034 }
 0x679   :  { %v2110_v35 = vmul.f32 %v2094_v37, %v2039_v25  ;;  %v2109_v52 = vmul.f32 %v2094_v37, %v2035_v39  ;;  %v2176_v39 = vmul.f32 %v4635_v14, %v2162_v38 }
 0x67b   :  { %v2143_v13 = vmul.f32 %v2110_v35, %v6199_v33  ;;  %v2190_v46 = vmul.f32 %v2110_v35, %v7467_v43  ;;  %v2142_v1 = vmul.f32 %v2109_v52, %v7468_v20  ;;  %v2189_v25 = vmul.f32 %v2109_v52, %v7469_v4 }
 0x67c   :  { %v2028_v58 = vpop.permute.xlu1 %2027  ;;  %v2024_v37 = vpop.permute.xlu0 %2023  ;;  %v2178_v35 = vmul.f32 %v4635_v14, %v6402_v47  ;;  %v2205_v52 = vmul.f32 %v4637_v3, %v6402_v47 }
 0x67d   :  { %v6410_v40 = vadd.f32 %v2174_v50, %v2143_v13  ;;  %v6412_v61 = vadd.f32 %v2201_v19, %v2190_v46  ;;  %v6414_v11 = vadd.f32 %v2173_v59, %v2142_v1  ;;  %v6416_v33 = vadd.f32 %v2200_v16, %v2189_v25 }
 0x67e   :  { %v2108_v43 = vmul.f32 %v2090_v6, %v2028_v58  ;;  %v2107_v20 = vmul.f32 %v2090_v6, %v2024_v37 }
 0x67f   :  { %7470 = vst [vmem:[#allocation25_spill] sm:$0xff] %v6412_v61  ;;  %7471 = vst [vmem:[#allocation28_spill] sm:$0xff] %v6414_v11  ;;  %v2217_v4 = vmul.f32 %v6410_v40, %v6410_v40  ;;  %v2225_v38 = vmul.f32 %v6412_v61, %v6412_v61  ;;  %v2216_v46 = vmul.f32 %v6414_v11, %v6414_v11 }
 0x680   :  { %7472 = vst [vmem:[#allocation29_spill] sm:$0xff] %v6416_v33  ;;  %v2224_v1 = vmul.f32 %v6416_v33, %v6416_v33  ;;  %v2141_v13 = vmul.f32 %v2108_v43, %v6221_v12  ;;  %v2188_v58 = vmul.f32 %v2108_v43, %v6223_v54  ;;  %v2140_v19 = vmul.f32 %v2107_v20, %v6225_v34  ;;  %v2050_v14 = vpop.permute.xlu1 %2049  ;;  %v2046_v3 = vpop.permute.xlu0 %2045 }
 0x681   :  { %v2187_v50 = vmul.f32 %v2107_v20, %v6227_v42  ;;  %v2233_v6 = vadd.f32 %v2225_v38, %v2217_v4  ;;  %v2112_v16 = vmul.f32 %v2098_v24, %v2050_v14  ;;  %v2111_v25 = vmul.f32 %v2098_v24, %v2046_v3 }
 0x682   :  { %v2232_v59 = vadd.f32 %v2224_v1, %v2216_v46  ;;  %v6432_v37 = vadd.f32 %v2172_v32, %v2141_v13  ;;  %v6434_v11 = vadd.f32 %v2199_v21, %v2188_v58  ;;  %v6436_v61 = vadd.f32 %v2171_v55, %v2140_v19 }
 0x683   :  { %v6438_v33 = vadd.f32 %v2198_v48, %v2187_v50  ;;  %v2241_v54 = vmul.f32 %v6256_v45, %v2233_v6  ;;  %v2145_v42 = vmul.f32 %v2112_v16, %v6245_v51  ;;  %v2192_v12 = vmul.f32 %v2112_v16, %v6247_v17 }
 0x684   :  { %v2240_v34 = vmul.f32 %v6230_v62, %v2232_v59  ;;  %v2215_v43 = vmul.f32 %v6432_v37, %v6432_v37  ;;  %v2223_v24 = vmul.f32 %v6434_v11, %v6434_v11  ;;  %v2214_v55 = vmul.f32 %v6436_v61, %v6436_v61  ;;  %v2061_v32 = vpop.permute.xlu1 %2060 }
 0x685   :  { %v2222_v21 = vmul.f32 %v6438_v33, %v6438_v33  ;;  %v2256_v48 = vsel %vm53_vm3, %v2241_v54, 0.0  ;;  %v6454_v51 = vadd.f32 %v2176_v39, %v2145_v42  ;;  %v6456_v17 = vadd.f32 %v2203_v5, %v2192_v12  ;;  %v2057_v54 = vpop.permute.xlu0 %2056 }
 0x686   :  { %v2255_v20 = vsel %vm51_vm1, %v2240_v34, 0.0  ;;  %v2231_v38 = vadd.f32 %v2223_v24, %v2215_v43  ;;  %v2144_v1 = vmul.f32 %v2111_v25, %v6260_v2  ;;  %v2191_v19 = vmul.f32 %v2111_v25, %v6262_v26 }
 0x687   :  { %v2257_v4 = vadd.f32 %v2256_v48, %v2255_v20  ;;  %v2230_v46 = vadd.f32 %v2222_v21, %v2214_v55  ;;  %v2219_v13 = vmul.f32 %v6454_v51, %v6454_v51  ;;  %v2227_v58 = vmul.f32 %v6456_v17, %v6456_v17 }
 0x688   :  { %v2114_v50 = vmul.f32 %v6394_v29, %v2061_v32  ;;  %v2239_v39 = vmul.f32 %v6256_v45, %v2231_v38  ;;  %v6467_v3 = vadd.f32 %v2175_v31, %v2144_v1  ;;  %v6469_v59 = vadd.f32 %v2202_v9, %v2191_v19 }
 0x689   :  { %v2258_v14 = vrot.slane %v2257_v4, 4  ;;  %v2238_v5 = vmul.f32 %v6230_v62, %v2230_v46  ;;  %v2235_v6 = vadd.f32 %v2227_v58, %v2219_v13  ;;  %v2177_v48 = vmul.f32 %v6383_v22, %v6402_v47 }
 0x68a   :  { %v2147_v2 = vmul.f32 %v2114_v50, %v6273_v27  ;;  %v2194_v16 = vmul.f32 %v2114_v50, %v6275_v49  ;;  %v2247_v26 = vsel %vm53_vm3, %v2239_v39, 0.0  ;;  %v2218_v42 = vmul.f32 %v6467_v3, %v6467_v3 }
 0x68b   :  { %v2259_v34 = vadd.f32 %v2258_v14, %v2257_v4  ;;  %v2246_v25 = vsel %vm51_vm1, %v2238_v5, 0.0  ;;  %v2243_v31 = vmul.f32 %v6256_v45, %v2235_v6  ;;  %v2226_v9 = vmul.f32 %v6469_v59, %v6469_v59 }
 0x68c   :  { %v2248_v12 = vadd.f32 %v2247_v26, %v2246_v25  ;;  %v6480_v43 = vadd.f32 %v2178_v35, %v2147_v2  ;;  %v6482_v24 = vadd.f32 %v2205_v52, %v2194_v16  ;;  %v2113_v49 = vmul.f32 %v6394_v29, %v2057_v54 }
 0x68d   :  { %v2260_v27 = vrot.slane %v2259_v34, 2  ;;  %v2234_v21 = vadd.f32 %v2226_v9, %v2218_v42  ;;  %v2204_v52 = vmul.f32 %v6388_v15, %v6402_v47  ;;  %v2265_v29 = vsel %vm53_vm3, %v2243_v31, 0.0 }
 0x68e   :  { %v2249_v55 = vrot.slane %v2248_v12, 4  ;;  %v2221_v32 = vmul.f32 %v6480_v43, %v6480_v43  ;;  %v2229_v20 = vmul.f32 %v6482_v24, %v6482_v24  ;;  %v2146_v4 = vmul.f32 %v2113_v49, %v6290_v56 }
 0x68f   :  { %v2193_v35 = vmul.f32 %v2113_v49, %v6292_v30  ;;  %v2242_v46 = vmul.f32 %v6230_v62, %v2234_v21  ;;  %v2261_v1 = vadd.f32 %v2260_v27, %v2259_v34 }
 0x690   :  { %v2250_v38 = vadd.f32 %v2249_v55, %v2248_v12  ;;  %v2237_v13 = vadd.f32 %v2229_v20, %v2221_v32  ;;  %v6497_v58 = vadd.f32 %v2177_v48, %v2146_v4 }
 0x691   :  { %v6499_v22 = vadd.f32 %v2204_v52, %v2193_v35  ;;  %v2264_v50 = vsel %vm51_vm1, %v2242_v46, 0.0  ;;  %v2262_v39 = vrot.slane %v2261_v1, 1 }
 0x692   :  { %v2251_v19 = vrot.slane %v2250_v38, 2  ;;  %v2266_v56 = vadd.f32 %v2265_v29, %v2264_v50  ;;  %v2220_v30 = vmul.f32 %v6497_v58, %v6497_v58  ;;  %v2245_v15 = vmul.f32 %v6256_v45, %v2237_v13 }
 0x693   :  { %v2228_v47 = vmul.f32 %v6499_v22, %v6499_v22  ;;  %v2263_v26 = vadd.f32 %v2262_v39, %v2261_v1  ;;  %v2006_v29 = vrot.slane %v6356_v44, 4 }
 0x694   :  { %v2252_v14 = vadd.f32 %v2251_v19, %v2250_v38  ;;  %v2267_v5 = vrot.slane %v2266_v56, 4  ;;  %v2274_v54 = vsel %vm53_vm3, %v2245_v15, 0.0 }
 0x695   :  { %v2236_v2 = vadd.f32 %v2228_v47, %v2220_v30  ;;  %v2283_v27 = vadd.f32 %v6306_v0, %v2263_v26  ;;  %v2008_v19 = vmul.f32 0.16666667, %v2006_v29 }
 0x696   :  { %v2253_v6 = vrot.slane %v2252_v14, 1  ;;  %v2268_v16 = vadd.f32 %v2267_v5, %v2266_v56 }
 0x697   :  { %v2244_v34 = vmul.f32 %v6230_v62, %v2236_v2  ;;  %5335 = vtanh.f32 %v2283_v27  ;;  %v2009_v30 = vadd.f32 0.5, %v2008_v19  ;;  %v7478_v27 = vld [vmem:[#allocation14_spill] sm:$0xff] }
 0x698   :  { %v2269_v25 = vrot.slane %v2268_v16, 2  ;;  %v2254_v42 = vadd.f32 %v2253_v6, %v2252_v14 }
 0x699   :  { %v2273_v12 = vsel %vm51_vm1, %v2244_v34, 0.0  ;;  %v2010_v39 = vmax.f32 %v2009_v30, 0.0  ;;  %v4640_v30 = vld [vmem:[%s7326_s0 + $0x60] sm:$0xf] }
 0x69a   :  { %v2270_v31 = vadd.f32 %v2269_v25, %v2268_v16  ;;  %v2275_v9 = vadd.f32 %v2274_v54, %v2273_v12  ;;  %v2282_v21 = vadd.f32 %v6306_v0, %v2254_v42  ;;  %v7473_v25 = vld [vmem:[#allocation10_spill] sm:$0xff]  ;;  %v7474_v42 = vld [vmem:[#allocation17_spill] sm:$0xff]  ;;  %v7475_v12 = vld [vmem:[#allocation11_spill] sm:$0xff] }
 0x69b   :  { %v2011_v16 = vmin.f32 %v2010_v39, 1.0 }
 0x69c   :  { %v2271_v49 = vrot.slane %v2270_v31, 1  ;;  %v2276_v55 = vrot.slane %v2275_v9, 4  ;;  %5337 = vtanh.f32 %v2282_v21  ;;  %v7481_v21 = vld [vmem:[#allocation18_spill] sm:$0xff] }
 0x69e   :  { %v2272_v32 = vadd.f32 %v2271_v49, %v2270_v31  ;;  %v2277_v48 = vadd.f32 %v2276_v55, %v2275_v9  ;;  %v7476_v31 = vld [vmem:[#allocation12_spill] sm:$0xff]  ;;  %v7477_v9 = vld [vmem:[#allocation13_spill] sm:$0xff]  ;;  %v7479_v49 = vld [vmem:[#allocation15_spill] sm:$0xff] }
 0x69f   :  { %v7480_v55 = vld [vmem:[#allocation16_spill] sm:$0xff] }
 0x6a0   :  { %v2284_v20 = vadd.f32 %v6306_v0, %v2272_v32  ;;  %v2278_v4 = vrot.slane %v2277_v48, 2  ;;  %v7482_v32 = vld [vmem:[#allocation9_spill] sm:$0xff] }
 0x6a1   :  { %v5336_v1 = vpop.eup %5335 }
 0x6a2   :  { %5339 = vtanh.f32 %v2284_v20  ;;  %v2279_v35 = vadd.f32 %v2278_v4, %v2277_v48  ;;  %v2294_v56 = vrot.slane %v5336_v1, 7  ;;  %v4638_v4 = vld [vmem:[%s7326_s0 + $0x50] sm:$0xff] }
 0x6a4   :  { %v2280_v52 = vrot.slane %v2279_v35, 1 }
 0x6a6   :  { %v2281_v38 = vadd.f32 %v2280_v52, %v2279_v35  ;;  %v5338_v13 = vpop.eup %5337  ;;  %v4639_v52 = vld [vmem:[%s7326_s0 + $0x58] sm:$0xff] }
 0x6a7   :  { %v2295_v14 = vsel %vm666_vm4, %v2294_v56, %v5338_v13 }
 0x6a8   :  { %v2285_v46 = vadd.f32 %v6306_v0, %v2281_v38  ;;  %v2296_v47 = vsel %vm668_vm5, %v2294_v56, %v2295_v14 }
 0x6aa   :  { %5341 = vtanh.f32 %v2285_v46 }
 0x6ac   :  { %v5340_v50 = vpop.eup %5339 }
 0x6ad   :  { %v2297_v15 = vrot.slane %v5340_v50, 6 }
 0x6af   :  { %v2298_v5 = vsel %vm671_vm6, %v2297_v15, %v2296_v47 }
 0x6b0   :  { %v2299_v44 = vsel %vm673_vm7, %v2297_v15, %v2298_v5 }
 0x6b4   :  { %v5342_v6 = vpop.eup %5341 }
 0x6b5   :  { %v2300_v2 = vrot.slane %v5342_v6, 5 }
 0x6b7   :  { %v2301_v54 = vsel %vm676_vm8, %v2300_v2, %v2299_v44 }
 0x6b8   :  { %v2302_v34 = vsel %vm678_vm9, %v2300_v2, %v2301_v54 }
 0x6b9   :  { %v2304_v26 = vmul.f32 %v2302_v34, %v2011_v16  ;;  %v7483_v34 = vld [vmem:[#allocation19_spill] sm:$0xff] }
 0x6bb   :  { %4641 = vmatmul.mubr.msk.f32.vlgmr.msra.gmra.mrb[12].mxu0 %vm51_vm1, %v2304_v26  ;;  %4642 = vmatmul.mubr.msk.f32.vlgmr.msra.gmra.mrb[12].mxu1 %vm51_vm1, %v2304_v26 }
 0x6bc   :  { %5142 = vmatpush3.bf16.msra.mxu0 %v5656_v53  ;;  %4853 = vmatprep.mubr.msk.f32.mxu0 %vm5425_vm2, %v7420_v7 }
 0x6bd   :  { %5143 = vmatprep.subr.bf16.mxu0 %v7421_v8  ;;  %5155 = vmatpush1.bf16.msra.mxu1 %v5529_v10 }
 0x6be   :  { %5157 = vmatprep.subr.bf16.mxu1 %v5554_v18  ;;  %2917 = vmatprep.mubr.f32.mxu1 %v7420_v7 }
 0x6c0   :  { %5145 = vmatpush3.bf16.msra.mxu0 %v5670_v57 }
 0x6c1   :  { %5146 = vmatprep.subr.bf16.mxu0 %v7421_v8  ;;  %5159 = vmatpush1.bf16.msra.mxu1 %v5568_v23 }
 0x6c2   :  { %5161 = vmatprep.subr.bf16.mxu1 %v5583_v28 }
 0x6c4   :  { %5148 = vmatpush3.bf16.msra.mxu0 %v5685_v60 }
 0x6c5   :  { %5149 = vmatprep.subr.bf16.mxu0 %v7421_v8  ;;  %5163 = vmatpush1.bf16.msra.mxu1 %v5606_v36 }
 0x6c6   :  { %5165 = vmatprep.subr.bf16.mxu1 %v5621_v41 }
 0x6c8   :  { %5151 = vmatpush3.bf16.msra.mxu0 %v5697_v63 }
 0x6c9   :  { %5169 = vmatprep.subr.bf16.mxu0 %v7473_v25  ;;  %5167 = vmatpush1.bf16.msra.mxu1 %v7474_v42 }
 0x6ca   :  { %5184 = vmatprep.subr.bf16.mxu1 %v7421_v8 }
 0x6cb   :  { %4854 = vmatmul.mubr.msk.f32.vlgmr.msra.gmra.mrb[14].mxu0 %vm51_vm1, %v2304_v26 }
 0x6cc   :  { %5171 = vmatpush1.bf16.msra.mxu0 %v7475_v12  ;;  %2988 = vmatprep.mubr.f32.mxu0 %v7420_v7 }
 0x6cd   :  { %5173 = vmatprep.subr.bf16.mxu0 %v7476_v31 }
 0x6d0   :  { %5175 = vmatpush1.bf16.msra.mxu0 %v7477_v9  ;;  %v7489_v9 = vld [vmem:[#allocation28_spill] sm:$0xff] }
 0x6d1   :  { %5177 = vmatprep.subr.bf16.mxu0 %v7478_v27 }
 0x6d4   :  { %5179 = vmatpush1.bf16.msra.mxu0 %v7479_v49  ;;  %v7488_v49 = vld [vmem:[#allocation25_spill] sm:$0xff] }
 0x6d5   :  { %5181 = vmatprep.subr.bf16.mxu0 %v7480_v55 }
 0x6d8   :  { %5183 = vmatpush1.bf16.msra.mxu0 %v7481_v21 }
 0x6d9   :  { %5197 = vmatprep.subr.bf16.mxu0 %v7482_v32 }
 0x78e   :  { %v2378_v48 = vpop.f32.mrb[12].mxu0  ;;  %v2449_v20 = vpop.f32.mrb[12].mxu1 }
 0x78f   :  { %v2380_v35 = vpop.f32.mrb[13].mxu0  ;;  %v2451_v38 = vpop.f32.mrb[13].mxu1 }
 0x790   :  { %v2528_v29 = vcombine.low %v2378_v48, %v2380_v35  ;;  %v2529_v46 = vcombine.low %v2449_v20, %v2451_v38  ;;  %v7484_v48 = vld [vmem:[#allocation20_spill] sm:$0xff] }
 0x792   :  { %v2532_v1 = vadd.f32 %v4638_v4, %v2528_v29  ;;  %v6558_v13 = vadd.f32 %v4639_v52, %v2529_v46  ;;  %v7485_v4 = vld [vmem:[#allocation21_spill] sm:$0xff]  ;;  %v7486_v52 = vld [vmem:[#allocation22_spill] sm:$0xff] }
 0x794   :  { %v2535_v19 = vmul.f32 0.16666667, %v2532_v1  ;;  %5343 = vtanh.f32 %v6558_v13  ;;  %v2540_v29 = vrot.slane %v2532_v1, 4 }
 0x796   :  { %v2536_v50 = vadd.f32 0.5, %v2535_v19  ;;  %v2542_v46 = vmul.f32 0.16666667, %v2540_v29  ;;  %v6585_v29 = vld [vmem:[%s7330_s4 + $0x40] sm:$0xff] }
 0x798   :  { %v2537_v56 = vmax.f32 %v2536_v50, 0.0  ;;  %v2543_v19 = vadd.f32 0.5, %v2542_v46  ;;  %v6590_v46 = vld [vmem:[%s7331_s5 + $0x40] sm:$0xff] }
 0x79a   :  { %v2538_v14 = vmin.f32 %v2537_v56, 1.0  ;;  %v2544_v50 = vmax.f32 %v2543_v19, 0.0 }
 0x79c   :  { %v2545_v56 = vmin.f32 %v2544_v50, 1.0 }
 0x79e   :  { %v5344_v15 = vpop.eup %5343  ;;  %v2520_v47 = vpop.f32.mrb[14].mxu0 }
 0x79f   :  { %v2558_v39 = vmul.f32 %v5344_v15, %v2538_v14  ;;  %v2534_v5 = vadd.f32 %v4640_v30, %v2520_v47  ;;  %v4855_v6 = vpop.f32.mrb[15].mxu0  ;;  %v7487_v30 = vld [vmem:[#allocation23_spill] sm:$0xff] }
 0x7a0   :  { %v2610_v14 = vrot.slane %v2545_v56, %v7487_v30 }
 0x7a1   :  { %v2553_v2 = vmul.f32 0.16666667, %v2534_v5  ;;  %v2663_v15 = vrot.slane %v2558_v39, %v7487_v30 }
 0x7a2   :  { %v2611_v47 = vcombine.high %v2610_v14, %v2610_v14 }
 0x7a3   :  { %v2554_v44 = vadd.f32 0.5, %v2553_v2  ;;  %v2664_v5 = vcombine.high %v2663_v15, %v2663_v15  ;;  %v2618_v2 = vrot.slane %v2610_v14, %v7487_v30 }
 0x7a4   :  { %v2625_v6 = vrot.slane %v2611_v47, %v7487_v30 }
 0x7a5   :  { %v2555_v16 = vmax.f32 %v2554_v44, 0.0  ;;  %v2671_v44 = vrot.slane %v2663_v15, %v7487_v30  ;;  %v2631_v56 = vrot.slane %v2618_v2, %v7484_v48 }
 0x7a6   :  { %v2627_v1 = vcombine.high %v2625_v6, %v2625_v6  ;;  %v2635_v50 = vrot.slane %v2625_v6, %v7484_v48 }
 0x7a7   :  { %v2556_v54 = vmin.f32 %v2555_v16, 1.0  ;;  %v2678_v16 = vrot.slane %v2664_v5, %v7487_v30 }
 0x7a8   :  { %v6596_v15 = vrot.slane %v2627_v1, %v7484_v48 }
 0x7a9   :  { %v2573_v26 = vrot.slane %v2556_v54, %v7483_v34  ;;  %v2562_v20 = vrot.slane %v2556_v54, %v7484_v48  ;;  %v2584_v35 = vrot.slane %v2556_v54, %v7485_v4  ;;  %v2595_v38 = vrot.slane %v2556_v54, %v7486_v52 }
 0x7aa   :  { %v2626_v54 = vcombine.high %v2618_v2, %v2618_v2  ;;  %v2699_v39 = vrot.slane %v2678_v16, %v7484_v48  ;;  %v2680_v19 = vcombine.high %v2678_v16, %v2678_v16 }
 0x7ab   :  { %2579 = vbcast.lane.b32.xlu1 %v2573_v26, 264  ;;  %2575 = vbcast.lane.b32.xlu0 %v2573_v26, 256  ;;  %v2695_v26 = vrot.slane %v2671_v44, %v7484_v48 }
 0x7ac   :  { %v2639_v14 = vrot.slane %v2626_v54, %v7484_v48  ;;  %v2714_v2 = vmul.f32 %v6585_v29, %v2699_v39  ;;  %v2741_v54 = vmul.f32 %v6590_v46, %v2699_v39  ;;  %v6604_v1 = vrot.slane %v2680_v19, %v7484_v48 }
 0x7ad   :  { %v2712_v52 = vmul.f32 %v6585_v29, %v2695_v26  ;;  %v2739_v6 = vmul.f32 %v6590_v46, %v2695_v26 }
 0x7af   :  { %2568 = vbcast.lane.b32.xlu1 %v2562_v20, 264  ;;  %2564 = vbcast.lane.b32.xlu0 %v2562_v20, 256  ;;  %v2679_v20 = vcombine.high %v2671_v44, %v2671_v44 }
 0x7b1   :  { %v2703_v4 = vrot.slane %v2679_v20, %v7484_v48  ;;  %v7490_v20 = vld [vmem:[#allocation29_spill] sm:$0xff] }
 0x7b3   :  { %2590 = vbcast.lane.b32.xlu1 %v2584_v35, 264  ;;  %2586 = vbcast.lane.b32.xlu0 %v2584_v35, 256  ;;  %v4645_v35 = vld [vmem:[%s7330_s4 + $0x48] sm:$0x3]  ;;  %v2716_v42 = vmul.f32 %v6585_v29, %v2703_v4  ;;  %v2743_v25 = vmul.f32 %v6590_v46, %v2703_v4 }
 0x7b4   :  { %v2713_v44 = vmul.f32 %v4645_v35, %v2695_v26  ;;  %v2715_v34 = vmul.f32 %v4645_v35, %v2699_v39 }
 0x7b7   :  { %2601 = vbcast.lane.b32.xlu1 %v2595_v38, 264  ;;  %2597 = vbcast.lane.b32.xlu0 %v2595_v38, 256  ;;  %v4647_v38 = vld [vmem:[%s7331_s5 + $0x48] sm:$0x3] }
 0x7b8   :  { %v2740_v30 = vmul.f32 %v4647_v38, %v2695_v26  ;;  %v2742_v21 = vmul.f32 %v4647_v38, %v2699_v39  ;;  %v2744_v26 = vmul.f32 %v4647_v38, %v2703_v4 }
 0x81d   :  { %v2580_v47 = vpop.permute.xlu1 %2579  ;;  %v2576_v5 = vpop.permute.xlu0 %2575 }
 0x81e   :  { %v2651_v32 = vmul.f32 %v2635_v50, %v2580_v47  ;;  %v2650_v16 = vmul.f32 %v2635_v50, %v2576_v5  ;;  %v2717_v5 = vmul.f32 %v4645_v35, %v2703_v4 }
 0x820   :  { %v2684_v55 = vmul.f32 %v2651_v32, %v6410_v40  ;;  %v2731_v27 = vmul.f32 %v2651_v32, %v7488_v49  ;;  %v2683_v31 = vmul.f32 %v2650_v16, %v7489_v9  ;;  %v2730_v12 = vmul.f32 %v2650_v16, %v7490_v20 }
 0x821   :  { %v2569_v47 = vpop.permute.xlu1 %2568  ;;  %v2565_v50 = vpop.permute.xlu0 %2564  ;;  %v2719_v32 = vmul.f32 %v4645_v35, %v6604_v1  ;;  %v2746_v16 = vmul.f32 %v4647_v38, %v6604_v1 }
 0x822   :  { %v6612_v39 = vadd.f32 %v2715_v34, %v2684_v55  ;;  %v6614_v19 = vadd.f32 %v2742_v21, %v2731_v27  ;;  %v6616_v48 = vadd.f32 %v2714_v2, %v2683_v31  ;;  %v6618_v40 = vadd.f32 %v2741_v54, %v2730_v12 }
 0x823   :  { %v2649_v49 = vmul.f32 %v2631_v56, %v2569_v47  ;;  %v2648_v9 = vmul.f32 %v2631_v56, %v2565_v50 }
 0x824   :  { %7491 = vst [vmem:[#allocation26_spill] sm:$0xff] %v6614_v19  ;;  %7492 = vst [vmem:[#allocation27_spill] sm:$0xff] %v6616_v48  ;;  %v2758_v20 = vmul.f32 %v6612_v39, %v6612_v39  ;;  %v2766_v4 = vmul.f32 %v6614_v19, %v6614_v19  ;;  %v2757_v27 = vmul.f32 %v6616_v48, %v6616_v48 }
 0x825   :  { %7493 = vst [vmem:[#allocation24_spill] sm:$0xff] %v6618_v40  ;;  %v2765_v31 = vmul.f32 %v6618_v40, %v6618_v40  ;;  %v2682_v12 = vmul.f32 %v2649_v49, %v6432_v37  ;;  %v2729_v55 = vmul.f32 %v2649_v49, %v6434_v11  ;;  %v2681_v21 = vmul.f32 %v2648_v9, %v6436_v61  ;;  %v2591_v35 = vpop.permute.xlu1 %2590  ;;  %v2587_v38 = vpop.permute.xlu0 %2586 }
 0x826   :  { %v2728_v34 = vmul.f32 %v2648_v9, %v6438_v33  ;;  %v2774_v56 = vadd.f32 %v2766_v4, %v2758_v20  ;;  %v2653_v54 = vmul.f32 %v2639_v14, %v2591_v35  ;;  %v2652_v47 = vmul.f32 %v2639_v14, %v2587_v38 }
 0x827   :  { %v2773_v2 = vadd.f32 %v2765_v31, %v2757_v27  ;;  %v6634_v50 = vadd.f32 %v2713_v44, %v2682_v12  ;;  %v6636_v48 = vadd.f32 %v2740_v30, %v2729_v55  ;;  %v6638_v19 = vadd.f32 %v2712_v52, %v2681_v21 }
 0x828   :  { %v6640_v40 = vadd.f32 %v2739_v6, %v2728_v34  ;;  %v2782_v11 = vmul.f32 %v6256_v45, %v2774_v56  ;;  %v2686_v33 = vmul.f32 %v2653_v54, %v6454_v51  ;;  %v2733_v37 = vmul.f32 %v2653_v54, %v6456_v17 }
 0x829   :  { %v2781_v61 = vmul.f32 %v6230_v62, %v2773_v2  ;;  %v2756_v49 = vmul.f32 %v6634_v50, %v6634_v50  ;;  %v2764_v14 = vmul.f32 %v6636_v48, %v6636_v48  ;;  %v2755_v52 = vmul.f32 %v6638_v19, %v6638_v19  ;;  %v2602_v44 = vpop.permute.xlu1 %2601 }
 0x82a   :  { %v2763_v30 = vmul.f32 %v6640_v40, %v6640_v40  ;;  %v2797_v6 = vsel %vm53_vm3, %v2782_v11, 0.0  ;;  %v6656_v51 = vadd.f32 %v2717_v5, %v2686_v33  ;;  %v6658_v17 = vadd.f32 %v2744_v26, %v2733_v37  ;;  %v6668_v26 = vld [vmem:[#allocation6] sm:$0xff]  ;;  %v2598_v11 = vpop.permute.xlu0 %2597  ;;  %v6681_v37 = vld [vmem:[#allocation6 + $0x8] sm:$0x3] }
 0x82b   :  { %v2796_v62 = vsel %vm51_vm1, %v2781_v61, 0.0  ;;  %v2772_v20 = vadd.f32 %v2764_v14, %v2756_v49  ;;  %v2685_v27 = vmul.f32 %v2652_v47, %v6467_v3  ;;  %v2732_v55 = vmul.f32 %v2652_v47, %v6469_v59 }
 0x82c   :  { %v2798_v9 = vadd.f32 %v2797_v6, %v2796_v62  ;;  %v2771_v4 = vadd.f32 %v2763_v30, %v2755_v52  ;;  %v2760_v31 = vmul.f32 %v6656_v51, %v6656_v51  ;;  %v2768_v12 = vmul.f32 %v6658_v17, %v6658_v17 }
 0x82d   :  { %v2655_v21 = vmul.f32 %v6596_v15, %v2602_v44  ;;  %v2780_v5 = vmul.f32 %v6256_v45, %v2772_v20  ;;  %v6671_v38 = vadd.f32 %v2716_v42, %v2685_v27  ;;  %v6673_v56 = vadd.f32 %v2743_v25, %v2732_v55 }
 0x82e   :  { %v2799_v34 = vrot.slane %v2798_v9, 4  ;;  %v2779_v35 = vmul.f32 %v6668_v26, %v2771_v4  ;;  %v2776_v3 = vadd.f32 %v2768_v12, %v2760_v31  ;;  %v2654_v14 = vmul.f32 %v6596_v15, %v2598_v11 }
 0x82f   :  { %v2688_v2 = vmul.f32 %v2655_v21, %v6480_v43  ;;  %v2735_v54 = vmul.f32 %v2655_v21, %v6482_v24  ;;  %v2788_v47 = vsel %vm53_vm3, %v2780_v5, 0.0  ;;  %v2759_v45 = vmul.f32 %v6671_v38, %v6671_v38 }
 0x830   :  { %v2800_v59 = vadd.f32 %v2799_v34, %v2798_v9  ;;  %v2787_v61 = vsel %vm51_vm1, %v2779_v35, 0.0  ;;  %v2784_v42 = vmul.f32 %v6681_v37, %v2776_v3  ;;  %v2767_v25 = vmul.f32 %v6673_v56, %v6673_v56 }
 0x831   :  { %v2789_v33 = vadd.f32 %v2788_v47, %v2787_v61  ;;  %v6686_v43 = vadd.f32 %v2719_v32, %v2688_v2  ;;  %v6688_v49 = vadd.f32 %v2746_v16, %v2735_v54  ;;  %v2718_v6 = vmul.f32 %v6585_v29, %v6604_v1 }
 0x832   :  { %v2801_v24 = vrot.slane %v2800_v59, 2  ;;  %v2775_v30 = vadd.f32 %v2767_v25, %v2759_v45  ;;  %v2745_v32 = vmul.f32 %v6590_v46, %v6604_v1  ;;  %v2687_v9 = vmul.f32 %v2654_v14, %v6497_v58 }
 0x833   :  { %v2790_v52 = vrot.slane %v2789_v33, 4  ;;  %v2762_v44 = vmul.f32 %v6686_v43, %v6686_v43  ;;  %v2770_v62 = vmul.f32 %v6688_v49, %v6688_v49  ;;  %v2734_v16 = vmul.f32 %v2654_v14, %v6499_v22 }
 0x834   :  { %v2806_v15 = vsel %vm53_vm3, %v2784_v42, 0.0  ;;  %v2783_v4 = vmul.f32 %v6668_v26, %v2775_v30  ;;  %v2802_v27 = vadd.f32 %v2801_v24, %v2800_v59  ;;  %v6703_v12 = vadd.f32 %v2718_v6, %v2687_v9  ;;  %v6720_v30 = vld [vmem:[%s7329_s3] ss:$0 sm:$0xff] }
 0x835   :  { %v2791_v20 = vadd.f32 %v2790_v52, %v2789_v33  ;;  %v2778_v31 = vadd.f32 %v2770_v62, %v2762_v44  ;;  %v6705_v29 = vadd.f32 %v2745_v32, %v2734_v16 }
 0x836   :  { %v2805_v21 = vsel %vm51_vm1, %v2783_v4, 0.0  ;;  %v2761_v58 = vmul.f32 %v6703_v12, %v6703_v12  ;;  %v2803_v5 = vrot.slane %v2802_v27, 1 }
 0x837   :  { %v2792_v55 = vrot.slane %v2791_v20, 2  ;;  %v2807_v34 = vadd.f32 %v2806_v15, %v2805_v21  ;;  %v2786_v22 = vmul.f32 %v6681_v37, %v2778_v31  ;;  %v2769_v1 = vmul.f32 %v6705_v29, %v6705_v29 }
 0x838   :  { %v2804_v47 = vadd.f32 %v2803_v5, %v2802_v27  ;;  %v2547_v15 = vrot.slane %v6558_v13, 4 }
 0x839   :  { %v2793_v46 = vadd.f32 %v2792_v55, %v2791_v20  ;;  %v2808_v35 = vrot.slane %v2807_v34, 4  ;;  %v2777_v2 = vadd.f32 %v2769_v1, %v2761_v58  ;;  %v2815_v11 = vsel %vm53_vm3, %v2786_v22, 0.0 }
 0x83a   :  { %v2824_v24 = vadd.f32 %v6306_v0, %v2804_v47  ;;  %v2549_v55 = vmul.f32 0.16666667, %v2547_v15 }
 0x83b   :  { %v2794_v3 = vrot.slane %v2793_v46, 1  ;;  %v2809_v54 = vadd.f32 %v2808_v35, %v2807_v34  ;;  %v2785_v59 = vmul.f32 %v6668_v26, %v2777_v2 }
 0x83c   :  { %5345 = vtanh.f32 %v2824_v24  ;;  %v2550_v58 = vadd.f32 0.5, %v2549_v55  ;;  %v7499_v24 = vld [vmem:[#allocation14_spill] sm:$0xff] }
 0x83d   :  { %v2810_v61 = vrot.slane %v2809_v54, 2  ;;  %v2795_v45 = vadd.f32 %v2794_v3, %v2793_v46  ;;  %v2814_v33 = vsel %vm51_vm1, %v2785_v59, 0.0 }
 0x83e   :  { %v2816_v25 = vadd.f32 %v2815_v11, %v2814_v33  ;;  %v2551_v5 = vmax.f32 %v2550_v58, 0.0  ;;  %v7496_v33 = vld [vmem:[#allocation11_spill] sm:$0xff]  ;;  %v4650_v58 = vld [vmem:[%s7326_s0 + $0x74] sm:$0xf] }
 0x83f   :  { %v2811_v42 = vadd.f32 %v2810_v61, %v2809_v54  ;;  %v2823_v44 = vadd.f32 %v6720_v30, %v2795_v45  ;;  %v7494_v61 = vld [vmem:[#allocation10_spill] sm:$0xff]  ;;  %v7495_v45 = vld [vmem:[#allocation17_spill] sm:$0xff] }
 0x840   :  { %v2817_v52 = vrot.slane %v2816_v25, 4  ;;  %v2552_v54 = vmin.f32 %v2551_v5, 1.0 }
 0x841   :  { %v2812_v14 = vrot.slane %v2811_v42, 1  ;;  %5347 = vtanh.f32 %v2823_v44  ;;  %v7502_v44 = vld [vmem:[#allocation18_spill] sm:$0xff] }
 0x842   :  { %v2818_v62 = vadd.f32 %v2817_v52, %v2816_v25  ;;  %v7498_v25 = vld [vmem:[#allocation13_spill] sm:$0xff]  ;;  %v7501_v52 = vld [vmem:[#allocation16_spill] sm:$0xff] }
 0x843   :  { %v2813_v6 = vadd.f32 %v2812_v14, %v2811_v42  ;;  %v7497_v42 = vld [vmem:[#allocation12_spill] sm:$0xff]  ;;  %v7500_v14 = vld [vmem:[#allocation15_spill] sm:$0xff] }
 0x844   :  { %v2819_v9 = vrot.slane %v2818_v62, 2 }
 0x845   :  { %v2825_v32 = vadd.f32 %v6720_v30, %v2813_v6  ;;  %v7503_v6 = vld [vmem:[#allocation9_spill] sm:$0xff] }
 0x846   :  { %v2820_v16 = vadd.f32 %v2819_v9, %v2818_v62  ;;  %v5346_v27 = vpop.eup %5345  ;;  %v4648_v9 = vld [vmem:[%s7326_s0 + $0x64] sm:$0xff] }
 0x847   :  { %5349 = vtanh.f32 %v2825_v32  ;;  %v2835_v34 = vrot.slane %v5346_v27, 7 }
 0x848   :  { %v2821_v20 = vrot.slane %v2820_v16, 1 }
 0x84a   :  { %v2822_v0 = vadd.f32 %v2821_v20, %v2820_v16  ;;  %v4649_v20 = vld [vmem:[%s7326_s0 + $0x6c] sm:$0xff] }
 0x84b   :  { %v5348_v31 = vpop.eup %5347 }
 0x84c   :  { %v2826_v4 = vadd.f32 %v6720_v30, %v2822_v0  ;;  %v2836_v46 = vsel %vm666_vm4, %v2835_v34, %v5348_v31 }
 0x84d   :  { %v2837_v1 = vsel %vm668_vm5, %v2835_v34, %v2836_v46 }
 0x84e   :  { %5351 = vtanh.f32 %v2826_v4 }
 0x851   :  { %v5350_v21 = vpop.eup %5349 }
 0x852   :  { %v2838_v22 = vrot.slane %v5350_v21, 6 }
 0x854   :  { %v2839_v35 = vsel %vm671_vm6, %v2838_v22, %v2837_v1 }
 0x855   :  { %v2840_v13 = vsel %vm673_vm7, %v2838_v22, %v2839_v35 }
 0x858   :  { %v5352_v3 = vpop.eup %5351 }
 0x859   :  { %v2841_v2 = vrot.slane %v5352_v3, 5 }
 0x85b   :  { %v2842_v11 = vsel %vm676_vm8, %v2841_v2, %v2840_v13 }
 0x85c   :  { %v2843_v59 = vsel %vm678_vm9, %v2841_v2, %v2842_v11 }
 0x85d   :  { %v2845_v47 = vmul.f32 %v2843_v59, %v2552_v54  ;;  %v7504_v59 = vld [vmem:[#allocation19_spill] sm:$0xff] }
 0x85f   :  { %4651 = vmatmul.mubr.msk.f32.vlgmr.msra.gmra.mrb[14].mxu1 %vm51_vm1, %v2845_v47  ;;  %4652 = vmatmul.mubr.msk.f32.vlgmr.msra.gmra.mrb[16].mxu0 %vm51_vm1, %v2845_v47 }
 0x860   :  { %5186 = vmatpush3.bf16.msra.mxu1 %v5656_v53  ;;  %4872 = vmatprep.mubr.msk.f32.mxu1 %vm5425_vm2, %v7420_v7 }
 0x861   :  { %5187 = vmatprep.subr.bf16.mxu1 %v7421_v8  ;;  %5199 = vmatpush1.bf16.msra.mxu0 %v5529_v10 }
 0x862   :  { %5201 = vmatprep.subr.bf16.mxu0 %v5554_v18  ;;  %3458 = vmatprep.mubr.f32.mxu0 %v7420_v7 }
 0x864   :  { %5189 = vmatpush3.bf16.msra.mxu1 %v5670_v57 }
 0x865   :  { %5190 = vmatprep.subr.bf16.mxu1 %v7421_v8  ;;  %5203 = vmatpush1.bf16.msra.mxu0 %v5568_v23 }
 0x866   :  { %5205 = vmatprep.subr.bf16.mxu0 %v5583_v28 }
 0x868   :  { %5192 = vmatpush3.bf16.msra.mxu1 %v5685_v60 }
 0x869   :  { %5193 = vmatprep.subr.bf16.mxu1 %v7421_v8  ;;  %5207 = vmatpush1.bf16.msra.mxu0 %v5606_v36 }
 0x86a   :  { %5209 = vmatprep.subr.bf16.mxu0 %v5621_v41 }
 0x86c   :  { %5195 = vmatpush3.bf16.msra.mxu1 %v5697_v63 }
 0x86d   :  { %5213 = vmatprep.subr.bf16.mxu1 %v7494_v61  ;;  %5211 = vmatpush1.bf16.msra.mxu0 %v7495_v45 }
 0x86e   :  { %5228 = vmatprep.subr.bf16.mxu0 %v7421_v8 }
 0x86f   :  { %4873 = vmatmul.mubr.msk.f32.vlgmr.msra.gmra.mrb[16].mxu1 %vm51_vm1, %v2845_v47 }
 0x870   :  { %5215 = vmatpush1.bf16.msra.mxu1 %v7496_v33  ;;  %3529 = vmatprep.mubr.f32.mxu1 %v7420_v7 }
 0x871   :  { %5217 = vmatprep.subr.bf16.mxu1 %v7497_v42 }
 0x874   :  { %5219 = vmatpush1.bf16.msra.mxu1 %v7498_v25  ;;  %v7510_v25 = vld [vmem:[#allocation27_spill] sm:$0xff] }
 0x875   :  { %5221 = vmatprep.subr.bf16.mxu1 %v7499_v24 }
 0x878   :  { %5223 = vmatpush1.bf16.msra.mxu1 %v7500_v14  ;;  %v7509_v14 = vld [vmem:[#allocation26_spill] sm:$0xff] }
 0x879   :  { %5225 = vmatprep.subr.bf16.mxu1 %v7501_v52 }
 0x87c   :  { %5227 = vmatpush1.bf16.msra.mxu1 %v7502_v44 }
 0x87d   :  { %5241 = vmatprep.subr.bf16.mxu1 %v7503_v6  ;;  %v7505_v6 = vld [vmem:[#allocation20_spill] sm:$0xff] }
 0x932   :  { %v2919_v62 = vpop.f32.mrb[14].mxu1  ;;  %v2990_v32 = vpop.f32.mrb[16].mxu0 }
 0x933   :  { %v2921_v16 = vpop.f32.mrb[15].mxu1  ;;  %v2992_v0 = vpop.f32.mrb[17].mxu0 }
 0x934   :  { %v3069_v15 = vcombine.low %v2919_v62, %v2921_v16  ;;  %v3070_v4 = vcombine.low %v2990_v32, %v2992_v0  ;;  %v7506_v32 = vld [vmem:[#allocation21_spill] sm:$0xff]  ;;  %v7507_v16 = vld [vmem:[#allocation22_spill] sm:$0xff] }
 0x936   :  { %v3073_v27 = vadd.f32 %v4648_v9, %v3069_v15  ;;  %v6769_v31 = vadd.f32 %v4649_v20, %v3070_v4 }
 0x938   :  { %v3076_v55 = vmul.f32 0.16666667, %v3073_v27  ;;  %5353 = vtanh.f32 %v6769_v31  ;;  %v3081_v0 = vrot.slane %v3073_v27, 4 }
 0x93a   :  { %v3077_v21 = vadd.f32 0.5, %v3076_v55  ;;  %v3083_v15 = vmul.f32 0.16666667, %v3081_v0  ;;  %v6801_v0 = vld [vmem:[%s7331_s5 + $0x50] sm:$0xff] }
 0x93c   :  { %v3078_v34 = vmax.f32 %v3077_v21, 0.0  ;;  %v3084_v4 = vadd.f32 0.5, %v3083_v15 }
 0x93e   :  { %v3079_v46 = vmin.f32 %v3078_v34, 1.0  ;;  %v3085_v55 = vmax.f32 %v3084_v4, 0.0  ;;  %v7508_v34 = vld [vmem:[#allocation23_spill] sm:$0xff] }
 0x940   :  { %v3086_v21 = vmin.f32 %v3085_v55, 1.0 }
 0x942   :  { %v5354_v22 = vpop.eup %5353  ;;  %v3061_v1 = vpop.f32.mrb[16].mxu1 }
 0x943   :  { %v3099_v5 = vmul.f32 %v5354_v22, %v3079_v46  ;;  %v3075_v35 = vadd.f32 %v4650_v58, %v3061_v1  ;;  %v4874_v3 = vpop.f32.mrb[17].mxu1  ;;  %v3151_v58 = vrot.slane %v3086_v21, %v7508_v34 }
 0x945   :  { %v3094_v2 = vmul.f32 0.16666667, %v3075_v35  ;;  %v3204_v46 = vrot.slane %v3099_v5, %v7508_v34  ;;  %v3152_v22 = vcombine.high %v3151_v58, %v3151_v58  ;;  %v3159_v3 = vrot.slane %v3151_v58, %v7508_v34  ;;  %v4657_v5 = vld [vmem:[%s7331_s5 + $0x58] sm:$0x3] }
 0x947   :  { %v3095_v13 = vadd.f32 0.5, %v3094_v2  ;;  %v3205_v1 = vcombine.high %v3204_v46, %v3204_v46  ;;  %v3166_v35 = vrot.slane %v3152_v22, %v7508_v34  ;;  %v3212_v2 = vrot.slane %v3204_v46, %v7508_v34 }
 0x948   :  { %v3172_v55 = vrot.slane %v3159_v3, %v7505_v6 }
 0x949   :  { %v3096_v54 = vmax.f32 %v3095_v13, 0.0  ;;  %v3219_v13 = vrot.slane %v3205_v1, %v7508_v34  ;;  %v3168_v27 = vcombine.high %v3166_v35, %v3166_v35  ;;  %v3176_v4 = vrot.slane %v3166_v35, %v7505_v6 }
 0x94b   :  { %v3097_v11 = vmin.f32 %v3096_v54, 1.0  ;;  %v3167_v54 = vcombine.high %v3159_v3, %v3159_v3  ;;  %v3221_v15 = vcombine.high %v3219_v13, %v3219_v13  ;;  %v6807_v58 = vrot.slane %v3168_v27, %v7505_v6 }
 0x94d   :  { %v3114_v47 = vrot.slane %v3097_v11, %v7504_v59  ;;  %v3103_v62 = vrot.slane %v3097_v11, %v7505_v6  ;;  %v3125_v9 = vrot.slane %v3097_v11, %v7506_v32  ;;  %v3136_v20 = vrot.slane %v3097_v11, %v7507_v16 }
 0x94e   :  { %v3236_v11 = vrot.slane %v3212_v2, %v7505_v6  ;;  %v3180_v21 = vrot.slane %v3167_v54, %v7505_v6  ;;  %v6815_v27 = vrot.slane %v3221_v15, %v7505_v6 }
 0x94f   :  { %3120 = vbcast.lane.b32.xlu1 %v3114_v47, 264  ;;  %3116 = vbcast.lane.b32.xlu0 %v3114_v47, 256  ;;  %v3220_v47 = vcombine.high %v3212_v2, %v3212_v2 }
 0x950   :  { %v3281_v2 = vmul.f32 %v4657_v5, %v3236_v11  ;;  %v3280_v35 = vmul.f32 %v6801_v0, %v3236_v11 }
 0x951   :  { %v3244_v16 = vrot.slane %v3220_v47, %v7505_v6  ;;  %v7511_v47 = vld [vmem:[#allocation24_spill] sm:$0xff] }
 0x953   :  { %3109 = vbcast.lane.b32.xlu1 %v3103_v62, 264  ;;  %3105 = vbcast.lane.b32.xlu0 %v3103_v62, 256  ;;  %v4655_v62 = vld [vmem:[%s7330_s4 + $0x58] sm:$0x3]  ;;  %v3284_v61 = vmul.f32 %v6801_v0, %v3244_v16 }
 0x954   :  { %v3254_v1 = vmul.f32 %v4655_v62, %v3236_v11 }
 0x957   :  { %3131 = vbcast.lane.b32.xlu1 %v3125_v9, 264  ;;  %3127 = vbcast.lane.b32.xlu0 %v3125_v9, 256  ;;  %v3240_v9 = vrot.slane %v3219_v13, %v7505_v6 }
 0x959   :  { %v3256_v59 = vmul.f32 %v4655_v62, %v3240_v9  ;;  %v3283_v44 = vmul.f32 %v4657_v5, %v3240_v9  ;;  %v3282_v54 = vmul.f32 %v6801_v0, %v3240_v9 }
 0x95b   :  { %3142 = vbcast.lane.b32.xlu1 %v3136_v20, 264  ;;  %3138 = vbcast.lane.b32.xlu0 %v3136_v20, 256  ;;  %v6796_v20 = vld [vmem:[%s7330_s4 + $0x50] sm:$0xff] }
 0x95c   :  { %v3253_v34 = vmul.f32 %v6796_v20, %v3236_v11  ;;  %v3255_v3 = vmul.f32 %v6796_v20, %v3240_v9  ;;  %v3285_v11 = vmul.f32 %v4657_v5, %v3244_v16  ;;  %v3257_v45 = vmul.f32 %v6796_v20, %v3244_v16 }
 0x9c1   :  { %v3121_v46 = vpop.permute.xlu1 %3120  ;;  %v3117_v22 = vpop.permute.xlu0 %3116 }
 0x9c2   :  { %v3192_v32 = vmul.f32 %v3176_v4, %v3121_v46  ;;  %v3191_v13 = vmul.f32 %v3176_v4, %v3117_v22  ;;  %v3258_v22 = vmul.f32 %v4655_v62, %v3244_v16 }
 0x9c4   :  { %v3225_v52 = vmul.f32 %v3192_v32, %v6612_v39  ;;  %v3272_v24 = vmul.f32 %v3192_v32, %v7509_v14  ;;  %v3224_v42 = vmul.f32 %v3191_v13, %v7510_v25  ;;  %v3271_v46 = vmul.f32 %v3191_v13, %v7511_v47 }
 0x9c5   :  { %v3110_v33 = vpop.permute.xlu1 %3109  ;;  %v3106_v4 = vpop.permute.xlu0 %3105  ;;  %v3260_v32 = vmul.f32 %v4655_v62, %v6815_v27  ;;  %v3287_v13 = vmul.f32 %v4657_v5, %v6815_v27 }
 0x9c6   :  { %v6823_v9 = vadd.f32 %v3256_v59, %v3225_v52  ;;  %v6825_v15 = vadd.f32 %v3283_v44, %v3272_v24  ;;  %v6827_v6 = vadd.f32 %v3255_v3, %v3224_v42  ;;  %v6829_v39 = vadd.f32 %v3282_v54, %v3271_v46 }
 0x9c7   :  { %v3190_v14 = vmul.f32 %v3172_v55, %v3110_v33  ;;  %v3189_v25 = vmul.f32 %v3172_v55, %v3106_v4 }
 0x9c8   :  { %7512 = vst [vmem:[#allocation25_spill] sm:$0xff] %v6825_v15  ;;  %7513 = vst [vmem:[#allocation28_spill] sm:$0xff] %v6827_v6  ;;  %v3299_v47 = vmul.f32 %v6823_v9, %v6823_v9  ;;  %v3307_v16 = vmul.f32 %v6825_v15, %v6825_v15  ;;  %v3298_v24 = vmul.f32 %v6827_v6, %v6827_v6 }
 0x9c9   :  { %7514 = vst [vmem:[#allocation29_spill] sm:$0xff] %v6829_v39  ;;  %v3306_v42 = vmul.f32 %v6829_v39, %v6829_v39  ;;  %v3223_v52 = vmul.f32 %v3190_v14, %v6634_v50  ;;  %v3270_v33 = vmul.f32 %v3190_v14, %v6636_v48  ;;  %v3222_v44 = vmul.f32 %v3189_v25, %v6638_v19  ;;  %v3132_v62 = vpop.permute.xlu1 %3131  ;;  %v3128_v5 = vpop.permute.xlu0 %3127 }
 0x9ca   :  { %v3269_v59 = vmul.f32 %v3189_v25, %v6640_v40  ;;  %v3315_v55 = vadd.f32 %v3307_v16, %v3299_v47  ;;  %v3194_v54 = vmul.f32 %v3180_v21, %v3132_v62  ;;  %v3193_v46 = vmul.f32 %v3180_v21, %v3128_v5 }
 0x9cb   :  { %v3314_v3 = vadd.f32 %v3306_v42, %v3298_v24  ;;  %v6845_v4 = vadd.f32 %v3254_v1, %v3223_v52  ;;  %v6847_v6 = vadd.f32 %v3281_v2, %v3270_v33  ;;  %v6849_v15 = vadd.f32 %v3253_v34, %v3222_v44 }
 0x9cc   :  { %v6851_v39 = vadd.f32 %v3280_v35, %v3269_v59  ;;  %v3323_v48 = vmul.f32 %v6681_v37, %v3315_v55  ;;  %v3227_v40 = vmul.f32 %v3194_v54, %v6656_v51  ;;  %v3274_v50 = vmul.f32 %v3194_v54, %v6658_v17 }
 0x9cd   :  { %v3322_v19 = vmul.f32 %v6668_v26, %v3314_v3  ;;  %v3297_v14 = vmul.f32 %v6845_v4, %v6845_v4  ;;  %v3305_v21 = vmul.f32 %v6847_v6, %v6847_v6  ;;  %v3296_v34 = vmul.f32 %v6849_v15, %v6849_v15  ;;  %v3143_v2 = vpop.permute.xlu1 %3142 }
 0x9ce   :  { %v3304_v1 = vmul.f32 %v6851_v39, %v6851_v39  ;;  %v3338_v35 = vsel %vm53_vm3, %v3323_v48, 0.0  ;;  %v6867_v51 = vadd.f32 %v3258_v22, %v3227_v40  ;;  %v6869_v17 = vadd.f32 %v3285_v11, %v3274_v50  ;;  %v3139_v48 = vpop.permute.xlu0 %3138 }
 0x9cf   :  { %v3337_v25 = vsel %vm51_vm1, %v3322_v19, 0.0  ;;  %v3313_v16 = vadd.f32 %v3305_v21, %v3297_v14  ;;  %v3226_v42 = vmul.f32 %v3193_v46, %v6671_v38  ;;  %v3273_v44 = vmul.f32 %v3193_v46, %v6673_v56 }
 0x9d0   :  { %v3339_v47 = vadd.f32 %v3338_v35, %v3337_v25  ;;  %v3312_v24 = vadd.f32 %v3304_v1, %v3296_v34  ;;  %v3301_v52 = vmul.f32 %v6867_v51, %v6867_v51  ;;  %v3309_v33 = vmul.f32 %v6869_v17, %v6869_v17 }
 0x9d1   :  { %v3196_v59 = vmul.f32 %v6807_v58, %v3143_v2  ;;  %v3321_v22 = vmul.f32 %v6681_v37, %v3313_v16  ;;  %v6880_v5 = vadd.f32 %v3257_v45, %v3226_v42  ;;  %v6882_v3 = vadd.f32 %v3284_v61, %v3273_v44 }
 0x9d2   :  { %v3340_v62 = vrot.slane %v3339_v47, 4  ;;  %v3320_v11 = vmul.f32 %v6668_v26, %v3312_v24  ;;  %v3317_v55 = vadd.f32 %v3309_v33, %v3301_v52  ;;  %v3259_v35 = vmul.f32 %v6796_v20, %v6815_v27 }
 0x9d3   :  { %v3229_v38 = vmul.f32 %v3196_v59, %v6686_v43  ;;  %v3276_v54 = vmul.f32 %v3196_v59, %v6688_v49  ;;  %v3329_v56 = vsel %vm53_vm3, %v3321_v22, 0.0  ;;  %v3300_v40 = vmul.f32 %v6880_v5, %v6880_v5 }
 0x9d4   :  { %v3341_v19 = vadd.f32 %v3340_v62, %v3339_v47  ;;  %v3328_v46 = vsel %vm51_vm1, %v3320_v11, 0.0  ;;  %v3325_v45 = vmul.f32 %v6681_v37, %v3317_v55  ;;  %v3308_v61 = vmul.f32 %v6882_v3, %v6882_v3 }
 0x9d5   :  { %v3330_v50 = vadd.f32 %v3329_v56, %v3328_v46  ;;  %v6893_v14 = vadd.f32 %v3260_v32, %v3229_v38  ;;  %v6895_v21 = vadd.f32 %v3287_v13, %v3276_v54  ;;  %v3195_v49 = vmul.f32 %v6807_v58, %v3139_v48 }
 0x9d6   :  { %v3342_v43 = vrot.slane %v3341_v19, 2  ;;  %v3316_v1 = vadd.f32 %v3308_v61, %v3300_v40  ;;  %v3286_v13 = vmul.f32 %v6801_v0, %v6815_v27  ;;  %v3347_v58 = vsel %vm53_vm3, %v3325_v45, 0.0 }
 0x9d7   :  { %v3331_v34 = vrot.slane %v3330_v50, 4  ;;  %v3303_v2 = vmul.f32 %v6893_v14, %v6893_v14  ;;  %v3311_v25 = vmul.f32 %v6895_v21, %v6895_v21  ;;  %v3228_v47 = vmul.f32 %v3195_v49, %v6703_v12 }
 0x9d8   :  { %v3275_v32 = vmul.f32 %v3195_v49, %v6705_v29  ;;  %v3324_v24 = vmul.f32 %v6668_v26, %v3316_v1  ;;  %v3343_v42 = vadd.f32 %v3342_v43, %v3341_v19 }
 0x9d9   :  { %v3332_v16 = vadd.f32 %v3331_v34, %v3330_v50  ;;  %v3319_v52 = vadd.f32 %v3311_v25, %v3303_v2  ;;  %v6910_v33 = vadd.f32 %v3259_v35, %v3228_v47 }
 0x9da   :  { %v6912_v20 = vadd.f32 %v3286_v13, %v3275_v32  ;;  %v3346_v59 = vsel %vm51_vm1, %v3324_v24, 0.0  ;;  %v3344_v22 = vrot.slane %v3343_v42, 1 }
 0x9db   :  { %v3333_v44 = vrot.slane %v3332_v16, 2  ;;  %v3348_v12 = vadd.f32 %v3347_v58, %v3346_v59  ;;  %v3302_v29 = vmul.f32 %v6910_v33, %v6910_v33  ;;  %v3327_v0 = vmul.f32 %v6681_v37, %v3319_v52 }
 0x9dc   :  { %v3310_v27 = vmul.f32 %v6912_v20, %v6912_v20  ;;  %v3345_v56 = vadd.f32 %v3344_v22, %v3343_v42  ;;  %v3088_v58 = vrot.slane %v6769_v31, 4 }
 0x9dd   :  { %v3334_v62 = vadd.f32 %v3333_v44, %v3332_v16  ;;  %v3349_v11 = vrot.slane %v3348_v12, 4  ;;  %v3356_v48 = vsel %vm53_vm3, %v3327_v0, 0.0 }
 0x9de   :  { %v3318_v38 = vadd.f32 %v3310_v27, %v3302_v29  ;;  %v3365_v43 = vadd.f32 %v6720_v30, %v3345_v56  ;;  %v3090_v44 = vmul.f32 0.16666667, %v3088_v58  ;;  %v4660_v58 = vld [vmem:[%s7326_s0 + $0x88] sm:$0xf] }
 0x9df   :  { %v3335_v55 = vrot.slane %v3334_v62, 1  ;;  %v3350_v54 = vadd.f32 %v3349_v11, %v3348_v12 }
 0x9e0   :  { %v3326_v19 = vmul.f32 %v6668_v26, %v3318_v38  ;;  %5355 = vtanh.f32 %v3365_v43  ;;  %v3091_v29 = vadd.f32 0.5, %v3090_v44  ;;  %v4658_v43 = vld [vmem:[%s7326_s0 + $0x78] sm:$0xff] }
 0x9e1   :  { %v3351_v46 = vrot.slane %v3350_v54, 2  ;;  %v3336_v40 = vadd.f32 %v3335_v55, %v3334_v62 }
 0x9e2   :  { %v3355_v50 = vsel %vm51_vm1, %v3326_v19, 0.0  ;;  %v3092_v22 = vmax.f32 %v3091_v29, 0.0 }
 0x9e3   :  { %v3352_v45 = vadd.f32 %v3351_v46, %v3350_v54  ;;  %v3357_v61 = vadd.f32 %v3356_v48, %v3355_v50  ;;  %v3364_v1 = vadd.f32 %v6720_v30, %v3336_v40  ;;  %v7519_v46 = vld [vmem:[#allocation13_spill] sm:$0xff]  ;;  %v7522_v40 = vld [vmem:[#allocation16_spill] sm:$0xff]  ;;  %v7523_v50 = vld [vmem:[#allocation18_spill] sm:$0xff] }
 0x9e4   :  { %v3093_v54 = vmin.f32 %v3092_v22, 1.0  ;;  %v7524_v22 = vld [vmem:[#allocation19_spill] sm:$0xff] }
 0x9e5   :  { %v3353_v49 = vrot.slane %v3352_v45, 1  ;;  %v3358_v34 = vrot.slane %v3357_v61, 4  ;;  %5357 = vtanh.f32 %v3364_v1 }
 0x9e7   :  { %v3354_v2 = vadd.f32 %v3353_v49, %v3352_v45  ;;  %v3359_v35 = vadd.f32 %v3358_v34, %v3357_v61  ;;  %v4659_v34 = vld [vmem:[%s7326_s0 + $0x80] sm:$0xff] }
 0x9e9   :  { %v3366_v25 = vadd.f32 %v6720_v30, %v3354_v2  ;;  %v3360_v47 = vrot.slane %v3359_v35, 2 }
 0x9ea   :  { %v5356_v42 = vpop.eup %5355 }
 0x9eb   :  { %5359 = vtanh.f32 %v3366_v25  ;;  %v3361_v32 = vadd.f32 %v3360_v47, %v3359_v35  ;;  %v3376_v12 = vrot.slane %v5356_v42, 7 }
 0x9ed   :  { %v3362_v13 = vrot.slane %v3361_v32, 1 }
 0x9ef   :  { %v3363_v16 = vadd.f32 %v3362_v13, %v3361_v32  ;;  %v5358_v52 = vpop.eup %5357 }
 0x9f0   :  { %v3377_v62 = vsel %vm666_vm4, %v3376_v12, %v5358_v52 }
 0x9f1   :  { %v3367_v24 = vadd.f32 %v6720_v30, %v3363_v16  ;;  %v3378_v27 = vsel %vm668_vm5, %v3376_v12, %v3377_v62 }
 0x9f3   :  { %5361 = vtanh.f32 %v3367_v24 }
 0x9f5   :  { %v5360_v59 = vpop.eup %5359 }
 0x9f6   :  { %v3379_v0 = vrot.slane %v5360_v59, 6 }
 0x9f8   :  { %v3380_v11 = vsel %vm671_vm6, %v3379_v0, %v3378_v27 }
 0x9f9   :  { %v3381_v31 = vsel %vm673_vm7, %v3379_v0, %v3380_v11 }
 0x9fd   :  { %v5362_v55 = vpop.eup %5361 }
 0x9fe   :  { %v3382_v38 = vrot.slane %v5362_v55, 5  ;;  %v7525_v55 = vld [vmem:[#allocation20_spill] sm:$0xff] }
 0xa00   :  { %v3383_v48 = vsel %vm676_vm8, %v3382_v38, %v3381_v31  ;;  %v7526_v31 = vld [vmem:[#allocation21_spill] sm:$0xff] }
 0xa01   :  { %v3384_v19 = vsel %vm678_vm9, %v3382_v38, %v3383_v48  ;;  %v7527_v48 = vld [vmem:[#allocation22_spill] sm:$0xff] }
 0xa02   :  { %v3386_v56 = vmul.f32 %v3384_v19, %v3093_v54 }
 0xa04   :  { %4661 = vmatmul.mubr.msk.f32.vlgmr.msra.gmra.mrb[18].mxu0 %vm51_vm1, %v3386_v56  ;;  %4662 = vmatmul.mubr.msk.f32.vlgmr.msra.gmra.mrb[18].mxu1 %vm51_vm1, %v3386_v56 }
 0xa05   :  { %5230 = vmatpush3.bf16.msra.mxu0 %v5656_v53  ;;  %4891 = vmatprep.mubr.msk.f32.mxu0 %vm5425_vm2, %v7420_v7 }
 0xa06   :  { %5231 = vmatprep.subr.bf16.mxu0 %v7421_v8  ;;  %5243 = vmatpush1.bf16.msra.mxu1 %v5529_v10  ;;  %v7515_v10 = vld [vmem:[#allocation10_spill] sm:$0xff] }
 0xa07   :  { %5245 = vmatprep.subr.bf16.mxu1 %v5554_v18  ;;  %3999 = vmatprep.mubr.f32.mxu1 %v7420_v7  ;;  %v7516_v18 = vld [vmem:[#allocation17_spill] sm:$0xff] }
 0xa09   :  { %5233 = vmatpush3.bf16.msra.mxu0 %v5670_v57 }
 0xa0a   :  { %5234 = vmatprep.subr.bf16.mxu0 %v7421_v8  ;;  %5247 = vmatpush1.bf16.msra.mxu1 %v5568_v23  ;;  %v7517_v23 = vld [vmem:[#allocation11_spill] sm:$0xff] }
 0xa0b   :  { %5249 = vmatprep.subr.bf16.mxu1 %v5583_v28  ;;  %v7518_v28 = vld [vmem:[#allocation12_spill] sm:$0xff] }
 0xa0d   :  { %5236 = vmatpush3.bf16.msra.mxu0 %v5685_v60 }
 0xa0e   :  { %5237 = vmatprep.subr.bf16.mxu0 %v7421_v8  ;;  %5251 = vmatpush1.bf16.msra.mxu1 %v5606_v36  ;;  %v7520_v36 = vld [vmem:[#allocation14_spill] sm:$0xff] }
 0xa0f   :  { %5253 = vmatprep.subr.bf16.mxu1 %v5621_v41  ;;  %v7521_v41 = vld [vmem:[#allocation15_spill] sm:$0xff] }
 0xa11   :  { %5239 = vmatpush3.bf16.msra.mxu0 %v5697_v63 }
 0xa12   :  { %5257 = vmatprep.subr.bf16.mxu0 %v7515_v10  ;;  %5255 = vmatpush1.bf16.msra.mxu1 %v7516_v18 }
 0xa13   :  { %5272 = vmatprep.subr.bf16.mxu1 %v7421_v8 }
 0xa14   :  { %4892 = vmatmul.mubr.msk.f32.vlgmr.msra.gmra.mrb[20].mxu0 %vm51_vm1, %v3386_v56 }
 0xa15   :  { %5259 = vmatpush1.bf16.msra.mxu0 %v7517_v23  ;;  %4070 = vmatprep.mubr.f32.mxu0 %v7420_v7 }
 0xa16   :  { %5261 = vmatprep.subr.bf16.mxu0 %v7518_v28 }
 0xa19   :  { %5263 = vmatpush1.bf16.msra.mxu0 %v7519_v46  ;;  %v7528_v46 = vld [vmem:[#allocation23_spill] sm:$0xff] }
 0xa1a   :  { %5265 = vmatprep.subr.bf16.mxu0 %v7520_v36 }
 0xa1d   :  { %5267 = vmatpush1.bf16.msra.mxu0 %v7521_v41 }
 0xa1e   :  { %5269 = vmatprep.subr.bf16.mxu0 %v7522_v40 }
 0xa21   :  { %5271 = vmatpush1.bf16.msra.mxu0 %v7523_v50 }
 0xa22   :  { %5284 = vmatprep.subr.bf16.mxu0 %v7421_v8 }
 0xad7   :  { %v3460_v45 = vpop.f32.mrb[18].mxu0  ;;  %v3531_v61 = vpop.f32.mrb[18].mxu1 }
 0xad8   :  { %v3462_v49 = vpop.f32.mrb[19].mxu0  ;;  %v3533_v1 = vpop.f32.mrb[19].mxu1 }
 0xad9   :  { %v3610_v2 = vcombine.low %v3460_v45, %v3462_v49  ;;  %v3611_v35 = vcombine.low %v3531_v61, %v3533_v1 }
 0xadb   :  { %v3614_v25 = vadd.f32 %v4658_v43, %v3610_v2  ;;  %v6971_v47 = vadd.f32 %v4659_v34, %v3611_v35 }
 0xadd   :  { %v3617_v32 = vmul.f32 0.16666667, %v3614_v25  ;;  %5363 = vtanh.f32 %v6971_v47  ;;  %v3622_v56 = vrot.slane %v3614_v25, 4  ;;  %v4665_v25 = vld [vmem:[%s7330_s4 + $0x68] sm:$0x3] }
 0xadf   :  { %v3618_v13 = vadd.f32 0.5, %v3617_v32  ;;  %v3624_v10 = vmul.f32 0.16666667, %v3622_v56 }
 0xae1   :  { %v3619_v16 = vmax.f32 %v3618_v13, 0.0  ;;  %v3625_v18 = vadd.f32 0.5, %v3624_v10  ;;  %v4667_v13 = vld [vmem:[%s7331_s5 + $0x68] sm:$0x3] }
 0xae3   :  { %v3620_v24 = vmin.f32 %v3619_v16, 1.0  ;;  %v3626_v23 = vmax.f32 %v3625_v18, 0.0  ;;  %v6998_v16 = vld [vmem:[%s7330_s4 + $0x60] sm:$0xff] }
 0xae5   :  { %v3627_v28 = vmin.f32 %v3626_v23, 1.0 }
 0xae7   :  { %v5364_v42 = vpop.eup %5363  ;;  %v3602_v52 = vpop.f32.mrb[20].mxu0  ;;  %v3692_v36 = vrot.slane %v3627_v28, %v7528_v46 }
 0xae8   :  { %v3640_v44 = vmul.f32 %v5364_v42, %v3620_v24  ;;  %v3616_v59 = vadd.f32 %v4660_v58, %v3602_v52  ;;  %v4893_v12 = vpop.f32.mrb[21].mxu0  ;;  %v7003_v58 = vld [vmem:[%s7331_s5 + $0x60] sm:$0xff] }
 0xae9   :  { %v3693_v40 = vcombine.high %v3692_v36, %v3692_v36  ;;  %v3700_v61 = vrot.slane %v3692_v36, %v7528_v46 }
 0xaea   :  { %v3635_v29 = vmul.f32 0.16666667, %v3616_v59  ;;  %v3745_v41 = vrot.slane %v3640_v44, %v7528_v46 }
 0xaeb   :  { %v3707_v45 = vrot.slane %v3693_v40, %v7528_v46  ;;  %v3708_v34 = vcombine.high %v3700_v61, %v3700_v61  ;;  %v3713_v52 = vrot.slane %v3700_v61, %v7525_v55  ;;  %v7531_v61 = vld [vmem:[#allocation29_spill] sm:$0xff] }
 0xaec   :  { %v3636_v62 = vadd.f32 0.5, %v3635_v29  ;;  %v3746_v50 = vcombine.high %v3745_v41, %v3745_v41  ;;  %v3753_v43 = vrot.slane %v3745_v41, %v7528_v46  ;;  %v7529_v41 = vld [vmem:[#allocation25_spill] sm:$0xff] }
 0xaed   :  { %v3709_v1 = vcombine.high %v3707_v45, %v3707_v45  ;;  %v3717_v42 = vrot.slane %v3707_v45, %v7525_v55  ;;  %v3721_v44 = vrot.slane %v3708_v34, %v7525_v55 }
 0xaee   :  { %v3637_v0 = vmax.f32 %v3636_v62, 0.0  ;;  %v3760_v49 = vrot.slane %v3746_v50, %v7528_v46  ;;  %v3777_v2 = vrot.slane %v3753_v43, %v7525_v55  ;;  %v3761_v35 = vcombine.high %v3753_v43, %v3753_v43  ;;  %v7530_v50 = vld [vmem:[#allocation28_spill] sm:$0xff] }
 0xaef   :  { %v7009_v59 = vrot.slane %v3709_v1, %v7525_v55 }
 0xaf0   :  { %v3638_v27 = vmin.f32 %v3637_v0, 1.0  ;;  %v3781_v32 = vrot.slane %v3760_v49, %v7525_v55  ;;  %v3762_v24 = vcombine.high %v3760_v49, %v3760_v49  ;;  %v3795_v62 = vmul.f32 %v4665_v25, %v3777_v2 }
 0xaf1   :  { %v3822_v0 = vmul.f32 %v4667_v13, %v3777_v2  ;;  %v3821_v56 = vmul.f32 %v7003_v58, %v3777_v2 }
 0xaf2   :  { %v3655_v11 = vrot.slane %v3638_v27, %v7524_v22  ;;  %v3644_v38 = vrot.slane %v3638_v27, %v7525_v55  ;;  %v3666_v54 = vrot.slane %v3638_v27, %v7526_v31  ;;  %v3677_v19 = vrot.slane %v3638_v27, %v7527_v48 }
 0xaf3   :  { %v3794_v27 = vmul.f32 %v6998_v16, %v3777_v2  ;;  %v3824_v10 = vmul.f32 %v4667_v13, %v3781_v32  ;;  %v3796_v18 = vmul.f32 %v6998_v16, %v3781_v32  ;;  %v3823_v23 = vmul.f32 %v7003_v58, %v3781_v32 }
 0xaf4   :  { %3661 = vbcast.lane.b32.xlu1 %v3655_v11, 264  ;;  %3657 = vbcast.lane.b32.xlu0 %v3655_v11, 256  ;;  %v3785_v11 = vrot.slane %v3761_v35, %v7525_v55  ;;  %v7017_v28 = vrot.slane %v3762_v24, %v7525_v55 }
 0xaf6   :  { %v3799_v1 = vmul.f32 %v4665_v25, %v3785_v11  ;;  %v3826_v2 = vmul.f32 %v4667_v13, %v3785_v11  ;;  %v3798_v35 = vmul.f32 %v6998_v16, %v3785_v11 }
 0xaf8   :  { %3650 = vbcast.lane.b32.xlu1 %v3644_v38, 264  ;;  %3646 = vbcast.lane.b32.xlu0 %v3644_v38, 256  ;;  %v3797_v38 = vmul.f32 %v4665_v25, %v3781_v32 }
 0xafc   :  { %3672 = vbcast.lane.b32.xlu1 %v3666_v54, 264  ;;  %3668 = vbcast.lane.b32.xlu0 %v3666_v54, 256 }
 0xb00   :  { %3683 = vbcast.lane.b32.xlu1 %v3677_v19, 264  ;;  %3679 = vbcast.lane.b32.xlu0 %v3677_v19, 256 }
 0xb66   :  { %v3662_v12 = vpop.permute.xlu1 %3661  ;;  %v3658_v29 = vpop.permute.xlu0 %3657 }
 0xb67   :  { %v3733_v54 = vmul.f32 %v3717_v42, %v3662_v12  ;;  %v3732_v19 = vmul.f32 %v3717_v42, %v3658_v29  ;;  %v3825_v42 = vmul.f32 %v7003_v58, %v3785_v11 }
 0xb69   :  { %v3766_v36 = vmul.f32 %v3733_v54, %v6823_v9  ;;  %v3813_v40 = vmul.f32 %v3733_v54, %v7529_v41  ;;  %v3765_v45 = vmul.f32 %v3732_v19, %v7530_v50  ;;  %v3812_v43 = vmul.f32 %v3732_v19, %v7531_v61 }
 0xb6a   :  { %v3651_v49 = vpop.permute.xlu1 %3650  ;;  %v3647_v34 = vpop.permute.xlu0 %3646  ;;  %v3801_v19 = vmul.f32 %v4665_v25, %v7017_v28  ;;  %v3828_v41 = vmul.f32 %v4667_v13, %v7017_v28 }
 0xb6b   :  { %v7025_v32 = vadd.f32 %v3797_v38, %v3766_v36  ;;  %v7027_v24 = vadd.f32 %v3824_v10, %v3813_v40  ;;  %v7029_v12 = vadd.f32 %v3796_v18, %v3765_v45  ;;  %v7031_v9 = vadd.f32 %v3823_v23, %v3812_v43 }
 0xb6c   :  { %v3731_v29 = vmul.f32 %v3713_v52, %v3651_v49  ;;  %v3730_v54 = vmul.f32 %v3713_v52, %v3647_v34 }
 0xb6d   :  { %7532 = vst [vmem:[#allocation9_spill] sm:$0xff] %v7029_v12  ;;  %7533 = vst [vmem:[#allocation26_spill] sm:$0xff] %v7031_v9  ;;  %v3840_v50 = vmul.f32 %v7025_v32, %v7025_v32  ;;  %v3848_v11 = vmul.f32 %v7027_v24, %v7027_v24  ;;  %v3839_v38 = vmul.f32 %v7029_v12, %v7029_v12 }
 0xb6e   :  { %v3847_v10 = vmul.f32 %v7031_v9, %v7031_v9  ;;  %v3764_v18 = vmul.f32 %v3731_v29, %v6845_v4  ;;  %v3811_v52 = vmul.f32 %v3731_v29, %v6847_v6  ;;  %v3763_v25 = vmul.f32 %v3730_v54, %v6849_v15  ;;  %v3673_v23 = vpop.permute.xlu1 %3672  ;;  %v3669_v36 = vpop.permute.xlu0 %3668 }
 0xb6f   :  { %v3810_v13 = vmul.f32 %v3730_v54, %v6851_v39  ;;  %v3856_v40 = vadd.f32 %v3848_v11, %v3840_v50  ;;  %v3735_v61 = vmul.f32 %v3721_v44, %v3673_v23  ;;  %v3734_v43 = vmul.f32 %v3721_v44, %v3669_v36 }
 0xb70   :  { %v3855_v45 = vadd.f32 %v3847_v10, %v3839_v38  ;;  %v7047_v49 = vadd.f32 %v3795_v62, %v3764_v18  ;;  %v7049_v34 = vadd.f32 %v3822_v0, %v3811_v52  ;;  %v7051_v12 = vadd.f32 %v3794_v27, %v3763_v25 }
 0xb71   :  { %v7053_v9 = vadd.f32 %v3821_v56, %v3810_v13  ;;  %v3864_v6 = vmul.f32 %v6681_v37, %v3856_v40  ;;  %v3768_v39 = vmul.f32 %v3735_v61, %v6867_v51  ;;  %v3815_v4 = vmul.f32 %v3735_v61, %v6869_v17 }
 0xb72   :  { %v3863_v15 = vmul.f32 %v6668_v26, %v3855_v45  ;;  %v3838_v29 = vmul.f32 %v7047_v49, %v7047_v49  ;;  %v3846_v44 = vmul.f32 %v7049_v34, %v7049_v34  ;;  %v3837_v62 = vmul.f32 %v7051_v12, %v7051_v12  ;;  %v3684_v27 = vpop.permute.xlu1 %3683 }
 0xb73   :  { %v3845_v0 = vmul.f32 %v7053_v9, %v7053_v9  ;;  %v3879_v56 = vsel %vm53_vm3, %v3864_v6, 0.0  ;;  %v7069_v51 = vadd.f32 %v3799_v1, %v3768_v39  ;;  %v7071_v17 = vadd.f32 %v3826_v2, %v3815_v4  ;;  %v3680_v6 = vpop.permute.xlu0 %3679 }
 0xb74   :  { %v3878_v54 = vsel %vm51_vm1, %v3863_v15, 0.0  ;;  %v3854_v11 = vadd.f32 %v3846_v44, %v3838_v29  ;;  %v3767_v10 = vmul.f32 %v3734_v43, %v6880_v5  ;;  %v3814_v25 = vmul.f32 %v3734_v43, %v6882_v3 }
 0xb75   :  { %v3880_v50 = vadd.f32 %v3879_v56, %v3878_v54  ;;  %v3853_v38 = vadd.f32 %v3845_v0, %v3837_v62  ;;  %v3842_v18 = vmul.f32 %v7069_v51, %v7069_v51  ;;  %v3850_v52 = vmul.f32 %v7071_v17, %v7071_v17 }
 0xb76   :  { %v3737_v13 = vmul.f32 %v7009_v59, %v3684_v27  ;;  %v3862_v1 = vmul.f32 %v6681_v37, %v3854_v11  ;;  %v7082_v36 = vadd.f32 %v3798_v35, %v3767_v10  ;;  %v7084_v45 = vadd.f32 %v3825_v42, %v3814_v25  ;;  %v7121_v25 = vld [vmem:[#allocation6 + $0x8] sm:$0x3] }
 0xb77   :  { %v3881_v23 = vrot.slane %v3880_v50, 4  ;;  %v3861_v2 = vmul.f32 %v6668_v26, %v3853_v38  ;;  %v3858_v40 = vadd.f32 %v3850_v52, %v3842_v18  ;;  %v3800_v27 = vmul.f32 %v6998_v16, %v7017_v28 }
 0xb78   :  { %v3770_v5 = vmul.f32 %v3737_v13, %v6893_v14  ;;  %v3817_v61 = vmul.f32 %v3737_v13, %v6895_v21  ;;  %v3870_v3 = vsel %vm53_vm3, %v3862_v1, 0.0  ;;  %v3841_v39 = vmul.f32 %v7082_v36, %v7082_v36 }
 0xb79   :  { %v3882_v15 = vadd.f32 %v3881_v23, %v3880_v50  ;;  %v3869_v43 = vsel %vm51_vm1, %v3861_v2, 0.0  ;;  %v3866_v26 = vmul.f32 %v6681_v37, %v3858_v40  ;;  %v3849_v35 = vmul.f32 %v7084_v45, %v7084_v45  ;;  %v7111_v50 = vld [vmem:[#allocation6] sm:$0xff] }
 0xb7a   :  { %v3871_v4 = vadd.f32 %v3870_v3, %v3869_v43  ;;  %v7095_v42 = vadd.f32 %v3801_v19, %v3770_v5  ;;  %v7097_v29 = vadd.f32 %v3828_v41, %v3817_v61  ;;  %v3736_v21 = vmul.f32 %v7009_v59, %v3680_v6 }
 0xb7b   :  { %v3883_v14 = vrot.slane %v3882_v15, 2  ;;  %v3857_v62 = vadd.f32 %v3849_v35, %v3841_v39  ;;  %v3827_v19 = vmul.f32 %v7003_v58, %v7017_v28  ;;  %v3888_v59 = vsel %vm53_vm3, %v3866_v26, 0.0 }
 0xb7c   :  { %v3872_v44 = vrot.slane %v3871_v4, 4  ;;  %v3844_v0 = vmul.f32 %v7095_v42, %v7095_v42  ;;  %v3852_v37 = vmul.f32 %v7097_v29, %v7097_v29  ;;  %v3769_v56 = vmul.f32 %v3736_v21, %v6910_v33 }
 0xb7d   :  { %v3816_v41 = vmul.f32 %v3736_v21, %v6912_v20  ;;  %v3865_v11 = vmul.f32 %v7111_v50, %v3857_v62  ;;  %v3884_v38 = vadd.f32 %v3883_v14, %v3882_v15 }
 0xb7e   :  { %v3873_v54 = vadd.f32 %v3872_v44, %v3871_v4  ;;  %v3860_v10 = vadd.f32 %v3852_v37, %v3844_v0  ;;  %v7114_v16 = vadd.f32 %v3800_v27, %v3769_v56  ;;  %v7134_v37 = vld [vmem:[%s7329_s3] ss:$0 sm:$0xff] }
 0xb7f   :  { %v7116_v18 = vadd.f32 %v3827_v19, %v3816_v41  ;;  %v3887_v58 = vsel %vm51_vm1, %v3865_v11, 0.0  ;;  %v3885_v1 = vrot.slane %v3884_v38, 1  ;;  %v3629_v11 = vrot.slane %v6971_v47, 4 }
 0xb80   :  { %v3874_v52 = vrot.slane %v3873_v54, 2  ;;  %v3889_v28 = vadd.f32 %v3888_v59, %v3887_v58  ;;  %v3843_v33 = vmul.f32 %v7114_v16, %v7114_v16  ;;  %v3868_v13 = vmul.f32 %v7121_v25, %v3860_v10 }
 0xb81   :  { %v3851_v23 = vmul.f32 %v7116_v18, %v7116_v18  ;;  %v3886_v3 = vadd.f32 %v3885_v1, %v3884_v38 }
 0xb82   :  { %v3875_v20 = vadd.f32 %v3874_v52, %v3873_v54  ;;  %v3890_v2 = vrot.slane %v3889_v28, 4  ;;  %v3897_v6 = vsel %vm53_vm3, %v3868_v13, 0.0  ;;  %v3631_v52 = vmul.f32 0.16666667, %v3629_v11 }
 0xb83   :  { %v3859_v5 = vadd.f32 %v3851_v23, %v3843_v33  ;;  %v3906_v14 = vadd.f32 %v6720_v30, %v3886_v3 }
 0xb84   :  { %v3876_v40 = vrot.slane %v3875_v20, 1  ;;  %v3891_v61 = vadd.f32 %v3890_v2, %v3889_v28  ;;  %v3632_v33 = vadd.f32 0.5, %v3631_v52 }
 0xb85   :  { %v3867_v15 = vmul.f32 %v7111_v50, %v3859_v5  ;;  %5365 = vtanh.f32 %v3906_v14 }
 0xb86   :  { %v3892_v43 = vrot.slane %v3891_v61, 2  ;;  %v3877_v39 = vadd.f32 %v3876_v40, %v3875_v20  ;;  %v3633_v1 = vmax.f32 %v3632_v33, 0.0  ;;  %v4490_v33 = vld [vmem:[%s7332_s6] sm:$0xff] }
 0xb87   :  { %v3896_v4 = vsel %vm51_vm1, %v3867_v15, 0.0 }
 0xb88   :  { %v3893_v26 = vadd.f32 %v3892_v43, %v3891_v61  ;;  %v3898_v35 = vadd.f32 %v3897_v6, %v3896_v4  ;;  %v3905_v62 = vadd.f32 %v6720_v30, %v3877_v39  ;;  %v3634_v61 = vmin.f32 %v3633_v1, 1.0  ;;  %v4668_v39 = vld [vmem:[%s7326_s0 + $0x8c] sm:$0xff] }
 0xb89   :  { %v4495_v1 = vld [vmem:[%s7332_s6 + $0x28] sm:$0xff] }
 0xb8a   :  { %v3894_v21 = vrot.slane %v3893_v26, 1  ;;  %v3899_v44 = vrot.slane %v3898_v35, 4  ;;  %5367 = vtanh.f32 %v3905_v62  ;;  %v4670_v62 = vld [vmem:[%s7326_s0 + $0x9c] sm:$0xf] }
 0xb8c   :  { %v3895_v0 = vadd.f32 %v3894_v21, %v3893_v26  ;;  %v3900_v27 = vadd.f32 %v3899_v44, %v3898_v35 }
 0xb8e   :  { %v3907_v19 = vadd.f32 %v7134_v37, %v3895_v0  ;;  %v3901_v56 = vrot.slane %v3900_v27, 2 }
 0xb8f   :  { %v5366_v38 = vpop.eup %5365 }
 0xb90   :  { %5369 = vtanh.f32 %v3907_v19  ;;  %v3902_v41 = vadd.f32 %v3901_v56, %v3900_v27  ;;  %v3917_v28 = vrot.slane %v5366_v38, 7 }
 0xb92   :  { %v3903_v54 = vrot.slane %v3902_v41, 1 }
 0xb94   :  { %v3904_v59 = vadd.f32 %v3903_v54, %v3902_v41  ;;  %v5368_v10 = vpop.eup %5367 }
 0xb95   :  { %v3918_v20 = vsel %vm666_vm4, %v3917_v28, %v5368_v10 }
 0xb96   :  { %v3908_v30 = vadd.f32 %v7134_v37, %v3904_v59  ;;  %v3919_v23 = vsel %vm668_vm5, %v3917_v28, %v3918_v20  ;;  %v4492_v20 = vld [vmem:[%s7332_s6 + $0x10] sm:$0xff] }
 0xb98   :  { %5371 = vtanh.f32 %v3908_v30 }
 0xb9a   :  { %v5370_v58 = vpop.eup %5369 }
 0xb9b   :  { %v3920_v13 = vrot.slane %v5370_v58, 6 }
 0xb9d   :  { %v3921_v2 = vsel %vm671_vm6, %v3920_v13, %v3919_v23  ;;  %v4494_v23 = vld [vmem:[%s7332_s6 + $0x20] sm:$0xff] }
 0xb9e   :  { %v3922_v47 = vsel %vm673_vm7, %v3920_v13, %v3921_v2  ;;  %v5291_v2 = vpack.c.bf16 %v4495_v1, %v4494_v23 }
 0xba2   :  { %v5372_v40 = vpop.eup %5371 }
 0xba3   :  { %v3923_v5 = vrot.slane %v5372_v40, 5  ;;  %v4496_v40 = vld [vmem:[%s7332_s6 + $0x30] sm:$0xff] }
 0xba5   :  { %v3924_v6 = vsel %vm676_vm8, %v3923_v5, %v3922_v47 }
 0xba6   :  { %v3925_v15 = vsel %vm678_vm9, %v3923_v5, %v3924_v6  ;;  %v4497_v5 = vld [vmem:[%s7332_s6 + $0x38] sm:$0xff] }
 0xba7   :  { %v3927_v3 = vmul.f32 %v3925_v15, %v3634_v61  ;;  %v5294_v47 = vpack.c.bf16 %v4497_v5, %v4496_v40  ;;  %v7534_v5 = vld [vmem:[#allocation9_spill] sm:$0xff] }
 0xba9   :  { %4671 = vmatmul.mubr.msk.f32.vlgmr.msra.gmra.mrb[20].mxu1 %vm51_vm1, %v3927_v3  ;;  %4672 = vmatmul.mubr.msk.f32.vlgmr.msra.gmra.mrb[22].mxu0 %vm51_vm1, %v3927_v3 }
 0xbaa   :  { %5274 = vmatpush3.bf16.msra.mxu1 %v5656_v53  ;;  %4910 = vmatprep.mubr.msk.f32.mxu1 %vm5425_vm2, %v7420_v7 }
 0xbab   :  { %5275 = vmatprep.subr.bf16.mxu1 %v7421_v8  ;;  %4929 = vmatprep.mubr.msk.f32.mxu0 %vm5425_vm2, %v7420_v7 }
 0xbae   :  { %5277 = vmatpush3.bf16.msra.mxu1 %v5670_v57  ;;  %v4669_v57 = vld [vmem:[%s7326_s0 + $0x94] sm:$0xff] }
 0xbaf   :  { %5278 = vmatprep.subr.bf16.mxu1 %v7421_v8 }
 0xbb2   :  { %5280 = vmatpush3.bf16.msra.mxu1 %v5685_v60 }
 0xbb3   :  { %5281 = vmatprep.subr.bf16.mxu1 %v7421_v8 }
 0xbb6   :  { %5283 = vmatpush3.bf16.msra.mxu1 %v5697_v63 }
 0xbb9   :  { %4911 = vmatmul.mubr.msk.f32.vlgmr.msra.gmra.mrb[22].mxu1 %vm51_vm1, %v3927_v3 }
 0xc7c   :  { %v4001_v53 = vpop.f32.mrb[20].mxu1  ;;  %v4072_v43 = vpop.f32.mrb[22].mxu0 }
 0xc7d   :  { %v4003_v4 = vpop.f32.mrb[21].mxu1  ;;  %v4074_v7 = vpop.f32.mrb[23].mxu0 }
 0xc7e   :  { %v4151_v26 = vcombine.low %v4001_v53, %v4003_v4  ;;  %v4152_v60 = vcombine.low %v4072_v43, %v4074_v7 }
 0xc80   :  { %v4155_v35 = vadd.f32 %v4668_v39, %v4151_v26  ;;  %v7165_v14 = vadd.f32 %v4669_v57, %v4152_v60 }
 0xc82   :  { %v4158_v63 = vmul.f32 0.16666667, %v4155_v35  ;;  %5373 = vtanh.f32 %v7165_v14  ;;  %v4163_v61 = vrot.slane %v4155_v35, 4 }
 0xc84   :  { %v4159_v21 = vadd.f32 0.5, %v4158_v63  ;;  %v4165_v6 = vmul.f32 0.16666667, %v4163_v61  ;;  %v7535_v61 = vld [vmem:[#allocation26_spill] sm:$0xff] }
 0xc86   :  { %v4160_v44 = vmax.f32 %v4159_v21, 0.0  ;;  %v4166_v15 = vadd.f32 0.5, %v4165_v6 }
 0xc88   :  { %v4161_v0 = vmin.f32 %v4160_v44, 1.0  ;;  %v4167_v3 = vmax.f32 %v4166_v15, 0.0 }
 0xc8a   :  { %v4168_v53 = vmin.f32 %v4167_v3, 1.0 }
 0xc8c   :  { %v5374_v27 = vpop.eup %5373  ;;  %v4143_v19 = vpop.f32.mrb[22].mxu1  ;;  %v4233_v43 = vrot.slane %v4168_v53, %v7528_v46 }
 0xc8d   :  { %v4181_v56 = vmul.f32 %v5374_v27, %v4161_v0  ;;  %v4157_v41 = vadd.f32 %v4670_v62, %v4143_v19  ;;  %v4912_v54 = vpop.f32.mrb[23].mxu1  ;;  %v4675_v62 = vld [vmem:[%s7330_s4 + $0x78] sm:$0x3]  ;;  %v7219_v19 = vld [vmem:[%s7330_s4 + $0x70] sm:$0xff] }
 0xc8e   :  { %v4234_v4 = vcombine.high %v4233_v43, %v4233_v43  ;;  %v4241_v26 = vrot.slane %v4233_v43, %v7528_v46  ;;  %v4677_v0 = vld [vmem:[%s7331_s5 + $0x78] sm:$0x3] }
 0xc8f   :  { %v4176_v59 = vmul.f32 0.16666667, %v4157_v41  ;;  %v4286_v39 = vrot.slane %v4181_v56, %v7528_v46 }
 0xc90   :  { %v4248_v7 = vrot.slane %v4234_v4, %v7528_v46  ;;  %v4249_v63 = vcombine.high %v4241_v26, %v4241_v26  ;;  %v4254_v54 = vrot.slane %v4241_v26, %v7525_v55 }
 0xc91   :  { %v4177_v11 = vadd.f32 0.5, %v4176_v59  ;;  %v4287_v57 = vcombine.high %v4286_v39, %v4286_v39  ;;  %v4294_v60 = vrot.slane %v4286_v39, %v7528_v46 }
 0xc92   :  { %v4250_v35 = vcombine.high %v4248_v7, %v4248_v7  ;;  %v4258_v41 = vrot.slane %v4248_v7, %v7525_v55  ;;  %v4262_v59 = vrot.slane %v4249_v63, %v7525_v55 }
 0xc93   :  { %v4178_v30 = vmax.f32 %v4177_v11, 0.0  ;;  %v4318_v21 = vrot.slane %v4294_v60, %v7525_v55  ;;  %v4302_v44 = vcombine.high %v4294_v60, %v4294_v60 }
 0xc94   :  { %v7230_v11 = vrot.slane %v4250_v35, %v7525_v55 }
 0xc95   :  { %v4179_v38 = vmin.f32 %v4178_v30, 1.0 }
 0xc97   :  { %v4196_v10 = vrot.slane %v4179_v38, %v7524_v22  ;;  %v4185_v52 = vrot.slane %v4179_v38, %v7525_v55  ;;  %v4207_v58 = vrot.slane %v4179_v38, %v7526_v31  ;;  %v4218_v28 = vrot.slane %v4179_v38, %v7527_v48  ;;  %v4491_v22 = vld [vmem:[%s7332_s6 + $0x8] sm:$0xff]  ;;  %v4493_v31 = vld [vmem:[%s7332_s6 + $0x18] sm:$0xff] }
 0xc98   :  { %v5285_v13 = vpack.c.bf16 %v4491_v22, %v4490_v33  ;;  %v5288_v48 = vpack.c.bf16 %v4493_v31, %v4492_v20 }
 0xc99   :  { %4202 = vbcast.lane.b32.xlu1 %v4196_v10, 264  ;;  %4198 = vbcast.lane.b32.xlu0 %v4196_v10, 256  ;;  %v4336_v10 = vmul.f32 %v4675_v62, %v4318_v21 }
 0xc9a   :  { %5286 = vmatpush3.bf16.msra.mxu0 %v5285_v13 }
 0xc9b   :  { %5287 = vmatprep.subr.bf16.mxu0 %v7421_v8 }
 0xc9d   :  { %4191 = vbcast.lane.b32.xlu1 %v4185_v52, 264  ;;  %4187 = vbcast.lane.b32.xlu0 %v4185_v52, 256  ;;  %v4363_v52 = vmul.f32 %v4677_v0, %v4318_v21 }
 0xc9e   :  { %5289 = vmatpush3.bf16.msra.mxu0 %v5288_v48 }
 0xc9f   :  { %5290 = vmatprep.subr.bf16.mxu0 %v7421_v8 }
 0xca1   :  { %4213 = vbcast.lane.b32.xlu1 %v4207_v58, 264  ;;  %4209 = vbcast.lane.b32.xlu0 %v4207_v58, 256  ;;  %v4335_v58 = vmul.f32 %v7219_v19, %v4318_v21 }
 0xca2   :  { %5292 = vmatpush3.bf16.msra.mxu0 %v5291_v2 }
 0xca3   :  { %5293 = vmatprep.subr.bf16.mxu0 %v7421_v8  ;;  %v4301_v8 = vrot.slane %v4287_v57, %v7528_v46  ;;  %v7224_v46 = vld [vmem:[%s7331_s5 + $0x70] sm:$0xff] }
 0xca4   :  { %v4362_v13 = vmul.f32 %v7224_v46, %v4318_v21 }
 0xca5   :  { %4224 = vbcast.lane.b32.xlu1 %v4218_v28, 264  ;;  %4220 = vbcast.lane.b32.xlu0 %v4218_v28, 256  ;;  %v4322_v27 = vrot.slane %v4301_v8, %v7525_v55  ;;  %v4303_v56 = vcombine.high %v4301_v8, %v4301_v8  ;;  %v4326_v28 = vrot.slane %v4302_v44, %v7525_v55 }
 0xca6   :  { %5295 = vmatpush3.bf16.msra.mxu0 %v5294_v47 }
 0xca7   :  { %v4338_v22 = vmul.f32 %v4675_v62, %v4322_v27  ;;  %v4365_v31 = vmul.f32 %v4677_v0, %v4322_v27  ;;  %v4337_v48 = vmul.f32 %v7219_v19, %v4322_v27  ;;  %v4364_v23 = vmul.f32 %v7224_v46, %v4322_v27 }
 0xca8   :  { %v7238_v1 = vrot.slane %v4303_v56, %v7525_v55  ;;  %v4340_v53 = vmul.f32 %v4675_v62, %v4326_v28  ;;  %v4367_v43 = vmul.f32 %v4677_v0, %v4326_v28  ;;  %v4339_v39 = vmul.f32 %v7219_v19, %v4326_v28 }
 0xca9   :  { %v7246_v4 = vmul.f32 %v7224_v46, %v4326_v28 }
 0xcaa   :  { %v7252_v8 = vmul.f32 %v4677_v0, %v7238_v1 }
 0xd0b   :  { %v4203_v30 = vpop.permute.xlu1 %4202  ;;  %v4199_v38 = vpop.permute.xlu0 %4198 }
 0xd0c   :  { %v4274_v33 = vmul.f32 %v4258_v41, %v4203_v30  ;;  %v4273_v20 = vmul.f32 %v4258_v41, %v4199_v38 }
 0xd0e   :  { %v4307_v2 = vmul.f32 %v4274_v33, %v7025_v32  ;;  %v4354_v40 = vmul.f32 %v4274_v33, %v7027_v24  ;;  %v4306_v47 = vmul.f32 %v4273_v20, %v7534_v5  ;;  %v4353_v6 = vmul.f32 %v4273_v20, %v7535_v61 }
 0xd0f   :  { %v4192_v15 = vpop.permute.xlu1 %4191  ;;  %v4188_v3 = vpop.permute.xlu0 %4187  ;;  %v7249_v24 = vmul.f32 %v4675_v62, %v7238_v1 }
 0xd10   :  { %v4346_v57 = vadd.f32 %v4338_v22, %v4307_v2  ;;  %v4373_v55 = vadd.f32 %v4365_v31, %v4354_v40  ;;  %v4345_v7 = vadd.f32 %v4337_v48, %v4306_v47  ;;  %v4372_v26 = vadd.f32 %v4364_v23, %v4353_v6 }
 0xd11   :  { %v4272_v32 = vmul.f32 %v4254_v54, %v4192_v15  ;;  %v4271_v60 = vmul.f32 %v4254_v54, %v4188_v3 }
 0xd12   :  { %v4381_v63 = vmul.f32 %v4346_v57, %v4346_v57  ;;  %v4389_v35 = vmul.f32 %v4373_v55, %v4373_v55  ;;  %4474 = vst.msk [vmem:[#allocation3 + $0x18] sm:$0x3] %vm53_vm3, %v4346_v57  ;;  %4482 = vst.msk [vmem:[#allocation4 + $0x18] sm:$0x3] %vm53_vm3, %v4373_v55  ;;  %v4380_v21 = vmul.f32 %v4345_v7, %v4345_v7 }
 0xd13   :  { %v4388_v44 = vmul.f32 %v4372_v26, %v4372_v26  ;;  %4473 = vst.msk [vmem:[#allocation3 + $0x10] sm:$0xff] %vm51_vm1, %v4345_v7  ;;  %4481 = vst.msk [vmem:[#allocation4 + $0x10] sm:$0xff] %vm51_vm1, %v4372_v26  ;;  %v4305_v27 = vmul.f32 %v4272_v32, %v7047_v49  ;;  %v4352_v62 = vmul.f32 %v4272_v32, %v7049_v34  ;;  %v4214_v41 = vpop.permute.xlu1 %4213  ;;  %v4210_v54 = vpop.permute.xlu0 %4209 }
 0xd14   :  { %v4304_v56 = vmul.f32 %v4271_v60, %v7051_v12  ;;  %v4351_v0 = vmul.f32 %v4271_v60, %v7053_v9  ;;  %v4397_v30 = vadd.f32 %v4389_v35, %v4381_v63  ;;  %v4276_v28 = vmul.f32 %v4262_v59, %v4214_v41 }
 0xd15   :  { %v4396_v38 = vadd.f32 %v4388_v44, %v4380_v21  ;;  %v4275_v33 = vmul.f32 %v4262_v59, %v4210_v54  ;;  %v4344_v22 = vadd.f32 %v4336_v10, %v4305_v27  ;;  %v4371_v20 = vadd.f32 %v4363_v52, %v4352_v62 }
 0xd16   :  { %v4343_v31 = vadd.f32 %v4335_v58, %v4304_v56  ;;  %v4370_v48 = vadd.f32 %v4362_v13, %v4351_v0  ;;  %v4405_v23 = vmul.f32 %v7121_v25, %v4397_v30  ;;  %v4309_v34 = vmul.f32 %v4276_v28, %v7069_v51 }
 0xd17   :  { %v4404_v49 = vmul.f32 %v7111_v50, %v4396_v38  ;;  %v4356_v12 = vmul.f32 %v4276_v28, %v7071_v17  ;;  %v4379_v2 = vmul.f32 %v4344_v22, %v4344_v22  ;;  %v4387_v9 = vmul.f32 %v4371_v20, %v4371_v20  ;;  %4472 = vst.msk [vmem:[#allocation3 + $0x8] sm:$0x3] %vm53_vm3, %v4344_v22  ;;  %v4225_v10 = vpop.permute.xlu1 %4224  ;;  %v4221_v63 = vpop.permute.xlu0 %4220 }
 0xd18   :  { %4480 = vst.msk [vmem:[#allocation4 + $0x8] sm:$0x3] %vm53_vm3, %v4371_v20  ;;  %v4378_v40 = vmul.f32 %v4343_v31, %v4343_v31  ;;  %v4386_v59 = vmul.f32 %v4370_v48, %v4370_v48  ;;  %v4420_v52 = vsel %vm53_vm3, %v4405_v23, 0.0  ;;  %v4348_v51 = vadd.f32 %v4340_v53, %v4309_v34 }
 0xd19   :  { %4471 = vst.msk [vmem:[#allocation3] sm:$0xff] %vm51_vm1, %v4343_v31  ;;  %4479 = vst.msk [vmem:[#allocation4] sm:$0xff] %vm51_vm1, %v4370_v48  ;;  %v4419_v58 = vsel %vm51_vm1, %v4404_v49, 0.0  ;;  %v4375_v13 = vadd.f32 %v4367_v43, %v4356_v12  ;;  %v4395_v5 = vadd.f32 %v4387_v9, %v4379_v2  ;;  %v4308_v61 = vmul.f32 %v4275_v33, %v7082_v36 }
 0xd1a   :  { %v4421_v17 = vadd.f32 %v4420_v52, %v4419_v58  ;;  %v4394_v47 = vadd.f32 %v4386_v59, %v4378_v40  ;;  %v4383_v6 = vmul.f32 %v4348_v51, %v4348_v51  ;;  %4476 = vst.msk [vmem:[#allocation3 + $0x28] sm:$0x3] %vm53_vm3, %v4348_v51  ;;  %v4355_v3 = vmul.f32 %v4275_v33, %v7084_v45 }
 0xd1b   :  { %v4391_v15 = vmul.f32 %v4375_v13, %v4375_v13  ;;  %4484 = vst.msk [vmem:[#allocation4 + $0x28] sm:$0x3] %vm53_vm3, %v4375_v13  ;;  %v4278_v57 = vmul.f32 %v7230_v11, %v4225_v10  ;;  %v4403_v7 = vmul.f32 %v7121_v25, %v4395_v5  ;;  %v4347_v43 = vadd.f32 %v4339_v39, %v4308_v61 }
 0xd1c   :  { %v4422_v55 = vrot.slane %v4421_v17, 4  ;;  %v4402_v53 = vmul.f32 %v7111_v50, %v4394_v47  ;;  %v4374_v32 = vadd.f32 %v7246_v4, %v4355_v3  ;;  %v4277_v56 = vmul.f32 %v7230_v11, %v4221_v63 }
 0xd1d   :  { %v4399_v26 = vadd.f32 %v4391_v15, %v4383_v6  ;;  %v4311_v36 = vmul.f32 %v4278_v57, %v7095_v42  ;;  %v4358_v60 = vmul.f32 %v4278_v57, %v7097_v29  ;;  %v4411_v21 = vsel %vm53_vm3, %v4403_v7, 0.0  ;;  %4475 = vst.msk [vmem:[#allocation3 + $0x20] sm:$0xff] %vm51_vm1, %v4347_v43 }
 0xd1e   :  { %v4423_v35 = vadd.f32 %v4422_v55, %v4421_v17  ;;  %v4410_v45 = vsel %vm51_vm1, %v4402_v53, 0.0  ;;  %v4382_v44 = vmul.f32 %v4347_v43, %v4347_v43  ;;  %v4390_v39 = vmul.f32 %v4374_v32, %v4374_v32  ;;  %4483 = vst.msk [vmem:[#allocation4 + $0x20] sm:$0xff] %vm51_vm1, %v4374_v32 }
 0xd1f   :  { %v4412_v27 = vadd.f32 %v4411_v21, %v4410_v45  ;;  %v4407_v62 = vmul.f32 %v7121_v25, %v4399_v26  ;;  %v4350_v4 = vadd.f32 %v7249_v24, %v4311_v36  ;;  %v4377_v29 = vadd.f32 %v7252_v8, %v4358_v60 }
 0xd20   :  { %v4424_v42 = vrot.slane %v4423_v35, 2  ;;  %v4341_v0 = vmul.f32 %v7219_v19, %v7238_v1  ;;  %v4398_v54 = vadd.f32 %v4390_v39, %v4382_v44  ;;  %v4368_v38 = vmul.f32 %v7224_v46, %v7238_v1 }
 0xd21   :  { %v4413_v41 = vrot.slane %v4412_v27, 4  ;;  %v4385_v30 = vmul.f32 %v4350_v4, %v4350_v4  ;;  %4478 = vst.msk [vmem:[#allocation3 + $0x38] sm:$0x3] %vm53_vm3, %v4350_v4  ;;  %v4393_v33 = vmul.f32 %v4377_v29, %v4377_v29  ;;  %4486 = vst.msk [vmem:[#allocation4 + $0x38] sm:$0x3] %vm53_vm3, %v4377_v29  ;;  %v4310_v24 = vmul.f32 %v4277_v56, %v7114_v16 }
 0xd22   :  { %v4425_v28 = vadd.f32 %v4424_v42, %v4423_v35  ;;  %v4357_v8 = vmul.f32 %v4277_v56, %v7116_v18  ;;  %v4429_v22 = vsel %vm53_vm3, %v4407_v62, 0.0  ;;  %v4406_v19 = vmul.f32 %v7111_v50, %v4398_v54 }
 0xd23   :  { %v4414_v11 = vadd.f32 %v4413_v41, %v4412_v27  ;;  %v4401_v31 = vadd.f32 %v4393_v33, %v4385_v30  ;;  %v4349_v48 = vadd.f32 %v4341_v0, %v4310_v24  ;;  %v4170_v63 = vrot.slane %v7165_v14, 4 }
 0xd24   :  { %v4426_v20 = vrot.slane %v4425_v28, 1  ;;  %v4376_v23 = vadd.f32 %v4368_v38, %v4357_v8  ;;  %v4428_v46 = vsel %vm51_vm1, %v4406_v19, 0.0 }
 0xd25   :  { %v4415_v49 = vrot.slane %v4414_v11, 2  ;;  %v4430_v34 = vadd.f32 %v4429_v22, %v4428_v46  ;;  %v4384_v12 = vmul.f32 %v4349_v48, %v4349_v48  ;;  %4477 = vst.msk [vmem:[#allocation3 + $0x30] sm:$0xff] %vm51_vm1, %v4349_v48  ;;  %v4409_v18 = vmul.f32 %v7121_v25, %v4401_v31 }
 0xd26   :  { %v4427_v1 = vadd.f32 %v4426_v20, %v4425_v28  ;;  %4485 = vst.msk [vmem:[#allocation4 + $0x30] sm:$0xff] %vm51_vm1, %v4376_v23  ;;  %v4392_v2 = vmul.f32 %v4376_v23, %v4376_v23  ;;  %v4172_v45 = vmul.f32 0.16666667, %v4170_v63 }
 0xd27   :  { %v4416_v16 = vadd.f32 %v4415_v49, %v4414_v11  ;;  %v4431_v40 = vrot.slane %v4430_v34, 4  ;;  %v4438_v51 = vsel %vm53_vm3, %v4409_v18, 0.0 }
 0xd28   :  { %v4447_v9 = vadd.f32 %v7134_v37, %v4427_v1  ;;  %v4400_v10 = vadd.f32 %v4392_v2, %v4384_v12  ;;  %v4173_v62 = vadd.f32 0.5, %v4172_v45 }
 0xd29   :  { %v4417_v59 = vrot.slane %v4416_v16, 1  ;;  %v4432_v52 = vadd.f32 %v4431_v40, %v4430_v34 }
 0xd2a   :  { %5375 = vtanh.f32 %v4447_v9  ;;  %v4408_v13 = vmul.f32 %v7111_v50, %v4400_v10  ;;  %v4174_v42 = vmax.f32 %v4173_v62, 0.0 }
 0xd2b   :  { %v4418_v58 = vadd.f32 %v4417_v59, %v4416_v16  ;;  %v4433_v17 = vrot.slane %v4432_v52, 2 }
 0xd2c   :  { %v4437_v47 = vsel %vm51_vm1, %v4408_v13, 0.0  ;;  %v4175_v0 = vmin.f32 %v4174_v42, 1.0 }
 0xd2d   :  { %v4446_v5 = vadd.f32 %v7134_v37, %v4418_v58  ;;  %v4434_v61 = vadd.f32 %v4433_v17, %v4432_v52  ;;  %v4439_v25 = vadd.f32 %v4438_v51, %v4437_v47 }
 0xd2f   :  { %5377 = vtanh.f32 %v4446_v5  ;;  %v4435_v6 = vrot.slane %v4434_v61, 1  ;;  %v4440_v15 = vrot.slane %v4439_v25, 4 }
 0xd31   :  { %v4436_v3 = vadd.f32 %v4435_v6, %v4434_v61  ;;  %v4441_v57 = vadd.f32 %v4440_v15, %v4439_v25 }
 0xd33   :  { %v4448_v55 = vadd.f32 %v7134_v37, %v4436_v3  ;;  %v4442_v7 = vrot.slane %v4441_v57, 2 }
 0xd34   :  { %v5376_v53 = vpop.eup %5375 }
 0xd35   :  { %5379 = vtanh.f32 %v4448_v55  ;;  %v4443_v43 = vadd.f32 %v4442_v7, %v4441_v57  ;;  %v4458_v26 = vrot.slane %v5376_v53, 7 }
 0xd37   :  { %v4444_v50 = vrot.slane %v4443_v43, 1 }
 0xd39   :  { %v5378_v32 = vpop.eup %5377  ;;  %v4445_v36 = vadd.f32 %v4444_v50, %v4443_v43 }
 0xd3a   :  { %v4459_v60 = vsel %vm666_vm4, %v4458_v26, %v5378_v32 }
 0xd3b   :  { %v4460_v35 = vsel %vm668_vm5, %v4458_v26, %v4459_v60  ;;  %v4449_v21 = vadd.f32 %v7134_v37, %v4445_v36  ;;  %v4678_v37 = vld [vmem:[#allocation5] ss:$0 sm:$0xff] }
 0xd3d   :  { %5381 = vtanh.f32 %v4449_v21 }
 0xd3f   :  { %v5380_v44 = vpop.eup %5379 }
 0xd40   :  { %v4461_v27 = vrot.slane %v5380_v44, 6 }
 0xd42   :  { %v4462_v39 = vsel %vm671_vm6, %v4461_v27, %v4460_v35 }
 0xd43   :  { %v4463_v4 = vsel %vm673_vm7, %v4461_v27, %v4462_v39 }
 0xd47   :  { %v5382_v29 = vpop.eup %5381 }
 0xd48   :  { %v4464_v56 = vrot.slane %v5382_v29, 5 }
 0xd4a   :  { %v4465_v41 = vsel %vm676_vm8, %v4464_v56, %v4463_v4 }
 0xd4b   :  { %v4466_v14 = vsel %vm678_vm9, %v4464_v56, %v4465_v41 }
 0xd4c   :  { %v4468_v54 = vmul.f32 %v4466_v14, %v4175_v0 }
 0xd4e   :  { %4470 = vst.msk [vmem:[#allocation2] sm:$0xf] %vm49_vm0, %v4468_v54  ;;  %4930 = vmatmul.mubr.msk.f32.vlgmr.msra.gmra.mrb[24].mxu0 %vm51_vm1, %v4468_v54 }
 0xe21   :  { %v4574_v30 = vpop.f32.mrb[24].mxu0 }
 0xe22   :  { %v4575_v38 = vadd.f32 %v4678_v37, %v4574_v30  ;;  %v4931_v28 = vpop.f32.mrb[25].mxu0 }
 0xe24   :  { %v4579_v33 = vsel %vm4578_vm10, %v4575_v38, -inf }
 0xe25   :  { %v4580_v24 = vrot.slane %v4579_v33, 4 }
 0xe27   :  { %v4581_v8 = vmax.f32 %v4579_v33, %v4580_v24 }
 0xe29   :  { %v4582_v11 = vrot.slane %v4581_v8, 2 }
 0xe2b   :  { %v4583_v22 = vmax.f32 %v4581_v8, %v4582_v11 }
 0xe2d   :  { %v4584_v19 = vrot.slane %v4583_v22, 1 }
 0xe2f   :  { %v4585_v20 = vmax.f32 %v4583_v22, %v4584_v19 }
 0xe31   :  { %v4586_v31 = vsub.f32 %v4575_v38, %v4585_v20 }
 0xe33   :  { %v4587_v48 = vmul.f32 1.442695, %v4586_v31 }
 0xe35   :  { %5383 = vpow2.f32 %v4587_v48 }
 0xe3f   :  { %v5384_v23 = vpop.eup %5383 }
 0xe40   :  { %v4589_v49 = vsel %vm4578_vm10, %v5384_v23, 0.0 }
 0xe41   :  { %v4590_v46 = vrot.slane %v4589_v49, 4 }
 0xe43   :  { %v4591_v1 = vadd.f32 %v4590_v46, %v4589_v49 }
 0xe45   :  { %v4592_v34 = vrot.slane %v4591_v1, 2 }
 0xe47   :  { %v4593_v12 = vadd.f32 %v4592_v34, %v4591_v1 }
 0xe49   :  { %v4594_v16 = vrot.slane %v4593_v12, 1 }
 0xe4b   :  { %v4595_v18 = vadd.f32 %v4594_v16, %v4593_v12 }
 0xe4d   :  { %5385 = vrcp.f32 %v4595_v18 }
 0xe57   :  { %v5386_v2 = vpop.eup %5385 }
 0xe58   :  { %v4597_v9 = vmul.f32 %v5386_v2, %v5384_v23 }
 0xe5a   :  { %4598 = vst.msk [vmem:[%s7334_s8] sm:$0xf] %vm4578_vm10, %v4597_v9 }
 0xe5b   :  { %4603 = vsyncpa [#allocation7], 1 }

</bundles_post_ra>
